<compile_context>
chip_gen: v7x
topology: tpu7x:2x2x1
jax: 0.10.0
libtpu: 0.0.40
codegen_flags: <defaults>
</compile_context>

<pallas_src>
import functools

import jax
import jax.numpy as jnp
import numpy as np
from jax.experimental import pallas as pl
from jax.experimental.pallas import tpu as pltpu

_BN_EPS = 1e-5
_VMEM_LIMIT = 64 * 1024 * 1024  # safe on v7x (64 MiB VMEM) and below.


# ----------------------------------------------------------------------------
# tile pickers
# ----------------------------------------------------------------------------
def _pick_m_tile(m):
    for c in (512, 256, 128, 64, 32, 16, 8):
        if m % c == 0:
            return c
    return m  # full extent (no batch tiling)


def _pick_k_tile(k):
    for c in (512, 256, 128):
        if k % c == 0:
            return c
    return k  # full extent (no K tiling)


# ----------------------------------------------------------------------------
# Kernel 1: fused Linear (bf16 MXU, f32 acc) + BN batch-statistics (one pass)
# ----------------------------------------------------------------------------
def _matmul_stats_kernel(x_ref, w_ref, b_ref, y_ref, s_ref, ss_ref, acc_ref):
    i = pl.program_id(0)               # batch-tile index
    k = pl.program_id(1)               # contraction-tile index
    nk = pl.num_programs(1)

    @pl.when(k == 0)
    def _():
        acc_ref[...] = jnp.zeros_like(acc_ref)

    acc_ref[...] += jnp.dot(
        x_ref[...].astype(jnp.bfloat16),
        w_ref[...],
        preferred_element_type=jnp.float32,
    )

    @pl.when(k == nk - 1)
    def _():
        y = acc_ref[...] + b_ref[...]          # (tm, N) f32
        y_ref[...] = y

        # Stats accumulators are resident across all batch tiles
        # (constant output block index, axis "arbitrary").
        @pl.when(i == 0)
        def _():
            s_ref[...] = jnp.zeros_like(s_ref)
            ss_ref[...] = jnp.zeros_like(ss_ref)

        s_ref[...] += jnp.sum(y, axis=0, keepdims=True)
        ss_ref[...] += jnp.sum(y * y, axis=0, keepdims=True)


# ----------------------------------------------------------------------------
# Kernel 2: BN apply (+ optional fused L2-normalize over the feature dim)
# ----------------------------------------------------------------------------
def _bn_apply_kernel(y_ref, s_ref, ss_ref, g_ref, bt_ref, *out_refs,
                     n_rows, eps, want_plain, want_l2):
    inv_n = 1.0 / float(n_rows)
    mean = s_ref[...] * inv_n                                   # (1, N)
    var = jnp.maximum(ss_ref[...] * inv_n - mean * mean, 0.0)   # (1, N), >= 0
    inv_std = jax.lax.rsqrt(var + eps)                          # EUP
    scale = g_ref[...] * inv_std
    shift = bt_ref[...] - mean * scale
    z = y_ref[...] * scale + shift                              # (tm, N) f32

    idx = 0
    if want_plain:
        out_refs[idx][...] = z
        idx += 1
    if want_l2:
        # F.normalize(x, dim=-1): x / max(||x||, 1e-12) == x * rsqrt(max(ss, 1e-24))
        ss_row = jnp.sum(z * z, axis=-1, keepdims=True)
        out_refs[idx][...] = z * jax.lax.rsqrt(jnp.maximum(ss_row, 1e-24))


# ----------------------------------------------------------------------------
# Wrapper: one Seq(Linear, BatchNorm1d) layer in training mode
# ----------------------------------------------------------------------------
def fused_linear_bn(x, w_t, bias, gamma, beta, *,
                    want_plain=True, want_l2=False, eps=_BN_EPS):
    """x: (M, K) f32; w_t: (K, N) bf16 (pre-transposed); bias/gamma/beta: (1, N) f32."""
    M, K = x.shape
    K2, N = w_t.shape
    assert K == K2
    tm = _pick_m_tile(M)
    tk = _pick_k_tile(K)

    # --- pass 1: matmul + one-pass batch statistics -------------------------
    y, s, ss = pl.pallas_call(
        _matmul_stats_kernel,
        out_shape=(
            jax.ShapeDtypeStruct((M, N), jnp.float32),
            jax.ShapeDtypeStruct((1, N), jnp.float32),
            jax.ShapeDtypeStruct((1, N), jnp.float32),
        ),
        grid_spec=pltpu.PrefetchScalarGridSpec(
            num_scalar_prefetch=0,
            grid=(M // tm, K // tk),
            in_specs=[
                pl.BlockSpec((tm, tk), lambda i, k: (i, k)),   # x
                pl.BlockSpec((tk, N), lambda i, k: (k, 0)),    # W (resident in i)
                pl.BlockSpec((1, N), lambda i, k: (0, 0)),     # bias (resident)
            ],
            out_specs=[
                pl.BlockSpec((tm, N), lambda i, k: (i, 0)),    # y
                pl.BlockSpec((1, N), lambda i, k: (0, 0)),     # sum(y)
                pl.BlockSpec((1, N), lambda i, k: (0, 0)),     # sum(y^2)
            ],
            scratch_shapes=[pltpu.VMEM((tm, N), jnp.float32)],
        ),
        compiler_params=pltpu.CompilerParams(
            # batch axis must be "arbitrary": the stats outputs accumulate
            # across batch tiles (resident accumulator).
            dimension_semantics=("arbitrary", "arbitrary"),
            vmem_limit_bytes=_VMEM_LIMIT,
        ),
    )(x, w_t, bias)

    # --- pass 2: apply gamma/beta (+ fused L2 normalize) --------------------
    out_shapes = []
    if want_plain:
        out_shapes.append(jax.ShapeDtypeStruct((M, N), jnp.float32))
    if want_l2:
        out_shapes.append(jax.ShapeDtypeStruct((M, N), jnp.float32))

    outs = pl.pallas_call(
        functools.partial(_bn_apply_kernel, n_rows=M, eps=eps,
                          want_plain=want_plain, want_l2=want_l2),
        out_shape=tuple(out_shapes),
        grid_spec=pltpu.PrefetchScalarGridSpec(
            num_scalar_prefetch=0,
            grid=(M // tm,),
            in_specs=[
                pl.BlockSpec((tm, N), lambda i: (i, 0)),   # y
                pl.BlockSpec((1, N), lambda i: (0, 0)),    # sum
                pl.BlockSpec((1, N), lambda i: (0, 0)),    # sum of squares
                pl.BlockSpec((1, N), lambda i: (0, 0)),    # gamma
                pl.BlockSpec((1, N), lambda i: (0, 0)),    # beta
            ],
            out_specs=tuple(pl.BlockSpec((tm, N), lambda i: (i, 0))
                            for _ in out_shapes),
        ),
        compiler_params=pltpu.CompilerParams(
            dimension_semantics=("parallel",),   # batch-parallel (v7x 2 TCs)
            vmem_limit_bytes=_VMEM_LIMIT,
        ),
    )(y, s, ss, gamma, beta)

    if want_plain and want_l2:
        return outs[0], outs[1]
    return outs[0]


# ----------------------------------------------------------------------------
# Full AutoEnc2 training-path forward (Pallas)
# ----------------------------------------------------------------------------
def autoenc2_forward_train(params, src_x, tgt_x):
    if tgt_x.ndim == 3:
        b, n, c = tgt_x.shape
        tgt_x = tgt_x.reshape(b * n, c)

    e1, e2, d1, d2 = (params[k] for k in ("enc1", "enc2", "dec1", "dec2"))

    enc_a, enc_a_n = fused_linear_bn(src_x, *e1, want_plain=True, want_l2=True)
    enc_b, enc_b_n = fused_linear_bn(tgt_x, *e2, want_plain=True, want_l2=True)

    fake_AA_n = fused_linear_bn(enc_a, *d1, want_plain=False, want_l2=True)
    fake_AB = fused_linear_bn(enc_a, *d2, want_plain=True, want_l2=False)
    fake_BA = fused_linear_bn(enc_b, *d1, want_plain=True, want_l2=False)
    fake_BB_n = fused_linear_bn(enc_b, *d2, want_plain=False, want_l2=True)

    enc_ab = fused_linear_bn(fake_AB, *e2, want_plain=True, want_l2=False)
    fake_ABA_n = fused_linear_bn(enc_ab, *d1, want_plain=False, want_l2=True)

    enc_ba, enc_ba_n = fused_linear_bn(fake_BA, *e1, want_plain=True, want_l2=True)
    fake_BAB_n = fused_linear_bn(enc_ba, *d2, want_plain=False, want_l2=True)

    return {
        "fake_AA": fake_AA_n,
        "fake_BB": fake_BB_n,
        "fake_ABA": fake_ABA_n,
        "fake_BAB": fake_BAB_n,
        "enc_b": enc_b_n,
        "enc_a": enc_a_n,
        "enc_ba": enc_ba_n,
    }


# ----------------------------------------------------------------------------
# Pure-JAX reference (mirrors the kernel math: bf16 MXU inputs, f32 BN)
# ----------------------------------------------------------------------------
def _ref_linear_bn(x, w_t, bias, gamma, beta, eps=_BN_EPS):
    y = jnp.dot(x.astype(jnp.bfloat16), w_t,
                preferred_element_type=jnp.float32) + bias
    mean = jnp.mean(y, axis=0, keepdims=True)
    var = jnp.maximum(jnp.mean(y * y, axis=0, keepdims=True) - mean * mean, 0.0)
    return (y - mean) * jax.lax.rsqrt(var + eps) * gamma + beta


def _ref_l2(x):
    ss = jnp.sum(x * x, axis=-1, keepdims=True)
    return x * jax.lax.rsqrt(jnp.maximum(ss, 1e-24))


def reference_forward(params, src_x, tgt_x):
    if tgt_x.ndim == 3:
        b, n, c = tgt_x.shape
        tgt_x = tgt_x.reshape(b * n, c)
    e1, e2, d1, d2 = (params[k] for k in ("enc1", "enc2", "dec1", "dec2"))
    enc_a = _ref_linear_bn(src_x, *e1)
    enc_b = _ref_linear_bn(tgt_x, *e2)
    fake_AA = _ref_linear_bn(enc_a, *d1)
    fake_AB = _ref_linear_bn(enc_a, *d2)
    fake_BA = _ref_linear_bn(enc_b, *d1)
    fake_BB = _ref_linear_bn(enc_b, *d2)
    enc_ab = _ref_linear_bn(fake_AB, *e2)
    fake_ABA = _ref_linear_bn(enc_ab, *d1)
    enc_ba = _ref_linear_bn(fake_BA, *e1)
    fake_BAB = _ref_linear_bn(enc_ba, *d2)
    return {
        "fake_AA": _ref_l2(fake_AA),
        "fake_BB": _ref_l2(fake_BB),
        "fake_ABA": _ref_l2(fake_ABA),
        "fake_BAB": _ref_l2(fake_BAB),
        "enc_b": _ref_l2(enc_b),
        "enc_a": _ref_l2(enc_a),
        "enc_ba": _ref_l2(enc_ba),
    }


# ----------------------------------------------------------------------------
# Deterministic parameter init (no checkpoint)
# ----------------------------------------------------------------------------
def _init_layer(key, in_dim, out_dim):
    kw, kb, kg, kbe = jax.random.split(key, 4)
    bound = 1.0 / np.sqrt(in_dim)
    w = jax.random.uniform(kw, (in_dim, out_dim), jnp.float32, -bound, bound)
    bias = jax.random.uniform(kb, (1, out_dim), jnp.float32, -bound, bound)
    gamma = 1.0 + 0.1 * jax.random.normal(kg, (1, out_dim), jnp.float32)
    beta = 0.1 * jax.random.normal(kbe, (1, out_dim), jnp.float32)
    # Weights pre-transposed (K, N) and stored in bf16 (MXU-native, half DMA).
    return (w.astype(jnp.bfloat16), bias, gamma, beta)


def init_params(key, out_dim, vec_dim):
    k1, k2, k3, k4 = jax.random.split(key, 4)
    return {
        "enc1": _init_layer(k1, out_dim, vec_dim),
        "enc2": _init_layer(k2, out_dim, vec_dim),
        "dec1": _init_layer(k3, vec_dim, out_dim),
        "dec2": _init_layer(k4, vec_dim, out_dim),
    }


# ----------------------------------------------------------------------------
if __name__ == "__main__":
    OUT_DIM, VEC_DIM = 384, 256          # multiples of 128 -> lane-dense tiles
    B_SRC, B_TGT, N_TGT = 8, 3, 8        # tgt is 3-D (b, n, c) like the module

    key = jax.random.PRNGKey(0)
    kp, kx, kt = jax.random.split(key, 3)
    params = init_params(kp, OUT_DIM, VEC_DIM)
    src_x = jax.random.normal(kx, (B_SRC, OUT_DIM), jnp.float32)
    tgt_x = jax.random.normal(kt, (B_TGT, N_TGT, OUT_DIM), jnp.float32)

    fwd = jax.jit(autoenc2_forward_train)
    out = jax.block_until_ready(fwd(params, src_x, tgt_x))

    ref = jax.block_until_ready(reference_forward(params, src_x, tgt_x))
    for name in out:
        np.testing.assert_allclose(np.asarray(out[name]), np.asarray(ref[name]),
                                   rtol=2e-2, atol=2e-3, err_msg=name)

    print("KERNEL_OK")
</pallas_src>

<mosaic_0001>
module attributes {stable_mosaic.version = 11 : i64} {
  func.func @_bn_apply_kernel(%arg0: i32, %arg1: memref<8x256xf32, #tpu.memory_space<vmem>>, %arg2: memref<1x256xf32, #tpu.memory_space<vmem>>, %arg3: memref<1x256xf32, #tpu.memory_space<vmem>>, %arg4: memref<1x256xf32, #tpu.memory_space<vmem>>, %arg5: memref<1x256xf32, #tpu.memory_space<vmem>>, %arg6: memref<8x256xf32, #tpu.memory_space<vmem>>, %arg7: memref<8x256xf32, #tpu.memory_space<vmem>>) attributes {dimension_semantics = [#tpu.dimension_semantics<parallel>], iteration_bounds = array<i64: 3>, scalar_prefetch = 0 : i64, scratch_operands = 0 : i64, tpu.core_type = #tpu.core_type<tc>, window_params = [{transform_indices = @transform_0, window_bounds = array<i64: 8, 256>}, {pipeline_mode = #tpu.pipeline_mode<synchronous>, transform_indices = @transform_1, window_bounds = array<i64: 1, 256>}, {pipeline_mode = #tpu.pipeline_mode<synchronous>, transform_indices = @transform_2, window_bounds = array<i64: 1, 256>}, {pipeline_mode = #tpu.pipeline_mode<synchronous>, transform_indices = @transform_3, window_bounds = array<i64: 1, 256>}, {pipeline_mode = #tpu.pipeline_mode<synchronous>, transform_indices = @transform_4, window_bounds = array<i64: 1, 256>}, {transform_indices = @transform_5, window_bounds = array<i64: 8, 256>}, {transform_indices = @transform_6, window_bounds = array<i64: 8, 256>}]} {
    %c0 = arith.constant 0 : index
    %c0_0 = arith.constant 0 : index
    %0 = vector.load %arg2[%c0, %c0_0] : memref<1x256xf32, #tpu.memory_space<vmem>>, vector<1x256xf32>
    %cst = arith.constant 0.0416666679 : f32
    %1 = vector.broadcast %cst : f32 to vector<1x256xf32>
    %2 = arith.mulf %0, %1 : vector<1x256xf32>
    %c0_1 = arith.constant 0 : index
    %c0_2 = arith.constant 0 : index
    %3 = vector.load %arg3[%c0_1, %c0_2] : memref<1x256xf32, #tpu.memory_space<vmem>>, vector<1x256xf32>
    %cst_3 = arith.constant 0.0416666679 : f32
    %4 = vector.broadcast %cst_3 : f32 to vector<1x256xf32>
    %5 = arith.mulf %3, %4 : vector<1x256xf32>
    %6 = arith.mulf %2, %2 : vector<1x256xf32>
    %7 = arith.subf %5, %6 : vector<1x256xf32>
    %cst_4 = arith.constant 0.000000e+00 : f32
    %8 = vector.broadcast %cst_4 : f32 to vector<1x256xf32>
    %9 = arith.maximumf %7, %8 : vector<1x256xf32>
    %cst_5 = arith.constant 9.99999974E-6 : f32
    %10 = vector.broadcast %cst_5 : f32 to vector<1x256xf32>
    %11 = arith.addf %9, %10 : vector<1x256xf32>
    %12 = math.rsqrt %11 : vector<1x256xf32>
    %c0_6 = arith.constant 0 : index
    %c0_7 = arith.constant 0 : index
    %13 = vector.load %arg4[%c0_6, %c0_7] : memref<1x256xf32, #tpu.memory_space<vmem>>, vector<1x256xf32>
    %14 = arith.mulf %13, %12 : vector<1x256xf32>
    %c0_8 = arith.constant 0 : index
    %c0_9 = arith.constant 0 : index
    %15 = vector.load %arg5[%c0_8, %c0_9] : memref<1x256xf32, #tpu.memory_space<vmem>>, vector<1x256xf32>
    %16 = arith.mulf %2, %14 : vector<1x256xf32>
    %17 = arith.subf %15, %16 : vector<1x256xf32>
    %c0_10 = arith.constant 0 : index
    %c0_11 = arith.constant 0 : index
    %18 = vector.load %arg1[%c0_10, %c0_11] : memref<8x256xf32, #tpu.memory_space<vmem>>, vector<8x256xf32>
    %19 = vector.broadcast %14 : vector<1x256xf32> to vector<8x256xf32>
    %20 = arith.mulf %18, %19 : vector<8x256xf32>
    %21 = vector.broadcast %17 : vector<1x256xf32> to vector<8x256xf32>
    %22 = arith.addf %20, %21 : vector<8x256xf32>
    %c0_12 = arith.constant 0 : index
    %c0_13 = arith.constant 0 : index
    %23 = vector.load %arg6[%c0_12, %c0_13] : memref<8x256xf32, #tpu.memory_space<vmem>>, vector<8x256xf32>
    tpu.vector_store %arg6[%c0_12, %c0_13], %22 {strides = array<i32>} : memref<8x256xf32, #tpu.memory_space<vmem>>, vector<8x256xf32>,
    %24 = arith.mulf %22, %22 : vector<8x256xf32>
    %cst_14 = arith.constant dense<0.000000e+00> : vector<8xf32>
    %25 = vector.multi_reduction <add>, %24, %cst_14 [1] : vector<8x256xf32> to vector<8xf32>
    %26 = vector.shape_cast %25 : vector<8xf32> to vector<8x1xf32>
    %cst_15 = arith.constant 1.000000e-24 : f32
    %27 = vector.broadcast %cst_15 : f32 to vector<8x1xf32>
    %28 = arith.maximumf %26, %27 : vector<8x1xf32>
    %29 = math.rsqrt %28 : vector<8x1xf32>
    %30 = vector.broadcast %29 : vector<8x1xf32> to vector<8x256xf32>
    %31 = arith.mulf %22, %30 : vector<8x256xf32>
    %c0_16 = arith.constant 0 : index
    %c0_17 = arith.constant 0 : index
    %32 = vector.load %arg7[%c0_16, %c0_17] : memref<8x256xf32, #tpu.memory_space<vmem>>, vector<8x256xf32>
    tpu.vector_store %arg7[%c0_16, %c0_17], %31 {strides = array<i32>} : memref<8x256xf32, #tpu.memory_space<vmem>>, vector<8x256xf32>,
    return
  }
  func.func @transform_0(%arg0: i32) -> (i32, i32) {
    %c0_i32 = arith.constant 0 : i32
    %c0_i32_0 = arith.constant 0 : i32
    return %arg0, %c0_i32 : i32, i32
  }
  func.func @transform_1(%arg0: i32) -> (i32, i32) {
    %c0_i32 = arith.constant 0 : i32
    %c0_i32_0 = arith.constant 0 : i32
    %c0_i32_1 = arith.constant 0 : i32
    return %c0_i32, %c0_i32_0 : i32, i32
  }
  func.func @transform_2(%arg0: i32) -> (i32, i32) {
    %c0_i32 = arith.constant 0 : i32
    %c0_i32_0 = arith.constant 0 : i32
    %c0_i32_1 = arith.constant 0 : i32
    return %c0_i32, %c0_i32_0 : i32, i32
  }
  func.func @transform_3(%arg0: i32) -> (i32, i32) {
    %c0_i32 = arith.constant 0 : i32
    %c0_i32_0 = arith.constant 0 : i32
    %c0_i32_1 = arith.constant 0 : i32
    return %c0_i32, %c0_i32_0 : i32, i32
  }
  func.func @transform_4(%arg0: i32) -> (i32, i32) {
    %c0_i32 = arith.constant 0 : i32
    %c0_i32_0 = arith.constant 0 : i32
    %c0_i32_1 = arith.constant 0 : i32
    return %c0_i32, %c0_i32_0 : i32, i32
  }
  func.func @transform_5(%arg0: i32) -> (i32, i32) {
    %c0_i32 = arith.constant 0 : i32
    %c0_i32_0 = arith.constant 0 : i32
    return %arg0, %c0_i32 : i32, i32
  }
  func.func @transform_6(%arg0: i32) -> (i32, i32) {
    %c0_i32 = arith.constant 0 : i32
    %c0_i32_0 = arith.constant 0 : i32
    return %arg0, %c0_i32 : i32, i32
  }
}

module attributes {stable_mosaic.version = 11 : i64} {
  func.func @_bn_apply_kernel(%arg0: i32, %arg1: memref<8x384xf32, #tpu.memory_space<vmem>>, %arg2: memref<1x384xf32, #tpu.memory_space<vmem>>, %arg3: memref<1x384xf32, #tpu.memory_space<vmem>>, %arg4: memref<1x384xf32, #tpu.memory_space<vmem>>, %arg5: memref<1x384xf32, #tpu.memory_space<vmem>>, %arg6: memref<8x384xf32, #tpu.memory_space<vmem>>) attributes {dimension_semantics = [#tpu.dimension_semantics<parallel>], iteration_bounds = array<i64: 3>, scalar_prefetch = 0 : i64, scratch_operands = 0 : i64, tpu.core_type = #tpu.core_type<tc>, window_params = [{transform_indices = @transform_0, window_bounds = array<i64: 8, 384>}, {pipeline_mode = #tpu.pipeline_mode<synchronous>, transform_indices = @transform_1, window_bounds = array<i64: 1, 384>}, {pipeline_mode = #tpu.pipeline_mode<synchronous>, transform_indices = @transform_2, window_bounds = array<i64: 1, 384>}, {pipeline_mode = #tpu.pipeline_mode<synchronous>, transform_indices = @transform_3, window_bounds = array<i64: 1, 384>}, {pipeline_mode = #tpu.pipeline_mode<synchronous>, transform_indices = @transform_4, window_bounds = array<i64: 1, 384>}, {transform_indices = @transform_5, window_bounds = array<i64: 8, 384>}]} {
    %c0 = arith.constant 0 : index
    %c0_0 = arith.constant 0 : index
    %0 = vector.load %arg2[%c0, %c0_0] : memref<1x384xf32, #tpu.memory_space<vmem>>, vector<1x384xf32>
    %cst = arith.constant 0.0416666679 : f32
    %1 = vector.broadcast %cst : f32 to vector<1x384xf32>
    %2 = arith.mulf %0, %1 : vector<1x384xf32>
    %c0_1 = arith.constant 0 : index
    %c0_2 = arith.constant 0 : index
    %3 = vector.load %arg3[%c0_1, %c0_2] : memref<1x384xf32, #tpu.memory_space<vmem>>, vector<1x384xf32>
    %cst_3 = arith.constant 0.0416666679 : f32
    %4 = vector.broadcast %cst_3 : f32 to vector<1x384xf32>
    %5 = arith.mulf %3, %4 : vector<1x384xf32>
    %6 = arith.mulf %2, %2 : vector<1x384xf32>
    %7 = arith.subf %5, %6 : vector<1x384xf32>
    %cst_4 = arith.constant 0.000000e+00 : f32
    %8 = vector.broadcast %cst_4 : f32 to vector<1x384xf32>
    %9 = arith.maximumf %7, %8 : vector<1x384xf32>
    %cst_5 = arith.constant 9.99999974E-6 : f32
    %10 = vector.broadcast %cst_5 : f32 to vector<1x384xf32>
    %11 = arith.addf %9, %10 : vector<1x384xf32>
    %12 = math.rsqrt %11 : vector<1x384xf32>
    %c0_6 = arith.constant 0 : index
    %c0_7 = arith.constant 0 : index
    %13 = vector.load %arg4[%c0_6, %c0_7] : memref<1x384xf32, #tpu.memory_space<vmem>>, vector<1x384xf32>
    %14 = arith.mulf %13, %12 : vector<1x384xf32>
    %c0_8 = arith.constant 0 : index
    %c0_9 = arith.constant 0 : index
    %15 = vector.load %arg5[%c0_8, %c0_9] : memref<1x384xf32, #tpu.memory_space<vmem>>, vector<1x384xf32>
    %16 = arith.mulf %2, %14 : vector<1x384xf32>
    %17 = arith.subf %15, %16 : vector<1x384xf32>
    %c0_10 = arith.constant 0 : index
    %c0_11 = arith.constant 0 : index
    %18 = vector.load %arg1[%c0_10, %c0_11] : memref<8x384xf32, #tpu.memory_space<vmem>>, vector<8x384xf32>
    %19 = vector.broadcast %14 : vector<1x384xf32> to vector<8x384xf32>
    %20 = arith.mulf %18, %19 : vector<8x384xf32>
    %21 = vector.broadcast %17 : vector<1x384xf32> to vector<8x384xf32>
    %22 = arith.addf %20, %21 : vector<8x384xf32>
    %c0_12 = arith.constant 0 : index
    %c0_13 = arith.constant 0 : index
    %23 = vector.load %arg6[%c0_12, %c0_13] : memref<8x384xf32, #tpu.memory_space<vmem>>, vector<8x384xf32>
    tpu.vector_store %arg6[%c0_12, %c0_13], %22 {strides = array<i32>} : memref<8x384xf32, #tpu.memory_space<vmem>>, vector<8x384xf32>,
    return
  }
  func.func @transform_0(%arg0: i32) -> (i32, i32) {
    %c0_i32 = arith.constant 0 : i32
    %c0_i32_0 = arith.constant 0 : i32
    return %arg0, %c0_i32 : i32, i32
  }
  func.func @transform_1(%arg0: i32) -> (i32, i32) {
    %c0_i32 = arith.constant 0 : i32
    %c0_i32_0 = arith.constant 0 : i32
    %c0_i32_1 = arith.constant 0 : i32
    return %c0_i32, %c0_i32_0 : i32, i32
  }
  func.func @transform_2(%arg0: i32) -> (i32, i32) {
    %c0_i32 = arith.constant 0 : i32
    %c0_i32_0 = arith.constant 0 : i32
    %c0_i32_1 = arith.constant 0 : i32
    return %c0_i32, %c0_i32_0 : i32, i32
  }
  func.func @transform_3(%arg0: i32) -> (i32, i32) {
    %c0_i32 = arith.constant 0 : i32
    %c0_i32_0 = arith.constant 0 : i32
    %c0_i32_1 = arith.constant 0 : i32
    return %c0_i32, %c0_i32_0 : i32, i32
  }
  func.func @transform_4(%arg0: i32) -> (i32, i32) {
    %c0_i32 = arith.constant 0 : i32
    %c0_i32_0 = arith.constant 0 : i32
    %c0_i32_1 = arith.constant 0 : i32
    return %c0_i32, %c0_i32_0 : i32, i32
  }
  func.func @transform_5(%arg0: i32) -> (i32, i32) {
    %c0_i32 = arith.constant 0 : i32
    %c0_i32_0 = arith.constant 0 : i32
    return %arg0, %c0_i32 : i32, i32
  }
}

module attributes {stable_mosaic.version = 11 : i64} {
  func.func @_matmul_stats_kernel(%arg0: i32, %arg1: i32, %arg2: memref<8x128xf32, #tpu.memory_space<vmem>>, %arg3: memref<128x256xbf16, #tpu.memory_space<vmem>>, %arg4: memref<1x256xf32, #tpu.memory_space<vmem>>, %arg5: memref<8x256xf32, #tpu.memory_space<vmem>>, %arg6: memref<1x256xf32, #tpu.memory_space<vmem>>, %arg7: memref<1x256xf32, #tpu.memory_space<vmem>>, %arg8: memref<8x256xf32, #tpu.memory_space<vmem>>) attributes {dimension_semantics = [#tpu.dimension_semantics<arbitrary>, #tpu.dimension_semantics<arbitrary>], iteration_bounds = array<i64: 3, 3>, scalar_prefetch = 0 : i64, scratch_operands = 1 : i64, tpu.core_type = #tpu.core_type<tc>, window_params = [{transform_indices = @transform_0, window_bounds = array<i64: 8, 128>}, {transform_indices = @transform_1, window_bounds = array<i64: 128, 256>}, {pipeline_mode = #tpu.pipeline_mode<synchronous>, transform_indices = @transform_2, window_bounds = array<i64: 1, 256>}, {transform_indices = @transform_3, window_bounds = array<i64: 8, 256>}, {pipeline_mode = #tpu.pipeline_mode<synchronous>, transform_indices = @transform_4, window_bounds = array<i64: 1, 256>}, {pipeline_mode = #tpu.pipeline_mode<synchronous>, transform_indices = @transform_5, window_bounds = array<i64: 1, 256>}]} {
    %c0_i32 = arith.constant 0 : i32
    %0 = arith.cmpi eq, %arg1, %c0_i32 : i32
    %1 = arith.extui %0 : i1 to i32
    %c0_i32_0 = arith.constant 0 : i32
    %2 = arith.cmpi ne, %1, %c0_i32_0 : i32
    scf.if %2 {
      %cst_9 = arith.constant 0.000000e+00 : f32
      %13 = vector.broadcast %cst_9 : f32 to vector<8x256xf32>
      %c0_10 = arith.constant 0 : index
      %c0_11 = arith.constant 0 : index
      %14 = vector.load %arg8[%c0_10, %c0_11] : memref<8x256xf32, #tpu.memory_space<vmem>>, vector<8x256xf32>
      tpu.vector_store %arg8[%c0_10, %c0_11], %13 {strides = array<i32>} : memref<8x256xf32, #tpu.memory_space<vmem>>, vector<8x256xf32>,
    } else {
    }
    %c0 = arith.constant 0 : index
    %c0_1 = arith.constant 0 : index
    %3 = vector.load %arg8[%c0, %c0_1] : memref<8x256xf32, #tpu.memory_space<vmem>>, vector<8x256xf32>
    %c0_2 = arith.constant 0 : index
    %c0_3 = arith.constant 0 : index
    %4 = vector.load %arg2[%c0_2, %c0_3] : memref<8x128xf32, #tpu.memory_space<vmem>>, vector<8x128xf32>
    %5 = arith.truncf %4 : vector<8x128xf32> to vector<8x128xbf16>
    %c0_4 = arith.constant 0 : index
    %c0_5 = arith.constant 0 : index
    %6 = vector.load %arg3[%c0_4, %c0_5] : memref<128x256xbf16, #tpu.memory_space<vmem>>, vector<128x256xbf16>
    %cst = arith.constant dense<0.000000e+00> : vector<8x256xf32>
    %7 = tpu.matmul %5, %6, %cst {dimension_numbers = #tpu.dot_dimension_numbers<[1], [0], [0], [1], [0, 0, 1, 1], [], []>} : vector<8x128xbf16>, vector<128x256xbf16>, vector<8x256xf32> -> vector<8x256xf32>
    %8 = arith.addf %3, %7 : vector<8x256xf32>
    %c0_6 = arith.constant 0 : index
    %c0_7 = arith.constant 0 : index
    %9 = vector.load %arg8[%c0_6, %c0_7] : memref<8x256xf32, #tpu.memory_space<vmem>>, vector<8x256xf32>
    tpu.vector_store %arg8[%c0_6, %c0_7], %8 {strides = array<i32>} : memref<8x256xf32, #tpu.memory_space<vmem>>, vector<8x256xf32>,
    %c2_i32 = arith.constant 2 : i32
    %10 = arith.cmpi eq, %arg1, %c2_i32 : i32
    %11 = arith.extui %10 : i1 to i32
    %c0_i32_8 = arith.constant 0 : i32
    %12 = arith.cmpi ne, %11, %c0_i32_8 : i32
    scf.if %12 {
      %c0_9 = arith.constant 0 : index
      %c0_10 = arith.constant 0 : index
      %13 = vector.load %arg8[%c0_9, %c0_10] : memref<8x256xf32, #tpu.memory_space<vmem>>, vector<8x256xf32>
      %c0_11 = arith.constant 0 : index
      %c0_12 = arith.constant 0 : index
      %14 = vector.load %arg4[%c0_11, %c0_12] : memref<1x256xf32, #tpu.memory_space<vmem>>, vector<1x256xf32>
      %15 = vector.broadcast %14 : vector<1x256xf32> to vector<8x256xf32>
      %16 = arith.addf %13, %15 : vector<8x256xf32>
      %c0_13 = arith.constant 0 : index
      %c0_14 = arith.constant 0 : index
      %17 = vector.load %arg5[%c0_13, %c0_14] : memref<8x256xf32, #tpu.memory_space<vmem>>, vector<8x256xf32>
      tpu.vector_store %arg5[%c0_13, %c0_14], %16 {strides = array<i32>} : memref<8x256xf32, #tpu.memory_space<vmem>>, vector<8x256xf32>,
      %c0_i32_15 = arith.constant 0 : i32
      %18 = arith.cmpi eq, %arg0, %c0_i32_15 : i32
      %19 = arith.extui %18 : i1 to i32
      %c0_i32_16 = arith.constant 0 : i32
      %20 = arith.cmpi ne, %19, %c0_i32_16 : i32
      scf.if %20 {
        %cst_27 = arith.constant 0.000000e+00 : f32
        %32 = vector.broadcast %cst_27 : f32 to vector<1x256xf32>
        %c0_28 = arith.constant 0 : index
        %c0_29 = arith.constant 0 : index
        %33 = vector.load %arg6[%c0_28, %c0_29] : memref<1x256xf32, #tpu.memory_space<vmem>>, vector<1x256xf32>
        tpu.vector_store %arg6[%c0_28, %c0_29], %32 {strides = array<i32>} : memref<1x256xf32, #tpu.memory_space<vmem>>, vector<1x256xf32>,
        %cst_30 = arith.constant 0.000000e+00 : f32
        %34 = vector.broadcast %cst_30 : f32 to vector<1x256xf32>
        %c0_31 = arith.constant 0 : index
        %c0_32 = arith.constant 0 : index
        %35 = vector.load %arg7[%c0_31, %c0_32] : memref<1x256xf32, #tpu.memory_space<vmem>>, vector<1x256xf32>
        tpu.vector_store %arg7[%c0_31, %c0_32], %34 {strides = array<i32>} : memref<1x256xf32, #tpu.memory_space<vmem>>, vector<1x256xf32>,
      } else {
      }
      %c0_17 = arith.constant 0 : index
      %c0_18 = arith.constant 0 : index
      %21 = vector.load %arg6[%c0_17, %c0_18] : memref<1x256xf32, #tpu.memory_space<vmem>>, vector<1x256xf32>
      %cst_19 = arith.constant dense<0.000000e+00> : vector<256xf32>
      %22 = vector.multi_reduction <add>, %16, %cst_19 [0] : vector<8x256xf32> to vector<256xf32>
      %23 = vector.shape_cast %22 : vector<256xf32> to vector<1x256xf32>
      %24 = arith.addf %21, %23 : vector<1x256xf32>
      %c0_20 = arith.constant 0 : index
      %c0_21 = arith.constant 0 : index
      %25 = vector.load %arg6[%c0_20, %c0_21] : memref<1x256xf32, #tpu.memory_space<vmem>>, vector<1x256xf32>
      tpu.vector_store %arg6[%c0_20, %c0_21], %24 {strides = array<i32>} : memref<1x256xf32, #tpu.memory_space<vmem>>, vector<1x256xf32>,
      %c0_22 = arith.constant 0 : index
      %c0_23 = arith.constant 0 : index
      %26 = vector.load %arg7[%c0_22, %c0_23] : memref<1x256xf32, #tpu.memory_space<vmem>>, vector<1x256xf32>
      %27 = arith.mulf %16, %16 : vector<8x256xf32>
      %cst_24 = arith.constant dense<0.000000e+00> : vector<256xf32>
      %28 = vector.multi_reduction <add>, %27, %cst_24 [0] : vector<8x256xf32> to vector<256xf32>
      %29 = vector.shape_cast %28 : vector<256xf32> to vector<1x256xf32>
      %30 = arith.addf %26, %29 : vector<1x256xf32>
      %c0_25 = arith.constant 0 : index
      %c0_26 = arith.constant 0 : index
      %31 = vector.load %arg7[%c0_25, %c0_26] : memref<1x256xf32, #tpu.memory_space<vmem>>, vector<1x256xf32>
      tpu.vector_store %arg7[%c0_25, %c0_26], %30 {strides = array<i32>} : memref<1x256xf32, #tpu.memory_space<vmem>>, vector<1x256xf32>,
    } else {
    }
    return
  }
  func.func @transform_0(%arg0: i32, %arg1: i32) -> (i32, i32) {
    %c0_i32 = arith.constant 0 : i32
    return %arg0, %arg1 : i32, i32
  }
  func.func @transform_1(%arg0: i32, %arg1: i32) -> (i32, i32) {
    %c0_i32 = arith.constant 0 : i32
    %c0_i32_0 = arith.constant 0 : i32
    return %arg1, %c0_i32 : i32, i32
  }
  func.func @transform_2(%arg0: i32, %arg1: i32) -> (i32, i32) {
    %c0_i32 = arith.constant 0 : i32
    %c0_i32_0 = arith.constant 0 : i32
    %c0_i32_1 = arith.constant 0 : i32
    return %c0_i32, %c0_i32_0 : i32, i32
  }
  func.func @transform_3(%arg0: i32, %arg1: i32) -> (i32, i32) {
    %c0_i32 = arith.constant 0 : i32
    %c0_i32_0 = arith.constant 0 : i32
    return %arg0, %c0_i32 : i32, i32
  }
  func.func @transform_4(%arg0: i32, %arg1: i32) -> (i32, i32) {
    %c0_i32 = arith.constant 0 : i32
    %c0_i32_0 = arith.constant 0 : i32
    %c0_i32_1 = arith.constant 0 : i32
    return %c0_i32, %c0_i32_0 : i32, i32
  }
  func.func @transform_5(%arg0: i32, %arg1: i32) -> (i32, i32) {
    %c0_i32 = arith.constant 0 : i32
    %c0_i32_0 = arith.constant 0 : i32
    %c0_i32_1 = arith.constant 0 : i32
    return %c0_i32, %c0_i32_0 : i32, i32
  }
}

module attributes {stable_mosaic.version = 11 : i64} {
  func.func @_matmul_stats_kernel(%arg0: i32, %arg1: i32, %arg2: memref<8x256xf32, #tpu.memory_space<vmem>>, %arg3: memref<256x384xbf16, #tpu.memory_space<vmem>>, %arg4: memref<1x384xf32, #tpu.memory_space<vmem>>, %arg5: memref<8x384xf32, #tpu.memory_space<vmem>>, %arg6: memref<1x384xf32, #tpu.memory_space<vmem>>, %arg7: memref<1x384xf32, #tpu.memory_space<vmem>>, %arg8: memref<8x384xf32, #tpu.memory_space<vmem>>) attributes {dimension_semantics = [#tpu.dimension_semantics<arbitrary>, #tpu.dimension_semantics<arbitrary>], iteration_bounds = array<i64: 3, 1>, scalar_prefetch = 0 : i64, scratch_operands = 1 : i64, tpu.core_type = #tpu.core_type<tc>, window_params = [{transform_indices = @transform_0, window_bounds = array<i64: 8, 256>}, {transform_indices = @transform_1, window_bounds = array<i64: 256, 384>}, {pipeline_mode = #tpu.pipeline_mode<synchronous>, transform_indices = @transform_2, window_bounds = array<i64: 1, 384>}, {transform_indices = @transform_3, window_bounds = array<i64: 8, 384>}, {pipeline_mode = #tpu.pipeline_mode<synchronous>, transform_indices = @transform_4, window_bounds = array<i64: 1, 384>}, {pipeline_mode = #tpu.pipeline_mode<synchronous>, transform_indices = @transform_5, window_bounds = array<i64: 1, 384>}]} {
    %c0_i32 = arith.constant 0 : i32
    %0 = arith.cmpi eq, %arg1, %c0_i32 : i32
    %1 = arith.extui %0 : i1 to i32
    %c0_i32_0 = arith.constant 0 : i32
    %2 = arith.cmpi ne, %1, %c0_i32_0 : i32
    scf.if %2 {
      %cst_10 = arith.constant 0.000000e+00 : f32
      %13 = vector.broadcast %cst_10 : f32 to vector<8x384xf32>
      %c0_11 = arith.constant 0 : index
      %c0_12 = arith.constant 0 : index
      %14 = vector.load %arg8[%c0_11, %c0_12] : memref<8x384xf32, #tpu.memory_space<vmem>>, vector<8x384xf32>
      tpu.vector_store %arg8[%c0_11, %c0_12], %13 {strides = array<i32>} : memref<8x384xf32, #tpu.memory_space<vmem>>, vector<8x384xf32>,
    } else {
    }
    %c0 = arith.constant 0 : index
    %c0_1 = arith.constant 0 : index
    %3 = vector.load %arg8[%c0, %c0_1] : memref<8x384xf32, #tpu.memory_space<vmem>>, vector<8x384xf32>
    %c0_2 = arith.constant 0 : index
    %c0_3 = arith.constant 0 : index
    %4 = vector.load %arg2[%c0_2, %c0_3] : memref<8x256xf32, #tpu.memory_space<vmem>>, vector<8x256xf32>
    %5 = arith.truncf %4 : vector<8x256xf32> to vector<8x256xbf16>
    %c0_4 = arith.constant 0 : index
    %c0_5 = arith.constant 0 : index
    %6 = vector.load %arg3[%c0_4, %c0_5] : memref<256x384xbf16, #tpu.memory_space<vmem>>, vector<256x384xbf16>
    %cst = arith.constant dense<0.000000e+00> : vector<8x384xf32>
    %7 = tpu.matmul %5, %6, %cst {dimension_numbers = #tpu.dot_dimension_numbers<[1], [0], [0], [1], [0, 0, 1, 1], [], []>} : vector<8x256xbf16>, vector<256x384xbf16>, vector<8x384xf32> -> vector<8x384xf32>
    %8 = arith.addf %3, %7 : vector<8x384xf32>
    %c0_6 = arith.constant 0 : index
    %c0_7 = arith.constant 0 : index
    %9 = vector.load %arg8[%c0_6, %c0_7] : memref<8x384xf32, #tpu.memory_space<vmem>>, vector<8x384xf32>
    tpu.vector_store %arg8[%c0_6, %c0_7], %8 {strides = array<i32>} : memref<8x384xf32, #tpu.memory_space<vmem>>, vector<8x384xf32>,
    %c0_i32_8 = arith.constant 0 : i32
    %10 = arith.cmpi eq, %arg1, %c0_i32_8 : i32
    %11 = arith.extui %10 : i1 to i32
    %c0_i32_9 = arith.constant 0 : i32
    %12 = arith.cmpi ne, %11, %c0_i32_9 : i32
    scf.if %12 {
      %c0_10 = arith.constant 0 : index
      %c0_11 = arith.constant 0 : index
      %13 = vector.load %arg8[%c0_10, %c0_11] : memref<8x384xf32, #tpu.memory_space<vmem>>, vector<8x384xf32>
      %c0_12 = arith.constant 0 : index
      %c0_13 = arith.constant 0 : index
      %14 = vector.load %arg4[%c0_12, %c0_13] : memref<1x384xf32, #tpu.memory_space<vmem>>, vector<1x384xf32>
      %15 = vector.broadcast %14 : vector<1x384xf32> to vector<8x384xf32>
      %16 = arith.addf %13, %15 : vector<8x384xf32>
      %c0_14 = arith.constant 0 : index
      %c0_15 = arith.constant 0 : index
      %17 = vector.load %arg5[%c0_14, %c0_15] : memref<8x384xf32, #tpu.memory_space<vmem>>, vector<8x384xf32>
      tpu.vector_store %arg5[%c0_14, %c0_15], %16 {strides = array<i32>} : memref<8x384xf32, #tpu.memory_space<vmem>>, vector<8x384xf32>,
      %c0_i32_16 = arith.constant 0 : i32
      %18 = arith.cmpi eq, %arg0, %c0_i32_16 : i32
      %19 = arith.extui %18 : i1 to i32
      %c0_i32_17 = arith.constant 0 : i32
      %20 = arith.cmpi ne, %19, %c0_i32_17 : i32
      scf.if %20 {
        %cst_28 = arith.constant 0.000000e+00 : f32
        %32 = vector.broadcast %cst_28 : f32 to vector<1x384xf32>
        %c0_29 = arith.constant 0 : index
        %c0_30 = arith.constant 0 : index
        %33 = vector.load %arg6[%c0_29, %c0_30] : memref<1x384xf32, #tpu.memory_space<vmem>>, vector<1x384xf32>
        tpu.vector_store %arg6[%c0_29, %c0_30], %32 {strides = array<i32>} : memref<1x384xf32, #tpu.memory_space<vmem>>, vector<1x384xf32>,
        %cst_31 = arith.constant 0.000000e+00 : f32
        %34 = vector.broadcast %cst_31 : f32 to vector<1x384xf32>
        %c0_32 = arith.constant 0 : index
        %c0_33 = arith.constant 0 : index
        %35 = vector.load %arg7[%c0_32, %c0_33] : memref<1x384xf32, #tpu.memory_space<vmem>>, vector<1x384xf32>
        tpu.vector_store %arg7[%c0_32, %c0_33], %34 {strides = array<i32>} : memref<1x384xf32, #tpu.memory_space<vmem>>, vector<1x384xf32>,
      } else {
      }
      %c0_18 = arith.constant 0 : index
      %c0_19 = arith.constant 0 : index
      %21 = vector.load %arg6[%c0_18, %c0_19] : memref<1x384xf32, #tpu.memory_space<vmem>>, vector<1x384xf32>
      %cst_20 = arith.constant dense<0.000000e+00> : vector<384xf32>
      %22 = vector.multi_reduction <add>, %16, %cst_20 [0] : vector<8x384xf32> to vector<384xf32>
      %23 = vector.shape_cast %22 : vector<384xf32> to vector<1x384xf32>
      %24 = arith.addf %21, %23 : vector<1x384xf32>
      %c0_21 = arith.constant 0 : index
      %c0_22 = arith.constant 0 : index
      %25 = vector.load %arg6[%c0_21, %c0_22] : memref<1x384xf32, #tpu.memory_space<vmem>>, vector<1x384xf32>
      tpu.vector_store %arg6[%c0_21, %c0_22], %24 {strides = array<i32>} : memref<1x384xf32, #tpu.memory_space<vmem>>, vector<1x384xf32>,
      %c0_23 = arith.constant 0 : index
      %c0_24 = arith.constant 0 : index
      %26 = vector.load %arg7[%c0_23, %c0_24] : memref<1x384xf32, #tpu.memory_space<vmem>>, vector<1x384xf32>
      %27 = arith.mulf %16, %16 : vector<8x384xf32>
      %cst_25 = arith.constant dense<0.000000e+00> : vector<384xf32>
      %28 = vector.multi_reduction <add>, %27, %cst_25 [0] : vector<8x384xf32> to vector<384xf32>
      %29 = vector.shape_cast %28 : vector<384xf32> to vector<1x384xf32>
      %30 = arith.addf %26, %29 : vector<1x384xf32>
      %c0_26 = arith.constant 0 : index
      %c0_27 = arith.constant 0 : index
      %31 = vector.load %arg7[%c0_26, %c0_27] : memref<1x384xf32, #tpu.memory_space<vmem>>, vector<1x384xf32>
      tpu.vector_store %arg7[%c0_26, %c0_27], %30 {strides = array<i32>} : memref<1x384xf32, #tpu.memory_space<vmem>>, vector<1x384xf32>,
    } else {
    }
    return
  }
  func.func @transform_0(%arg0: i32, %arg1: i32) -> (i32, i32) {
    %c0_i32 = arith.constant 0 : i32
    return %arg0, %arg1 : i32, i32
  }
  func.func @transform_1(%arg0: i32, %arg1: i32) -> (i32, i32) {
    %c0_i32 = arith.constant 0 : i32
    %c0_i32_0 = arith.constant 0 : i32
    return %arg1, %c0_i32 : i32, i32
  }
  func.func @transform_2(%arg0: i32, %arg1: i32) -> (i32, i32) {
    %c0_i32 = arith.constant 0 : i32
    %c0_i32_0 = arith.constant 0 : i32
    %c0_i32_1 = arith.constant 0 : i32
    return %c0_i32, %c0_i32_0 : i32, i32
  }
  func.func @transform_3(%arg0: i32, %arg1: i32) -> (i32, i32) {
    %c0_i32 = arith.constant 0 : i32
    %c0_i32_0 = arith.constant 0 : i32
    return %arg0, %c0_i32 : i32, i32
  }
  func.func @transform_4(%arg0: i32, %arg1: i32) -> (i32, i32) {
    %c0_i32 = arith.constant 0 : i32
    %c0_i32_0 = arith.constant 0 : i32
    %c0_i32_1 = arith.constant 0 : i32
    return %c0_i32, %c0_i32_0 : i32, i32
  }
  func.func @transform_5(%arg0: i32, %arg1: i32) -> (i32, i32) {
    %c0_i32 = arith.constant 0 : i32
    %c0_i32_0 = arith.constant 0 : i32
    %c0_i32_1 = arith.constant 0 : i32
    return %c0_i32, %c0_i32_0 : i32, i32
  }
}

module attributes {stable_mosaic.version = 11 : i64} {
  func.func @_matmul_stats_kernel(%arg0: i32, %arg1: i32, %arg2: memref<8x128xf32, #tpu.memory_space<vmem>>, %arg3: memref<128x256xbf16, #tpu.memory_space<vmem>>, %arg4: memref<1x256xf32, #tpu.memory_space<vmem>>, %arg5: memref<8x256xf32, #tpu.memory_space<vmem>>, %arg6: memref<1x256xf32, #tpu.memory_space<vmem>>, %arg7: memref<1x256xf32, #tpu.memory_space<vmem>>, %arg8: memref<8x256xf32, #tpu.memory_space<vmem>>) attributes {dimension_semantics = [#tpu.dimension_semantics<arbitrary>, #tpu.dimension_semantics<arbitrary>], iteration_bounds = array<i64: 1, 3>, scalar_prefetch = 0 : i64, scratch_operands = 1 : i64, tpu.core_type = #tpu.core_type<tc>, window_params = [{transform_indices = @transform_0, window_bounds = array<i64: 8, 128>}, {transform_indices = @transform_1, window_bounds = array<i64: 128, 256>}, {pipeline_mode = #tpu.pipeline_mode<synchronous>, transform_indices = @transform_2, window_bounds = array<i64: 1, 256>}, {transform_indices = @transform_3, window_bounds = array<i64: 8, 256>}, {pipeline_mode = #tpu.pipeline_mode<synchronous>, transform_indices = @transform_4, window_bounds = array<i64: 1, 256>}, {pipeline_mode = #tpu.pipeline_mode<synchronous>, transform_indices = @transform_5, window_bounds = array<i64: 1, 256>}]} {
    %c0_i32 = arith.constant 0 : i32
    %0 = arith.cmpi eq, %arg1, %c0_i32 : i32
    %1 = arith.extui %0 : i1 to i32
    %c0_i32_0 = arith.constant 0 : i32
    %2 = arith.cmpi ne, %1, %c0_i32_0 : i32
    scf.if %2 {
      %cst_9 = arith.constant 0.000000e+00 : f32
      %13 = vector.broadcast %cst_9 : f32 to vector<8x256xf32>
      %c0_10 = arith.constant 0 : index
      %c0_11 = arith.constant 0 : index
      %14 = vector.load %arg8[%c0_10, %c0_11] : memref<8x256xf32, #tpu.memory_space<vmem>>, vector<8x256xf32>
      tpu.vector_store %arg8[%c0_10, %c0_11], %13 {strides = array<i32>} : memref<8x256xf32, #tpu.memory_space<vmem>>, vector<8x256xf32>,
    } else {
    }
    %c0 = arith.constant 0 : index
    %c0_1 = arith.constant 0 : index
    %3 = vector.load %arg8[%c0, %c0_1] : memref<8x256xf32, #tpu.memory_space<vmem>>, vector<8x256xf32>
    %c0_2 = arith.constant 0 : index
    %c0_3 = arith.constant 0 : index
    %4 = vector.load %arg2[%c0_2, %c0_3] : memref<8x128xf32, #tpu.memory_space<vmem>>, vector<8x128xf32>
    %5 = arith.truncf %4 : vector<8x128xf32> to vector<8x128xbf16>
    %c0_4 = arith.constant 0 : index
    %c0_5 = arith.constant 0 : index
    %6 = vector.load %arg3[%c0_4, %c0_5] : memref<128x256xbf16, #tpu.memory_space<vmem>>, vector<128x256xbf16>
    %cst = arith.constant dense<0.000000e+00> : vector<8x256xf32>
    %7 = tpu.matmul %5, %6, %cst {dimension_numbers = #tpu.dot_dimension_numbers<[1], [0], [0], [1], [0, 0, 1, 1], [], []>} : vector<8x128xbf16>, vector<128x256xbf16>, vector<8x256xf32> -> vector<8x256xf32>
    %8 = arith.addf %3, %7 : vector<8x256xf32>
    %c0_6 = arith.constant 0 : index
    %c0_7 = arith.constant 0 : index
    %9 = vector.load %arg8[%c0_6, %c0_7] : memref<8x256xf32, #tpu.memory_space<vmem>>, vector<8x256xf32>
    tpu.vector_store %arg8[%c0_6, %c0_7], %8 {strides = array<i32>} : memref<8x256xf32, #tpu.memory_space<vmem>>, vector<8x256xf32>,
    %c2_i32 = arith.constant 2 : i32
    %10 = arith.cmpi eq, %arg1, %c2_i32 : i32
    %11 = arith.extui %10 : i1 to i32
    %c0_i32_8 = arith.constant 0 : i32
    %12 = arith.cmpi ne, %11, %c0_i32_8 : i32
    scf.if %12 {
      %c0_9 = arith.constant 0 : index
      %c0_10 = arith.constant 0 : index
      %13 = vector.load %arg8[%c0_9, %c0_10] : memref<8x256xf32, #tpu.memory_space<vmem>>, vector<8x256xf32>
      %c0_11 = arith.constant 0 : index
      %c0_12 = arith.constant 0 : index
      %14 = vector.load %arg4[%c0_11, %c0_12] : memref<1x256xf32, #tpu.memory_space<vmem>>, vector<1x256xf32>
      %15 = vector.broadcast %14 : vector<1x256xf32> to vector<8x256xf32>
      %16 = arith.addf %13, %15 : vector<8x256xf32>
      %c0_13 = arith.constant 0 : index
      %c0_14 = arith.constant 0 : index
      %17 = vector.load %arg5[%c0_13, %c0_14] : memref<8x256xf32, #tpu.memory_space<vmem>>, vector<8x256xf32>
      tpu.vector_store %arg5[%c0_13, %c0_14], %16 {strides = array<i32>} : memref<8x256xf32, #tpu.memory_space<vmem>>, vector<8x256xf32>,
      %c0_i32_15 = arith.constant 0 : i32
      %18 = arith.cmpi eq, %arg0, %c0_i32_15 : i32
      %19 = arith.extui %18 : i1 to i32
      %c0_i32_16 = arith.constant 0 : i32
      %20 = arith.cmpi ne, %19, %c0_i32_16 : i32
      scf.if %20 {
        %cst_27 = arith.constant 0.000000e+00 : f32
        %32 = vector.broadcast %cst_27 : f32 to vector<1x256xf32>
        %c0_28 = arith.constant 0 : index
        %c0_29 = arith.constant 0 : index
        %33 = vector.load %arg6[%c0_28, %c0_29] : memref<1x256xf32, #tpu.memory_space<vmem>>, vector<1x256xf32>
        tpu.vector_store %arg6[%c0_28, %c0_29], %32 {strides = array<i32>} : memref<1x256xf32, #tpu.memory_space<vmem>>, vector<1x256xf32>,
        %cst_30 = arith.constant 0.000000e+00 : f32
        %34 = vector.broadcast %cst_30 : f32 to vector<1x256xf32>
        %c0_31 = arith.constant 0 : index
        %c0_32 = arith.constant 0 : index
        %35 = vector.load %arg7[%c0_31, %c0_32] : memref<1x256xf32, #tpu.memory_space<vmem>>, vector<1x256xf32>
        tpu.vector_store %arg7[%c0_31, %c0_32], %34 {strides = array<i32>} : memref<1x256xf32, #tpu.memory_space<vmem>>, vector<1x256xf32>,
      } else {
      }
      %c0_17 = arith.constant 0 : index
      %c0_18 = arith.constant 0 : index
      %21 = vector.load %arg6[%c0_17, %c0_18] : memref<1x256xf32, #tpu.memory_space<vmem>>, vector<1x256xf32>
      %cst_19 = arith.constant dense<0.000000e+00> : vector<256xf32>
      %22 = vector.multi_reduction <add>, %16, %cst_19 [0] : vector<8x256xf32> to vector<256xf32>
      %23 = vector.shape_cast %22 : vector<256xf32> to vector<1x256xf32>
      %24 = arith.addf %21, %23 : vector<1x256xf32>
      %c0_20 = arith.constant 0 : index
      %c0_21 = arith.constant 0 : index
      %25 = vector.load %arg6[%c0_20, %c0_21] : memref<1x256xf32, #tpu.memory_space<vmem>>, vector<1x256xf32>
      tpu.vector_store %arg6[%c0_20, %c0_21], %24 {strides = array<i32>} : memref<1x256xf32, #tpu.memory_space<vmem>>, vector<1x256xf32>,
      %c0_22 = arith.constant 0 : index
      %c0_23 = arith.constant 0 : index
      %26 = vector.load %arg7[%c0_22, %c0_23] : memref<1x256xf32, #tpu.memory_space<vmem>>, vector<1x256xf32>
      %27 = arith.mulf %16, %16 : vector<8x256xf32>
      %cst_24 = arith.constant dense<0.000000e+00> : vector<256xf32>
      %28 = vector.multi_reduction <add>, %27, %cst_24 [0] : vector<8x256xf32> to vector<256xf32>
      %29 = vector.shape_cast %28 : vector<256xf32> to vector<1x256xf32>
      %30 = arith.addf %26, %29 : vector<1x256xf32>
      %c0_25 = arith.constant 0 : index
      %c0_26 = arith.constant 0 : index
      %31 = vector.load %arg7[%c0_25, %c0_26] : memref<1x256xf32, #tpu.memory_space<vmem>>, vector<1x256xf32>
      tpu.vector_store %arg7[%c0_25, %c0_26], %30 {strides = array<i32>} : memref<1x256xf32, #tpu.memory_space<vmem>>, vector<1x256xf32>,
    } else {
    }
    return
  }
  func.func @transform_0(%arg0: i32, %arg1: i32) -> (i32, i32) {
    %c0_i32 = arith.constant 0 : i32
    return %arg0, %arg1 : i32, i32
  }
  func.func @transform_1(%arg0: i32, %arg1: i32) -> (i32, i32) {
    %c0_i32 = arith.constant 0 : i32
    %c0_i32_0 = arith.constant 0 : i32
    return %arg1, %c0_i32 : i32, i32
  }
  func.func @transform_2(%arg0: i32, %arg1: i32) -> (i32, i32) {
    %c0_i32 = arith.constant 0 : i32
    %c0_i32_0 = arith.constant 0 : i32
    %c0_i32_1 = arith.constant 0 : i32
    return %c0_i32, %c0_i32_0 : i32, i32
  }
  func.func @transform_3(%arg0: i32, %arg1: i32) -> (i32, i32) {
    %c0_i32 = arith.constant 0 : i32
    %c0_i32_0 = arith.constant 0 : i32
    return %arg0, %c0_i32 : i32, i32
  }
  func.func @transform_4(%arg0: i32, %arg1: i32) -> (i32, i32) {
    %c0_i32 = arith.constant 0 : i32
    %c0_i32_0 = arith.constant 0 : i32
    %c0_i32_1 = arith.constant 0 : i32
    return %c0_i32, %c0_i32_0 : i32, i32
  }
  func.func @transform_5(%arg0: i32, %arg1: i32) -> (i32, i32) {
    %c0_i32 = arith.constant 0 : i32
    %c0_i32_0 = arith.constant 0 : i32
    %c0_i32_1 = arith.constant 0 : i32
    return %c0_i32, %c0_i32_0 : i32, i32
  }
}

module attributes {stable_mosaic.version = 11 : i64} {
  func.func @_bn_apply_kernel(%arg0: i32, %arg1: memref<8x256xf32, #tpu.memory_space<vmem>>, %arg2: memref<1x256xf32, #tpu.memory_space<vmem>>, %arg3: memref<1x256xf32, #tpu.memory_space<vmem>>, %arg4: memref<1x256xf32, #tpu.memory_space<vmem>>, %arg5: memref<1x256xf32, #tpu.memory_space<vmem>>, %arg6: memref<8x256xf32, #tpu.memory_space<vmem>>, %arg7: memref<8x256xf32, #tpu.memory_space<vmem>>) attributes {dimension_semantics = [#tpu.dimension_semantics<parallel>], iteration_bounds = array<i64: 1>, scalar_prefetch = 0 : i64, scratch_operands = 0 : i64, tpu.core_type = #tpu.core_type<tc>, window_params = [{transform_indices = @transform_0, window_bounds = array<i64: 8, 256>}, {pipeline_mode = #tpu.pipeline_mode<synchronous>, transform_indices = @transform_1, window_bounds = array<i64: 1, 256>}, {pipeline_mode = #tpu.pipeline_mode<synchronous>, transform_indices = @transform_2, window_bounds = array<i64: 1, 256>}, {pipeline_mode = #tpu.pipeline_mode<synchronous>, transform_indices = @transform_3, window_bounds = array<i64: 1, 256>}, {pipeline_mode = #tpu.pipeline_mode<synchronous>, transform_indices = @transform_4, window_bounds = array<i64: 1, 256>}, {transform_indices = @transform_5, window_bounds = array<i64: 8, 256>}, {transform_indices = @transform_6, window_bounds = array<i64: 8, 256>}]} {
    %c0 = arith.constant 0 : index
    %c0_0 = arith.constant 0 : index
    %0 = vector.load %arg2[%c0, %c0_0] : memref<1x256xf32, #tpu.memory_space<vmem>>, vector<1x256xf32>
    %cst = arith.constant 1.250000e-01 : f32
    %1 = vector.broadcast %cst : f32 to vector<1x256xf32>
    %2 = arith.mulf %0, %1 : vector<1x256xf32>
    %c0_1 = arith.constant 0 : index
    %c0_2 = arith.constant 0 : index
    %3 = vector.load %arg3[%c0_1, %c0_2] : memref<1x256xf32, #tpu.memory_space<vmem>>, vector<1x256xf32>
    %cst_3 = arith.constant 1.250000e-01 : f32
    %4 = vector.broadcast %cst_3 : f32 to vector<1x256xf32>
    %5 = arith.mulf %3, %4 : vector<1x256xf32>
    %6 = arith.mulf %2, %2 : vector<1x256xf32>
    %7 = arith.subf %5, %6 : vector<1x256xf32>
    %cst_4 = arith.constant 0.000000e+00 : f32
    %8 = vector.broadcast %cst_4 : f32 to vector<1x256xf32>
    %9 = arith.maximumf %7, %8 : vector<1x256xf32>
    %cst_5 = arith.constant 9.99999974E-6 : f32
    %10 = vector.broadcast %cst_5 : f32 to vector<1x256xf32>
    %11 = arith.addf %9, %10 : vector<1x256xf32>
    %12 = math.rsqrt %11 : vector<1x256xf32>
    %c0_6 = arith.constant 0 : index
    %c0_7 = arith.constant 0 : index
    %13 = vector.load %arg4[%c0_6, %c0_7] : memref<1x256xf32, #tpu.memory_space<vmem>>, vector<1x256xf32>
    %14 = arith.mulf %13, %12 : vector<1x256xf32>
    %c0_8 = arith.constant 0 : index
    %c0_9 = arith.constant 0 : index
    %15 = vector.load %arg5[%c0_8, %c0_9] : memref<1x256xf32, #tpu.memory_space<vmem>>, vector<1x256xf32>
    %16 = arith.mulf %2, %14 : vector<1x256xf32>
    %17 = arith.subf %15, %16 : vector<1x256xf32>
    %c0_10 = arith.constant 0 : index
    %c0_11 = arith.constant 0 : index
    %18 = vector.load %arg1[%c0_10, %c0_11] : memref<8x256xf32, #tpu.memory_space<vmem>>, vector<8x256xf32>
    %19 = vector.broadcast %14 : vector<1x256xf32> to vector<8x256xf32>
    %20 = arith.mulf %18, %19 : vector<8x256xf32>
    %21 = vector.broadcast %17 : vector<1x256xf32> to vector<8x256xf32>
    %22 = arith.addf %20, %21 : vector<8x256xf32>
    %c0_12 = arith.constant 0 : index
    %c0_13 = arith.constant 0 : index
    %23 = vector.load %arg6[%c0_12, %c0_13] : memref<8x256xf32, #tpu.memory_space<vmem>>, vector<8x256xf32>
    tpu.vector_store %arg6[%c0_12, %c0_13], %22 {strides = array<i32>} : memref<8x256xf32, #tpu.memory_space<vmem>>, vector<8x256xf32>,
    %24 = arith.mulf %22, %22 : vector<8x256xf32>
    %cst_14 = arith.constant dense<0.000000e+00> : vector<8xf32>
    %25 = vector.multi_reduction <add>, %24, %cst_14 [1] : vector<8x256xf32> to vector<8xf32>
    %26 = vector.shape_cast %25 : vector<8xf32> to vector<8x1xf32>
    %cst_15 = arith.constant 1.000000e-24 : f32
    %27 = vector.broadcast %cst_15 : f32 to vector<8x1xf32>
    %28 = arith.maximumf %26, %27 : vector<8x1xf32>
    %29 = math.rsqrt %28 : vector<8x1xf32>
    %30 = vector.broadcast %29 : vector<8x1xf32> to vector<8x256xf32>
    %31 = arith.mulf %22, %30 : vector<8x256xf32>
    %c0_16 = arith.constant 0 : index
    %c0_17 = arith.constant 0 : index
    %32 = vector.load %arg7[%c0_16, %c0_17] : memref<8x256xf32, #tpu.memory_space<vmem>>, vector<8x256xf32>
    tpu.vector_store %arg7[%c0_16, %c0_17], %31 {strides = array<i32>} : memref<8x256xf32, #tpu.memory_space<vmem>>, vector<8x256xf32>,
    return
  }
  func.func @transform_0(%arg0: i32) -> (i32, i32) {
    %c0_i32 = arith.constant 0 : i32
    %c0_i32_0 = arith.constant 0 : i32
    return %arg0, %c0_i32 : i32, i32
  }
  func.func @transform_1(%arg0: i32) -> (i32, i32) {
    %c0_i32 = arith.constant 0 : i32
    %c0_i32_0 = arith.constant 0 : i32
    %c0_i32_1 = arith.constant 0 : i32
    return %c0_i32, %c0_i32_0 : i32, i32
  }
  func.func @transform_2(%arg0: i32) -> (i32, i32) {
    %c0_i32 = arith.constant 0 : i32
    %c0_i32_0 = arith.constant 0 : i32
    %c0_i32_1 = arith.constant 0 : i32
    return %c0_i32, %c0_i32_0 : i32, i32
  }
  func.func @transform_3(%arg0: i32) -> (i32, i32) {
    %c0_i32 = arith.constant 0 : i32
    %c0_i32_0 = arith.constant 0 : i32
    %c0_i32_1 = arith.constant 0 : i32
    return %c0_i32, %c0_i32_0 : i32, i32
  }
  func.func @transform_4(%arg0: i32) -> (i32, i32) {
    %c0_i32 = arith.constant 0 : i32
    %c0_i32_0 = arith.constant 0 : i32
    %c0_i32_1 = arith.constant 0 : i32
    return %c0_i32, %c0_i32_0 : i32, i32
  }
  func.func @transform_5(%arg0: i32) -> (i32, i32) {
    %c0_i32 = arith.constant 0 : i32
    %c0_i32_0 = arith.constant 0 : i32
    return %arg0, %c0_i32 : i32, i32
  }
  func.func @transform_6(%arg0: i32) -> (i32, i32) {
    %c0_i32 = arith.constant 0 : i32
    %c0_i32_0 = arith.constant 0 : i32
    return %arg0, %c0_i32 : i32, i32
  }
}

module attributes {stable_mosaic.version = 11 : i64} {
  func.func @_matmul_stats_kernel(%arg0: i32, %arg1: i32, %arg2: memref<8x256xf32, #tpu.memory_space<vmem>>, %arg3: memref<256x384xbf16, #tpu.memory_space<vmem>>, %arg4: memref<1x384xf32, #tpu.memory_space<vmem>>, %arg5: memref<8x384xf32, #tpu.memory_space<vmem>>, %arg6: memref<1x384xf32, #tpu.memory_space<vmem>>, %arg7: memref<1x384xf32, #tpu.memory_space<vmem>>, %arg8: memref<8x384xf32, #tpu.memory_space<vmem>>) attributes {dimension_semantics = [#tpu.dimension_semantics<arbitrary>, #tpu.dimension_semantics<arbitrary>], iteration_bounds = array<i64: 1, 1>, scalar_prefetch = 0 : i64, scratch_operands = 1 : i64, tpu.core_type = #tpu.core_type<tc>, window_params = [{transform_indices = @transform_0, window_bounds = array<i64: 8, 256>}, {transform_indices = @transform_1, window_bounds = array<i64: 256, 384>}, {pipeline_mode = #tpu.pipeline_mode<synchronous>, transform_indices = @transform_2, window_bounds = array<i64: 1, 384>}, {transform_indices = @transform_3, window_bounds = array<i64: 8, 384>}, {pipeline_mode = #tpu.pipeline_mode<synchronous>, transform_indices = @transform_4, window_bounds = array<i64: 1, 384>}, {pipeline_mode = #tpu.pipeline_mode<synchronous>, transform_indices = @transform_5, window_bounds = array<i64: 1, 384>}]} {
    %c0_i32 = arith.constant 0 : i32
    %0 = arith.cmpi eq, %arg1, %c0_i32 : i32
    %1 = arith.extui %0 : i1 to i32
    %c0_i32_0 = arith.constant 0 : i32
    %2 = arith.cmpi ne, %1, %c0_i32_0 : i32
    scf.if %2 {
      %cst_10 = arith.constant 0.000000e+00 : f32
      %13 = vector.broadcast %cst_10 : f32 to vector<8x384xf32>
      %c0_11 = arith.constant 0 : index
      %c0_12 = arith.constant 0 : index
      %14 = vector.load %arg8[%c0_11, %c0_12] : memref<8x384xf32, #tpu.memory_space<vmem>>, vector<8x384xf32>
      tpu.vector_store %arg8[%c0_11, %c0_12], %13 {strides = array<i32>} : memref<8x384xf32, #tpu.memory_space<vmem>>, vector<8x384xf32>,
    } else {
    }
    %c0 = arith.constant 0 : index
    %c0_1 = arith.constant 0 : index
    %3 = vector.load %arg8[%c0, %c0_1] : memref<8x384xf32, #tpu.memory_space<vmem>>, vector<8x384xf32>
    %c0_2 = arith.constant 0 : index
    %c0_3 = arith.constant 0 : index
    %4 = vector.load %arg2[%c0_2, %c0_3] : memref<8x256xf32, #tpu.memory_space<vmem>>, vector<8x256xf32>
    %5 = arith.truncf %4 : vector<8x256xf32> to vector<8x256xbf16>
    %c0_4 = arith.constant 0 : index
    %c0_5 = arith.constant 0 : index
    %6 = vector.load %arg3[%c0_4, %c0_5] : memref<256x384xbf16, #tpu.memory_space<vmem>>, vector<256x384xbf16>
    %cst = arith.constant dense<0.000000e+00> : vector<8x384xf32>
    %7 = tpu.matmul %5, %6, %cst {dimension_numbers = #tpu.dot_dimension_numbers<[1], [0], [0], [1], [0, 0, 1, 1], [], []>} : vector<8x256xbf16>, vector<256x384xbf16>, vector<8x384xf32> -> vector<8x384xf32>
    %8 = arith.addf %3, %7 : vector<8x384xf32>
    %c0_6 = arith.constant 0 : index
    %c0_7 = arith.constant 0 : index
    %9 = vector.load %arg8[%c0_6, %c0_7] : memref<8x384xf32, #tpu.memory_space<vmem>>, vector<8x384xf32>
    tpu.vector_store %arg8[%c0_6, %c0_7], %8 {strides = array<i32>} : memref<8x384xf32, #tpu.memory_space<vmem>>, vector<8x384xf32>,
    %c0_i32_8 = arith.constant 0 : i32
    %10 = arith.cmpi eq, %arg1, %c0_i32_8 : i32
    %11 = arith.extui %10 : i1 to i32
    %c0_i32_9 = arith.constant 0 : i32
    %12 = arith.cmpi ne, %11, %c0_i32_9 : i32
    scf.if %12 {
      %c0_10 = arith.constant 0 : index
      %c0_11 = arith.constant 0 : index
      %13 = vector.load %arg8[%c0_10, %c0_11] : memref<8x384xf32, #tpu.memory_space<vmem>>, vector<8x384xf32>
      %c0_12 = arith.constant 0 : index
      %c0_13 = arith.constant 0 : index
      %14 = vector.load %arg4[%c0_12, %c0_13] : memref<1x384xf32, #tpu.memory_space<vmem>>, vector<1x384xf32>
      %15 = vector.broadcast %14 : vector<1x384xf32> to vector<8x384xf32>
      %16 = arith.addf %13, %15 : vector<8x384xf32>
      %c0_14 = arith.constant 0 : index
      %c0_15 = arith.constant 0 : index
      %17 = vector.load %arg5[%c0_14, %c0_15] : memref<8x384xf32, #tpu.memory_space<vmem>>, vector<8x384xf32>
      tpu.vector_store %arg5[%c0_14, %c0_15], %16 {strides = array<i32>} : memref<8x384xf32, #tpu.memory_space<vmem>>, vector<8x384xf32>,
      %c0_i32_16 = arith.constant 0 : i32
      %18 = arith.cmpi eq, %arg0, %c0_i32_16 : i32
      %19 = arith.extui %18 : i1 to i32
      %c0_i32_17 = arith.constant 0 : i32
      %20 = arith.cmpi ne, %19, %c0_i32_17 : i32
      scf.if %20 {
        %cst_28 = arith.constant 0.000000e+00 : f32
        %32 = vector.broadcast %cst_28 : f32 to vector<1x384xf32>
        %c0_29 = arith.constant 0 : index
        %c0_30 = arith.constant 0 : index
        %33 = vector.load %arg6[%c0_29, %c0_30] : memref<1x384xf32, #tpu.memory_space<vmem>>, vector<1x384xf32>
        tpu.vector_store %arg6[%c0_29, %c0_30], %32 {strides = array<i32>} : memref<1x384xf32, #tpu.memory_space<vmem>>, vector<1x384xf32>,
        %cst_31 = arith.constant 0.000000e+00 : f32
        %34 = vector.broadcast %cst_31 : f32 to vector<1x384xf32>
        %c0_32 = arith.constant 0 : index
        %c0_33 = arith.constant 0 : index
        %35 = vector.load %arg7[%c0_32, %c0_33] : memref<1x384xf32, #tpu.memory_space<vmem>>, vector<1x384xf32>
        tpu.vector_store %arg7[%c0_32, %c0_33], %34 {strides = array<i32>} : memref<1x384xf32, #tpu.memory_space<vmem>>, vector<1x384xf32>,
      } else {
      }
      %c0_18 = arith.constant 0 : index
      %c0_19 = arith.constant 0 : index
      %21 = vector.load %arg6[%c0_18, %c0_19] : memref<1x384xf32, #tpu.memory_space<vmem>>, vector<1x384xf32>
      %cst_20 = arith.constant dense<0.000000e+00> : vector<384xf32>
      %22 = vector.multi_reduction <add>, %16, %cst_20 [0] : vector<8x384xf32> to vector<384xf32>
      %23 = vector.shape_cast %22 : vector<384xf32> to vector<1x384xf32>
      %24 = arith.addf %21, %23 : vector<1x384xf32>
      %c0_21 = arith.constant 0 : index
      %c0_22 = arith.constant 0 : index
      %25 = vector.load %arg6[%c0_21, %c0_22] : memref<1x384xf32, #tpu.memory_space<vmem>>, vector<1x384xf32>
      tpu.vector_store %arg6[%c0_21, %c0_22], %24 {strides = array<i32>} : memref<1x384xf32, #tpu.memory_space<vmem>>, vector<1x384xf32>,
      %c0_23 = arith.constant 0 : index
      %c0_24 = arith.constant 0 : index
      %26 = vector.load %arg7[%c0_23, %c0_24] : memref<1x384xf32, #tpu.memory_space<vmem>>, vector<1x384xf32>
      %27 = arith.mulf %16, %16 : vector<8x384xf32>
      %cst_25 = arith.constant dense<0.000000e+00> : vector<384xf32>
      %28 = vector.multi_reduction <add>, %27, %cst_25 [0] : vector<8x384xf32> to vector<384xf32>
      %29 = vector.shape_cast %28 : vector<384xf32> to vector<1x384xf32>
      %30 = arith.addf %26, %29 : vector<1x384xf32>
      %c0_26 = arith.constant 0 : index
      %c0_27 = arith.constant 0 : index
      %31 = vector.load %arg7[%c0_26, %c0_27] : memref<1x384xf32, #tpu.memory_space<vmem>>, vector<1x384xf32>
      tpu.vector_store %arg7[%c0_26, %c0_27], %30 {strides = array<i32>} : memref<1x384xf32, #tpu.memory_space<vmem>>, vector<1x384xf32>,
    } else {
    }
    return
  }
  func.func @transform_0(%arg0: i32, %arg1: i32) -> (i32, i32) {
    %c0_i32 = arith.constant 0 : i32
    return %arg0, %arg1 : i32, i32
  }
  func.func @transform_1(%arg0: i32, %arg1: i32) -> (i32, i32) {
    %c0_i32 = arith.constant 0 : i32
    %c0_i32_0 = arith.constant 0 : i32
    return %arg1, %c0_i32 : i32, i32
  }
  func.func @transform_2(%arg0: i32, %arg1: i32) -> (i32, i32) {
    %c0_i32 = arith.constant 0 : i32
    %c0_i32_0 = arith.constant 0 : i32
    %c0_i32_1 = arith.constant 0 : i32
    return %c0_i32, %c0_i32_0 : i32, i32
  }
  func.func @transform_3(%arg0: i32, %arg1: i32) -> (i32, i32) {
    %c0_i32 = arith.constant 0 : i32
    %c0_i32_0 = arith.constant 0 : i32
    return %arg0, %c0_i32 : i32, i32
  }
  func.func @transform_4(%arg0: i32, %arg1: i32) -> (i32, i32) {
    %c0_i32 = arith.constant 0 : i32
    %c0_i32_0 = arith.constant 0 : i32
    %c0_i32_1 = arith.constant 0 : i32
    return %c0_i32, %c0_i32_0 : i32, i32
  }
  func.func @transform_5(%arg0: i32, %arg1: i32) -> (i32, i32) {
    %c0_i32 = arith.constant 0 : i32
    %c0_i32_0 = arith.constant 0 : i32
    %c0_i32_1 = arith.constant 0 : i32
    return %c0_i32, %c0_i32_0 : i32, i32
  }
}

module attributes {stable_mosaic.version = 11 : i64} {
  func.func @_bn_apply_kernel(%arg0: i32, %arg1: memref<8x384xf32, #tpu.memory_space<vmem>>, %arg2: memref<1x384xf32, #tpu.memory_space<vmem>>, %arg3: memref<1x384xf32, #tpu.memory_space<vmem>>, %arg4: memref<1x384xf32, #tpu.memory_space<vmem>>, %arg5: memref<1x384xf32, #tpu.memory_space<vmem>>, %arg6: memref<8x384xf32, #tpu.memory_space<vmem>>) attributes {dimension_semantics = [#tpu.dimension_semantics<parallel>], iteration_bounds = array<i64: 3>, scalar_prefetch = 0 : i64, scratch_operands = 0 : i64, tpu.core_type = #tpu.core_type<tc>, window_params = [{transform_indices = @transform_0, window_bounds = array<i64: 8, 384>}, {pipeline_mode = #tpu.pipeline_mode<synchronous>, transform_indices = @transform_1, window_bounds = array<i64: 1, 384>}, {pipeline_mode = #tpu.pipeline_mode<synchronous>, transform_indices = @transform_2, window_bounds = array<i64: 1, 384>}, {pipeline_mode = #tpu.pipeline_mode<synchronous>, transform_indices = @transform_3, window_bounds = array<i64: 1, 384>}, {pipeline_mode = #tpu.pipeline_mode<synchronous>, transform_indices = @transform_4, window_bounds = array<i64: 1, 384>}, {transform_indices = @transform_5, window_bounds = array<i64: 8, 384>}]} {
    %c0 = arith.constant 0 : index
    %c0_0 = arith.constant 0 : index
    %0 = vector.load %arg2[%c0, %c0_0] : memref<1x384xf32, #tpu.memory_space<vmem>>, vector<1x384xf32>
    %cst = arith.constant 0.0416666679 : f32
    %1 = vector.broadcast %cst : f32 to vector<1x384xf32>
    %2 = arith.mulf %0, %1 : vector<1x384xf32>
    %c0_1 = arith.constant 0 : index
    %c0_2 = arith.constant 0 : index
    %3 = vector.load %arg3[%c0_1, %c0_2] : memref<1x384xf32, #tpu.memory_space<vmem>>, vector<1x384xf32>
    %cst_3 = arith.constant 0.0416666679 : f32
    %4 = vector.broadcast %cst_3 : f32 to vector<1x384xf32>
    %5 = arith.mulf %3, %4 : vector<1x384xf32>
    %6 = arith.mulf %2, %2 : vector<1x384xf32>
    %7 = arith.subf %5, %6 : vector<1x384xf32>
    %cst_4 = arith.constant 0.000000e+00 : f32
    %8 = vector.broadcast %cst_4 : f32 to vector<1x384xf32>
    %9 = arith.maximumf %7, %8 : vector<1x384xf32>
    %cst_5 = arith.constant 9.99999974E-6 : f32
    %10 = vector.broadcast %cst_5 : f32 to vector<1x384xf32>
    %11 = arith.addf %9, %10 : vector<1x384xf32>
    %12 = math.rsqrt %11 : vector<1x384xf32>
    %c0_6 = arith.constant 0 : index
    %c0_7 = arith.constant 0 : index
    %13 = vector.load %arg4[%c0_6, %c0_7] : memref<1x384xf32, #tpu.memory_space<vmem>>, vector<1x384xf32>
    %14 = arith.mulf %13, %12 : vector<1x384xf32>
    %c0_8 = arith.constant 0 : index
    %c0_9 = arith.constant 0 : index
    %15 = vector.load %arg5[%c0_8, %c0_9] : memref<1x384xf32, #tpu.memory_space<vmem>>, vector<1x384xf32>
    %16 = arith.mulf %2, %14 : vector<1x384xf32>
    %17 = arith.subf %15, %16 : vector<1x384xf32>
    %c0_10 = arith.constant 0 : index
    %c0_11 = arith.constant 0 : index
    %18 = vector.load %arg1[%c0_10, %c0_11] : memref<8x384xf32, #tpu.memory_space<vmem>>, vector<8x384xf32>
    %19 = vector.broadcast %14 : vector<1x384xf32> to vector<8x384xf32>
    %20 = arith.mulf %18, %19 : vector<8x384xf32>
    %21 = vector.broadcast %17 : vector<1x384xf32> to vector<8x384xf32>
    %22 = arith.addf %20, %21 : vector<8x384xf32>
    %23 = arith.mulf %22, %22 : vector<8x384xf32>
    %cst_12 = arith.constant dense<0.000000e+00> : vector<8xf32>
    %24 = vector.multi_reduction <add>, %23, %cst_12 [1] : vector<8x384xf32> to vector<8xf32>
    %25 = vector.shape_cast %24 : vector<8xf32> to vector<8x1xf32>
    %cst_13 = arith.constant 1.000000e-24 : f32
    %26 = vector.broadcast %cst_13 : f32 to vector<8x1xf32>
    %27 = arith.maximumf %25, %26 : vector<8x1xf32>
    %28 = math.rsqrt %27 : vector<8x1xf32>
    %29 = vector.broadcast %28 : vector<8x1xf32> to vector<8x384xf32>
    %30 = arith.mulf %22, %29 : vector<8x384xf32>
    %c0_14 = arith.constant 0 : index
    %c0_15 = arith.constant 0 : index
    %31 = vector.load %arg6[%c0_14, %c0_15] : memref<8x384xf32, #tpu.memory_space<vmem>>, vector<8x384xf32>
    tpu.vector_store %arg6[%c0_14, %c0_15], %30 {strides = array<i32>} : memref<8x384xf32, #tpu.memory_space<vmem>>, vector<8x384xf32>,
    return
  }
  func.func @transform_0(%arg0: i32) -> (i32, i32) {
    %c0_i32 = arith.constant 0 : i32
    %c0_i32_0 = arith.constant 0 : i32
    return %arg0, %c0_i32 : i32, i32
  }
  func.func @transform_1(%arg0: i32) -> (i32, i32) {
    %c0_i32 = arith.constant 0 : i32
    %c0_i32_0 = arith.constant 0 : i32
    %c0_i32_1 = arith.constant 0 : i32
    return %c0_i32, %c0_i32_0 : i32, i32
  }
  func.func @transform_2(%arg0: i32) -> (i32, i32) {
    %c0_i32 = arith.constant 0 : i32
    %c0_i32_0 = arith.constant 0 : i32
    %c0_i32_1 = arith.constant 0 : i32
    return %c0_i32, %c0_i32_0 : i32, i32
  }
  func.func @transform_3(%arg0: i32) -> (i32, i32) {
    %c0_i32 = arith.constant 0 : i32
    %c0_i32_0 = arith.constant 0 : i32
    %c0_i32_1 = arith.constant 0 : i32
    return %c0_i32, %c0_i32_0 : i32, i32
  }
  func.func @transform_4(%arg0: i32) -> (i32, i32) {
    %c0_i32 = arith.constant 0 : i32
    %c0_i32_0 = arith.constant 0 : i32
    %c0_i32_1 = arith.constant 0 : i32
    return %c0_i32, %c0_i32_0 : i32, i32
  }
  func.func @transform_5(%arg0: i32) -> (i32, i32) {
    %c0_i32 = arith.constant 0 : i32
    %c0_i32_0 = arith.constant 0 : i32
    return %arg0, %c0_i32 : i32, i32
  }
}

module attributes {stable_mosaic.version = 11 : i64} {
  func.func @_bn_apply_kernel(%arg0: i32, %arg1: memref<8x384xf32, #tpu.memory_space<vmem>>, %arg2: memref<1x384xf32, #tpu.memory_space<vmem>>, %arg3: memref<1x384xf32, #tpu.memory_space<vmem>>, %arg4: memref<1x384xf32, #tpu.memory_space<vmem>>, %arg5: memref<1x384xf32, #tpu.memory_space<vmem>>, %arg6: memref<8x384xf32, #tpu.memory_space<vmem>>) attributes {dimension_semantics = [#tpu.dimension_semantics<parallel>], iteration_bounds = array<i64: 1>, scalar_prefetch = 0 : i64, scratch_operands = 0 : i64, tpu.core_type = #tpu.core_type<tc>, window_params = [{transform_indices = @transform_0, window_bounds = array<i64: 8, 384>}, {pipeline_mode = #tpu.pipeline_mode<synchronous>, transform_indices = @transform_1, window_bounds = array<i64: 1, 384>}, {pipeline_mode = #tpu.pipeline_mode<synchronous>, transform_indices = @transform_2, window_bounds = array<i64: 1, 384>}, {pipeline_mode = #tpu.pipeline_mode<synchronous>, transform_indices = @transform_3, window_bounds = array<i64: 1, 384>}, {pipeline_mode = #tpu.pipeline_mode<synchronous>, transform_indices = @transform_4, window_bounds = array<i64: 1, 384>}, {transform_indices = @transform_5, window_bounds = array<i64: 8, 384>}]} {
    %c0 = arith.constant 0 : index
    %c0_0 = arith.constant 0 : index
    %0 = vector.load %arg2[%c0, %c0_0] : memref<1x384xf32, #tpu.memory_space<vmem>>, vector<1x384xf32>
    %cst = arith.constant 1.250000e-01 : f32
    %1 = vector.broadcast %cst : f32 to vector<1x384xf32>
    %2 = arith.mulf %0, %1 : vector<1x384xf32>
    %c0_1 = arith.constant 0 : index
    %c0_2 = arith.constant 0 : index
    %3 = vector.load %arg3[%c0_1, %c0_2] : memref<1x384xf32, #tpu.memory_space<vmem>>, vector<1x384xf32>
    %cst_3 = arith.constant 1.250000e-01 : f32
    %4 = vector.broadcast %cst_3 : f32 to vector<1x384xf32>
    %5 = arith.mulf %3, %4 : vector<1x384xf32>
    %6 = arith.mulf %2, %2 : vector<1x384xf32>
    %7 = arith.subf %5, %6 : vector<1x384xf32>
    %cst_4 = arith.constant 0.000000e+00 : f32
    %8 = vector.broadcast %cst_4 : f32 to vector<1x384xf32>
    %9 = arith.maximumf %7, %8 : vector<1x384xf32>
    %cst_5 = arith.constant 9.99999974E-6 : f32
    %10 = vector.broadcast %cst_5 : f32 to vector<1x384xf32>
    %11 = arith.addf %9, %10 : vector<1x384xf32>
    %12 = math.rsqrt %11 : vector<1x384xf32>
    %c0_6 = arith.constant 0 : index
    %c0_7 = arith.constant 0 : index
    %13 = vector.load %arg4[%c0_6, %c0_7] : memref<1x384xf32, #tpu.memory_space<vmem>>, vector<1x384xf32>
    %14 = arith.mulf %13, %12 : vector<1x384xf32>
    %c0_8 = arith.constant 0 : index
    %c0_9 = arith.constant 0 : index
    %15 = vector.load %arg5[%c0_8, %c0_9] : memref<1x384xf32, #tpu.memory_space<vmem>>, vector<1x384xf32>
    %16 = arith.mulf %2, %14 : vector<1x384xf32>
    %17 = arith.subf %15, %16 : vector<1x384xf32>
    %c0_10 = arith.constant 0 : index
    %c0_11 = arith.constant 0 : index
    %18 = vector.load %arg1[%c0_10, %c0_11] : memref<8x384xf32, #tpu.memory_space<vmem>>, vector<8x384xf32>
    %19 = vector.broadcast %14 : vector<1x384xf32> to vector<8x384xf32>
    %20 = arith.mulf %18, %19 : vector<8x384xf32>
    %21 = vector.broadcast %17 : vector<1x384xf32> to vector<8x384xf32>
    %22 = arith.addf %20, %21 : vector<8x384xf32>
    %c0_12 = arith.constant 0 : index
    %c0_13 = arith.constant 0 : index
    %23 = vector.load %arg6[%c0_12, %c0_13] : memref<8x384xf32, #tpu.memory_space<vmem>>, vector<8x384xf32>
    tpu.vector_store %arg6[%c0_12, %c0_13], %22 {strides = array<i32>} : memref<8x384xf32, #tpu.memory_space<vmem>>, vector<8x384xf32>,
    return
  }
  func.func @transform_0(%arg0: i32) -> (i32, i32) {
    %c0_i32 = arith.constant 0 : i32
    %c0_i32_0 = arith.constant 0 : i32
    return %arg0, %c0_i32 : i32, i32
  }
  func.func @transform_1(%arg0: i32) -> (i32, i32) {
    %c0_i32 = arith.constant 0 : i32
    %c0_i32_0 = arith.constant 0 : i32
    %c0_i32_1 = arith.constant 0 : i32
    return %c0_i32, %c0_i32_0 : i32, i32
  }
  func.func @transform_2(%arg0: i32) -> (i32, i32) {
    %c0_i32 = arith.constant 0 : i32
    %c0_i32_0 = arith.constant 0 : i32
    %c0_i32_1 = arith.constant 0 : i32
    return %c0_i32, %c0_i32_0 : i32, i32
  }
  func.func @transform_3(%arg0: i32) -> (i32, i32) {
    %c0_i32 = arith.constant 0 : i32
    %c0_i32_0 = arith.constant 0 : i32
    %c0_i32_1 = arith.constant 0 : i32
    return %c0_i32, %c0_i32_0 : i32, i32
  }
  func.func @transform_4(%arg0: i32) -> (i32, i32) {
    %c0_i32 = arith.constant 0 : i32
    %c0_i32_0 = arith.constant 0 : i32
    %c0_i32_1 = arith.constant 0 : i32
    return %c0_i32, %c0_i32_0 : i32, i32
  }
  func.func @transform_5(%arg0: i32) -> (i32, i32) {
    %c0_i32 = arith.constant 0 : i32
    %c0_i32_0 = arith.constant 0 : i32
    return %arg0, %c0_i32 : i32, i32
  }
}

module attributes {stable_mosaic.version = 11 : i64} {
  func.func @_bn_apply_kernel(%arg0: i32, %arg1: memref<8x256xf32, #tpu.memory_space<vmem>>, %arg2: memref<1x256xf32, #tpu.memory_space<vmem>>, %arg3: memref<1x256xf32, #tpu.memory_space<vmem>>, %arg4: memref<1x256xf32, #tpu.memory_space<vmem>>, %arg5: memref<1x256xf32, #tpu.memory_space<vmem>>, %arg6: memref<8x256xf32, #tpu.memory_space<vmem>>) attributes {dimension_semantics = [#tpu.dimension_semantics<parallel>], iteration_bounds = array<i64: 1>, scalar_prefetch = 0 : i64, scratch_operands = 0 : i64, tpu.core_type = #tpu.core_type<tc>, window_params = [{transform_indices = @transform_0, window_bounds = array<i64: 8, 256>}, {pipeline_mode = #tpu.pipeline_mode<synchronous>, transform_indices = @transform_1, window_bounds = array<i64: 1, 256>}, {pipeline_mode = #tpu.pipeline_mode<synchronous>, transform_indices = @transform_2, window_bounds = array<i64: 1, 256>}, {pipeline_mode = #tpu.pipeline_mode<synchronous>, transform_indices = @transform_3, window_bounds = array<i64: 1, 256>}, {pipeline_mode = #tpu.pipeline_mode<synchronous>, transform_indices = @transform_4, window_bounds = array<i64: 1, 256>}, {transform_indices = @transform_5, window_bounds = array<i64: 8, 256>}]} {
    %c0 = arith.constant 0 : index
    %c0_0 = arith.constant 0 : index
    %0 = vector.load %arg2[%c0, %c0_0] : memref<1x256xf32, #tpu.memory_space<vmem>>, vector<1x256xf32>
    %cst = arith.constant 1.250000e-01 : f32
    %1 = vector.broadcast %cst : f32 to vector<1x256xf32>
    %2 = arith.mulf %0, %1 : vector<1x256xf32>
    %c0_1 = arith.constant 0 : index
    %c0_2 = arith.constant 0 : index
    %3 = vector.load %arg3[%c0_1, %c0_2] : memref<1x256xf32, #tpu.memory_space<vmem>>, vector<1x256xf32>
    %cst_3 = arith.constant 1.250000e-01 : f32
    %4 = vector.broadcast %cst_3 : f32 to vector<1x256xf32>
    %5 = arith.mulf %3, %4 : vector<1x256xf32>
    %6 = arith.mulf %2, %2 : vector<1x256xf32>
    %7 = arith.subf %5, %6 : vector<1x256xf32>
    %cst_4 = arith.constant 0.000000e+00 : f32
    %8 = vector.broadcast %cst_4 : f32 to vector<1x256xf32>
    %9 = arith.maximumf %7, %8 : vector<1x256xf32>
    %cst_5 = arith.constant 9.99999974E-6 : f32
    %10 = vector.broadcast %cst_5 : f32 to vector<1x256xf32>
    %11 = arith.addf %9, %10 : vector<1x256xf32>
    %12 = math.rsqrt %11 : vector<1x256xf32>
    %c0_6 = arith.constant 0 : index
    %c0_7 = arith.constant 0 : index
    %13 = vector.load %arg4[%c0_6, %c0_7] : memref<1x256xf32, #tpu.memory_space<vmem>>, vector<1x256xf32>
    %14 = arith.mulf %13, %12 : vector<1x256xf32>
    %c0_8 = arith.constant 0 : index
    %c0_9 = arith.constant 0 : index
    %15 = vector.load %arg5[%c0_8, %c0_9] : memref<1x256xf32, #tpu.memory_space<vmem>>, vector<1x256xf32>
    %16 = arith.mulf %2, %14 : vector<1x256xf32>
    %17 = arith.subf %15, %16 : vector<1x256xf32>
    %c0_10 = arith.constant 0 : index
    %c0_11 = arith.constant 0 : index
    %18 = vector.load %arg1[%c0_10, %c0_11] : memref<8x256xf32, #tpu.memory_space<vmem>>, vector<8x256xf32>
    %19 = vector.broadcast %14 : vector<1x256xf32> to vector<8x256xf32>
    %20 = arith.mulf %18, %19 : vector<8x256xf32>
    %21 = vector.broadcast %17 : vector<1x256xf32> to vector<8x256xf32>
    %22 = arith.addf %20, %21 : vector<8x256xf32>
    %c0_12 = arith.constant 0 : index
    %c0_13 = arith.constant 0 : index
    %23 = vector.load %arg6[%c0_12, %c0_13] : memref<8x256xf32, #tpu.memory_space<vmem>>, vector<8x256xf32>
    tpu.vector_store %arg6[%c0_12, %c0_13], %22 {strides = array<i32>} : memref<8x256xf32, #tpu.memory_space<vmem>>, vector<8x256xf32>,
    return
  }
  func.func @transform_0(%arg0: i32) -> (i32, i32) {
    %c0_i32 = arith.constant 0 : i32
    %c0_i32_0 = arith.constant 0 : i32
    return %arg0, %c0_i32 : i32, i32
  }
  func.func @transform_1(%arg0: i32) -> (i32, i32) {
    %c0_i32 = arith.constant 0 : i32
    %c0_i32_0 = arith.constant 0 : i32
    %c0_i32_1 = arith.constant 0 : i32
    return %c0_i32, %c0_i32_0 : i32, i32
  }
  func.func @transform_2(%arg0: i32) -> (i32, i32) {
    %c0_i32 = arith.constant 0 : i32
    %c0_i32_0 = arith.constant 0 : i32
    %c0_i32_1 = arith.constant 0 : i32
    return %c0_i32, %c0_i32_0 : i32, i32
  }
  func.func @transform_3(%arg0: i32) -> (i32, i32) {
    %c0_i32 = arith.constant 0 : i32
    %c0_i32_0 = arith.constant 0 : i32
    %c0_i32_1 = arith.constant 0 : i32
    return %c0_i32, %c0_i32_0 : i32, i32
  }
  func.func @transform_4(%arg0: i32) -> (i32, i32) {
    %c0_i32 = arith.constant 0 : i32
    %c0_i32_0 = arith.constant 0 : i32
    %c0_i32_1 = arith.constant 0 : i32
    return %c0_i32, %c0_i32_0 : i32, i32
  }
  func.func @transform_5(%arg0: i32) -> (i32, i32) {
    %c0_i32 = arith.constant 0 : i32
    %c0_i32_0 = arith.constant 0 : i32
    return %arg0, %c0_i32 : i32, i32
  }
}

module attributes {stable_mosaic.version = 11 : i64} {
  func.func @_bn_apply_kernel(%arg0: i32, %arg1: memref<8x384xf32, #tpu.memory_space<vmem>>, %arg2: memref<1x384xf32, #tpu.memory_space<vmem>>, %arg3: memref<1x384xf32, #tpu.memory_space<vmem>>, %arg4: memref<1x384xf32, #tpu.memory_space<vmem>>, %arg5: memref<1x384xf32, #tpu.memory_space<vmem>>, %arg6: memref<8x384xf32, #tpu.memory_space<vmem>>) attributes {dimension_semantics = [#tpu.dimension_semantics<parallel>], iteration_bounds = array<i64: 1>, scalar_prefetch = 0 : i64, scratch_operands = 0 : i64, tpu.core_type = #tpu.core_type<tc>, window_params = [{transform_indices = @transform_0, window_bounds = array<i64: 8, 384>}, {pipeline_mode = #tpu.pipeline_mode<synchronous>, transform_indices = @transform_1, window_bounds = array<i64: 1, 384>}, {pipeline_mode = #tpu.pipeline_mode<synchronous>, transform_indices = @transform_2, window_bounds = array<i64: 1, 384>}, {pipeline_mode = #tpu.pipeline_mode<synchronous>, transform_indices = @transform_3, window_bounds = array<i64: 1, 384>}, {pipeline_mode = #tpu.pipeline_mode<synchronous>, transform_indices = @transform_4, window_bounds = array<i64: 1, 384>}, {transform_indices = @transform_5, window_bounds = array<i64: 8, 384>}]} {
    %c0 = arith.constant 0 : index
    %c0_0 = arith.constant 0 : index
    %0 = vector.load %arg2[%c0, %c0_0] : memref<1x384xf32, #tpu.memory_space<vmem>>, vector<1x384xf32>
    %cst = arith.constant 1.250000e-01 : f32
    %1 = vector.broadcast %cst : f32 to vector<1x384xf32>
    %2 = arith.mulf %0, %1 : vector<1x384xf32>
    %c0_1 = arith.constant 0 : index
    %c0_2 = arith.constant 0 : index
    %3 = vector.load %arg3[%c0_1, %c0_2] : memref<1x384xf32, #tpu.memory_space<vmem>>, vector<1x384xf32>
    %cst_3 = arith.constant 1.250000e-01 : f32
    %4 = vector.broadcast %cst_3 : f32 to vector<1x384xf32>
    %5 = arith.mulf %3, %4 : vector<1x384xf32>
    %6 = arith.mulf %2, %2 : vector<1x384xf32>
    %7 = arith.subf %5, %6 : vector<1x384xf32>
    %cst_4 = arith.constant 0.000000e+00 : f32
    %8 = vector.broadcast %cst_4 : f32 to vector<1x384xf32>
    %9 = arith.maximumf %7, %8 : vector<1x384xf32>
    %cst_5 = arith.constant 9.99999974E-6 : f32
    %10 = vector.broadcast %cst_5 : f32 to vector<1x384xf32>
    %11 = arith.addf %9, %10 : vector<1x384xf32>
    %12 = math.rsqrt %11 : vector<1x384xf32>
    %c0_6 = arith.constant 0 : index
    %c0_7 = arith.constant 0 : index
    %13 = vector.load %arg4[%c0_6, %c0_7] : memref<1x384xf32, #tpu.memory_space<vmem>>, vector<1x384xf32>
    %14 = arith.mulf %13, %12 : vector<1x384xf32>
    %c0_8 = arith.constant 0 : index
    %c0_9 = arith.constant 0 : index
    %15 = vector.load %arg5[%c0_8, %c0_9] : memref<1x384xf32, #tpu.memory_space<vmem>>, vector<1x384xf32>
    %16 = arith.mulf %2, %14 : vector<1x384xf32>
    %17 = arith.subf %15, %16 : vector<1x384xf32>
    %c0_10 = arith.constant 0 : index
    %c0_11 = arith.constant 0 : index
    %18 = vector.load %arg1[%c0_10, %c0_11] : memref<8x384xf32, #tpu.memory_space<vmem>>, vector<8x384xf32>
    %19 = vector.broadcast %14 : vector<1x384xf32> to vector<8x384xf32>
    %20 = arith.mulf %18, %19 : vector<8x384xf32>
    %21 = vector.broadcast %17 : vector<1x384xf32> to vector<8x384xf32>
    %22 = arith.addf %20, %21 : vector<8x384xf32>
    %23 = arith.mulf %22, %22 : vector<8x384xf32>
    %cst_12 = arith.constant dense<0.000000e+00> : vector<8xf32>
    %24 = vector.multi_reduction <add>, %23, %cst_12 [1] : vector<8x384xf32> to vector<8xf32>
    %25 = vector.shape_cast %24 : vector<8xf32> to vector<8x1xf32>
    %cst_13 = arith.constant 1.000000e-24 : f32
    %26 = vector.broadcast %cst_13 : f32 to vector<8x1xf32>
    %27 = arith.maximumf %25, %26 : vector<8x1xf32>
    %28 = math.rsqrt %27 : vector<8x1xf32>
    %29 = vector.broadcast %28 : vector<8x1xf32> to vector<8x384xf32>
    %30 = arith.mulf %22, %29 : vector<8x384xf32>
    %c0_14 = arith.constant 0 : index
    %c0_15 = arith.constant 0 : index
    %31 = vector.load %arg6[%c0_14, %c0_15] : memref<8x384xf32, #tpu.memory_space<vmem>>, vector<8x384xf32>
    tpu.vector_store %arg6[%c0_14, %c0_15], %30 {strides = array<i32>} : memref<8x384xf32, #tpu.memory_space<vmem>>, vector<8x384xf32>,
    return
  }
  func.func @transform_0(%arg0: i32) -> (i32, i32) {
    %c0_i32 = arith.constant 0 : i32
    %c0_i32_0 = arith.constant 0 : i32
    return %arg0, %c0_i32 : i32, i32
  }
  func.func @transform_1(%arg0: i32) -> (i32, i32) {
    %c0_i32 = arith.constant 0 : i32
    %c0_i32_0 = arith.constant 0 : i32
    %c0_i32_1 = arith.constant 0 : i32
    return %c0_i32, %c0_i32_0 : i32, i32
  }
  func.func @transform_2(%arg0: i32) -> (i32, i32) {
    %c0_i32 = arith.constant 0 : i32
    %c0_i32_0 = arith.constant 0 : i32
    %c0_i32_1 = arith.constant 0 : i32
    return %c0_i32, %c0_i32_0 : i32, i32
  }
  func.func @transform_3(%arg0: i32) -> (i32, i32) {
    %c0_i32 = arith.constant 0 : i32
    %c0_i32_0 = arith.constant 0 : i32
    %c0_i32_1 = arith.constant 0 : i32
    return %c0_i32, %c0_i32_0 : i32, i32
  }
  func.func @transform_4(%arg0: i32) -> (i32, i32) {
    %c0_i32 = arith.constant 0 : i32
    %c0_i32_0 = arith.constant 0 : i32
    %c0_i32_1 = arith.constant 0 : i32
    return %c0_i32, %c0_i32_0 : i32, i32
  }
  func.func @transform_5(%arg0: i32) -> (i32, i32) {
    %c0_i32 = arith.constant 0 : i32
    %c0_i32_0 = arith.constant 0 : i32
    return %arg0, %c0_i32 : i32, i32
  }
}

</mosaic_0001>

<bundles_post_ra>
// kernel: autoenc2_forward_train.23
= control target key start
LH: loop header
LB: loop body
LE: loop exit
PB: predicated region body
PF: predicated region fallthrough
CT: control target
= control target key end

     0   :  { %12 = vsyncpa [#allocation3], 0  ;;  %s1288_s0 = inlined_call_operand.hbm [shape: f32[24,256], index: 0, kind: input, shape index: {}]   ;;  %s1289_s1 = inlined_call_operand.hbm [shape: f32[1,256], index: 1, kind: input, shape index: {}]   ;;  %s1290_s2 = inlined_call_operand.hbm [shape: f32[1,256], index: 2, kind: input, shape index: {}]   ;;  %s1291_s3 = inlined_call_operand.hbm [shape: f32[1,256], index: 3, kind: input, shape index: {}]   ;;  %s1292_s4 = inlined_call_operand.hbm [shape: f32[1,256], index: 4, kind: input, shape index: {}]   ;;  %s1293_s5 = inlined_call_operand.hbm [shape: f32[24,256], index: 5, kind: output, shape index: {0}]   ;;  %s1294_s6 = inlined_call_operand.hbm [shape: f32[24,256], index: 6, kind: output, shape index: {1}]  }
   0x1   :  { %14 = vsyncpa [#allocation3 + $0x1], 0 }
   0x2   :  { %15 = vsyncpa [#allocation6], 0 }
   0x3   :  { %16 = vsyncpa [#allocation9], 0 }
   0x4   :  { %17 = vsyncpa [#allocation4], 0 }
   0x5   :  { %19 = vsyncpa [#allocation4 + $0x1], 0 }
   0x6   :  { %20 = vsyncpa [#allocation13], 0 }
   0x7   :  { %22 = vsyncpa [#allocation13 + $0x1], 0  ;;  %s975_s21 = smov 0   ;;  %s977_s22 = smov 0  }
   0x8   :  { %s979_s23 = smov 0   ;;  %s981_s24 = smov 0  }
   0x9 LB: > { %s933_s25 = smov [#allocation5]   ;;  %s996_s27 = sadd.s32 4294967295, %s931_s24   ;;  %s931_s24 = sphi %s981_s24, %s1317_s24   ;;  %s927_s23 = sphi %s979_s23, %s1316_s23   ;;  %s923_s22 = sphi %s977_s22, %s1315_s22   ;;  %s919_s21 = sphi %s975_s21, %s1314_s21  }
   0xa   : > { %s208_s26 = sshll.u32 %s933_s25, 4  ;;  %p559_p0 = scmp.ge.s32.totalorder %s931_s24, 1  ;;  %s1001_s26 = int_to_ptr.vmem [resolvable:$true] %s208_s26 }
   0xb   : > { %p1295_p1 = scmp.eq.s32.totalorder %s996_s27, 0  ;;  %p195_p2 = scmp.lt.s32.totalorder %s931_s24, 4 }
   0xc   : > { %s934_s29 = smov [#allocation8]   ;;  %s935_s7 = smov [#allocation7]  }
   0xd   : > { %p1003_p3 = pnand %p559_p0, %p195_p2  ;;  %s230_s30 = sshll.u32 %s934_s29, 4  ;;  %s1009_s30 = int_to_ptr.vmem [resolvable:$true] %s230_s30 }
   0xe   : > { %s219_s8 = sshll.u32 %s935_s7, 4  ;;  %s936_s10 = smov [#allocation10]   ;;  %s1017_s8 = int_to_ptr.vmem [resolvable:$true] %s219_s8 }
   0xf   : > { %s1298_s28 = scalar_select %p1003_p3, 1, 0 }
  0x10   : > { %p609_p4 = pneg %p1003_p3  ;;  %s1019_s11 = sshll.u32 %s936_s10, 4  ;;  %s242_s11 = int_to_ptr.vmem [resolvable:$true] %s1019_s11 }
  0x11   : > { %s683_s14 = scalar_lea.hbm %s1289_s1, 32 }
  0x12   : > { %p1013_p5 = pnand %p609_p4, %p1295_p1  ;;  %p684_p6 = scmp.ne.s32.totalorder %s1289_s1, %s683_s14 }
  0x13   : > { %p690_p10 = scmp.lt.u32.totalorder %s683_s14, %s1289_s1 }
  0x14   : > { %p1029_p7 = pneg %p1013_p5 }
  0x16   : > { %p686_p8 = pnand %p1029_p7, %p684_p6 }
  0x18   : > { %p687_p9 = pneg %p686_p8 }
  0x1a   : > { %p692_p11 = pnand %p690_p10, %p687_p9 }
  0x1c   : > { %695 = shalt.err (!%p692_p11)
}
  0x1d   : > { %s696_s20 = scalar_lea.vmem %s1001_s26, 32  ;;  %p704_p2 = scmp.lt.s32.totalorder %s1001_s26, %s1001_s26 }
  0x1e   : > { %p697_p12 = scmp.ne.s32.totalorder %s1001_s26, %s696_s20  ;;  %p705_p4 = scmp.lt.s32.totalorder %s696_s20, %s696_s20 }
  0x20   : > { %p699_p13 = pnand %p697_p12, %p1029_p7  ;;  %p706_p6 = por %p705_p4, %p704_p2 }
  0x22   : > { %p700_p0 = pneg %p699_p13 }
  0x24   : > { %p707_p8 = pnand %p706_p6, %p700_p0 }
  0x26   : > { %710 = shalt.err (!%p707_p8)
}
  0x27   : > { %612 = dma.hbm_to_vmem [thread:$0]  (!%p1013_p5), %s1289_s1, 32, %s1001_s26, [#allocation6]  }
  0x28   : > { %s711_s12 = scalar_lea.hbm %s1291_s3, 32 }
  0x29   : > { %p712_p9 = scmp.ne.s32.totalorder %s1291_s3, %s711_s12  ;;  %p718_p12 = scmp.lt.u32.totalorder %s711_s12, %s1291_s3 }
  0x2b   : > { %p714_p10 = pnand %p712_p9, %p1029_p7 }
  0x2d   : > { %p715_p11 = pneg %p714_p10 }
  0x2f   : > { %p720_p13 = pnand %p718_p12, %p715_p11 }
  0x31   : > { %723 = shalt.err (!%p720_p13)
}
  0x32   : > { %s724_s26 = scalar_lea.vmem %s1009_s30, 32  ;;  %p732_p6 = scmp.lt.s32.totalorder %s1009_s30, %s1009_s30 }
  0x33   : > { %p725_p0 = scmp.ne.s32.totalorder %s1009_s30, %s724_s26  ;;  %p733_p8 = scmp.lt.s32.totalorder %s724_s26, %s724_s26 }
  0x35   : > { %p727_p2 = pnand %p725_p0, %p1029_p7  ;;  %p734_p9 = por %p733_p8, %p732_p6 }
  0x37   : > { %p728_p4 = pneg %p727_p2 }
  0x39   : > { %p735_p10 = pnand %p734_p9, %p728_p4 }
  0x3b   : > { %738 = shalt.err (!%p735_p10)
}
  0x3c   : > { %618 = dma.hbm_to_vmem [thread:$0]  (!%p1013_p5), %s1291_s3, 32, %s1009_s30, [#allocation9]  }
  0x3d   : > { %s739_s29 = scalar_lea.hbm %s1290_s2, 32 }
  0x3e   : > { %p740_p11 = scmp.ne.s32.totalorder %s1290_s2, %s739_s29  ;;  %p746_p0 = scmp.lt.u32.totalorder %s739_s29, %s1290_s2 }
  0x40   : > { %p742_p12 = pnand %p740_p11, %p1029_p7 }
  0x42   : > { %p743_p13 = pneg %p742_p12 }
  0x44   : > { %p748_p2 = pnand %p746_p0, %p743_p13 }
  0x46   : > { %751 = shalt.err (!%p748_p2)
}
  0x47   : > { %s752_s30 = scalar_lea.vmem %s1017_s8, 32  ;;  %p760_p9 = scmp.lt.s32.totalorder %s1017_s8, %s1017_s8 }
  0x48   : > { %p753_p4 = scmp.ne.s32.totalorder %s1017_s8, %s752_s30  ;;  %p761_p10 = scmp.lt.s32.totalorder %s752_s30, %s752_s30 }
  0x4a   : > { %p755_p6 = pnand %p753_p4, %p1029_p7  ;;  %p762_p11 = por %p761_p10, %p760_p9 }
  0x4c   : > { %p756_p8 = pneg %p755_p6 }
  0x4e   : > { %p763_p12 = pnand %p762_p11, %p756_p8 }
  0x50   : > { %766 = shalt.err (!%p763_p12)
}
  0x51   : > { %615 = dma.hbm_to_vmem [thread:$0]  (!%p1013_p5), %s1290_s2, 32, %s1017_s8, [#allocation6]  }
  0x52   : > { %s767_s18 = scalar_lea.hbm %s1292_s4, 32 }
  0x53   : > { %p768_p13 = scmp.ne.s32.totalorder %s1292_s4, %s767_s18  ;;  %p774_p4 = scmp.lt.u32.totalorder %s767_s18, %s1292_s4 }
  0x55   : > { %p770_p0 = pnand %p768_p13, %p1029_p7 }
  0x57   : > { %p771_p2 = pneg %p770_p0 }
  0x59   : > { %p776_p6 = pnand %p774_p4, %p771_p2 }
  0x5b   : > { %779 = shalt.err (!%p776_p6)
}
  0x5c   : > { %s780_s7 = scalar_lea.vmem %s242_s11, 32  ;;  %p788_p11 = scmp.lt.s32.totalorder %s242_s11, %s242_s11 }
  0x5d   : > { %p781_p8 = scmp.ne.s32.totalorder %s242_s11, %s780_s7  ;;  %p789_p12 = scmp.lt.s32.totalorder %s780_s7, %s780_s7 }
  0x5f   : > { %p783_p9 = pnand %p781_p8, %p1029_p7  ;;  %p790_p1 = por %p789_p12, %p788_p11 }
  0x61   : > { %p784_p10 = pneg %p783_p9 }
  0x63   : > { %p791_p3 = pnand %p790_p1, %p784_p10 }
  0x65   : > { %794 = shalt.err (!%p791_p3)
}
  0x66   : > { %621 = dma.hbm_to_vmem [thread:$0]  (!%p1013_p5), %s1292_s4, 32, %s242_s11, [#allocation9]  }
  0x67   : > { %s558_s17 = sadd.s32 4294967294, %s931_s24   ;;  %s1117_s9 = sadd.s32 1, %s931_s24  }
  0x68   : > { %s32_s12 = ssub.s32 %s931_s24, %s1117_s9  ;;  %s35_s13 = sadd.s32 1, %s927_s23 }
  0x69   : > { %p33_p1 = scmp.eq.s32.totalorder %s32_s12, 0  ;;  %p42_p3 = scmp.ne.s32.totalorder %s927_s23, %s923_s22 }
  0x6a   : > { %p43_p7 = scmp.eq.s32.totalorder %s931_s24, 0  ;;  %p48_p13 = scmp.ne.s32.totalorder %s923_s22, %s919_s21 }
  0x6b   : > { %s1128_s30 = scalar_select %p33_p1, %s927_s23, %s35_s13  }
  0x6c   : > { %p1130_p0 = por %p43_p7, %p42_p3  ;;  %p1302_p2 = scmp.eq.s32.totalorder %s996_s27, 0 }
  0x6d   : > { %p156_p4 = scmp.eq.s32.totalorder %s996_s27, 2  ;;  %p162_p6 = scmp.eq.s32.totalorder %s558_s17, 2 }
  0x6e   : > { %p1136_p5 = por %p1302_p2, %p48_p13  ;;  %p637_p8 = scmp.lt.s32.totalorder %s931_s24, 3 }
  0x6f   : > { %s252_s15 = sand.u32 1, %s927_s23   ;;  %p1143_p9 = por %p156_p4, %p42_p3 }
  0x70   : > { %p1147_p10 = por %p162_p6, %p48_p13  ;;  %s565_s18 = sshll.u32 %s252_s15, 4 }
  0x71   : > { %s1304_s16 = scalar_select %p1143_p9, 1, 0 }
  0x72   : > { %s1305_s26 = scalar_select %p1147_p10, 1, 0 }
  0x73   : > { %s584_s19 = sshll.u32 %s931_s24, 8  ;;  %s256_s7 = scalar_lea.vmem [#allocation2], %s565_s18 }
  0x74   : > { %s1155_s29 = scalar_lea.hbm %s1288_s0, %s584_s19  ;;  %s264_s8 = sshll.u32 %s256_s7, 4  ;;  %s1157_s8 = int_to_ptr.vmem [resolvable:$true] %s264_s8 }
  0x75   : > { %p1161_p11 = pnand %p637_p8, %p1130_p0  ;;  %s253_s17 = scalar_lea.sflag [#allocation3], %s252_s15 }
  0x76   : > { %s795_s12 = scalar_lea.hbm %s1155_s29, 256  ;;  %s800_s19 = scalar_lea.hbm %s1288_s0, 768 }
  0x77   : > { %p796_p12 = scmp.ne.s32.totalorder %s1155_s29, %s795_s12  ;;  %p797_p1 = pneg %p1161_p11 }
  0x78   : > { %p801_p13 = scmp.lt.u32.totalorder %s1155_s29, %s1288_s0  ;;  %p802_p0 = scmp.lt.u32.totalorder %s800_s19, %s795_s12 }
  0x79   : > { %p798_p3 = pnand %p797_p1, %p796_p12  ;;  %p804_p4 = scmp.lt.u32.totalorder %s795_s12, %s1155_s29 }
  0x7a   : > { %p803_p2 = por %p802_p0, %p801_p13 }
  0x7b   : > { %p799_p7 = pneg %p798_p3 }
  0x7c   : > { %p805_p6 = por %p804_p4, %p803_p2 }
  0x7e   : > { %p806_p8 = pnand %p805_p6, %p799_p7 }
  0x80   : > { %809 = shalt.err (!%p806_p8)
}
  0x81   : > { %s810_s15 = scalar_lea.vmem %s1157_s8, 256  ;;  %s937_s25 = smov [#allocation2]  }
  0x82   : > { %p811_p12 = scmp.ne.s32.totalorder %s1157_s8, %s810_s15  ;;  %s815_s7 = sshll.u32 %s937_s25, 4  ;;  %s816_s7 = int_to_ptr.vmem [resolvable:$false] %s815_s7 }
  0x83   : > { %s817_s13 = scalar_lea.vmem %s816_s7, 512  ;;  %p818_p9 = scmp.lt.s32.totalorder %s1157_s8, %s816_s7 }
  0x84   : > { %p813_p3 = pnand %p811_p12, %p797_p1  ;;  %p819_p13 = scmp.lt.s32.totalorder %s817_s13, %s810_s15 }
  0x86   : > { %p814_p10 = pneg %p813_p3  ;;  %p820_p0 = por %p819_p13, %p818_p9 }
  0x88   : > { %p821_p2 = pnand %p820_p0, %p814_p10 }
  0x8a   : > { %824 = shalt.err (!%p821_p2)
}
  0x8b   : > { %625 = dma.hbm_to_vmem [thread:$0]  (!%p1161_p11), %s1155_s29, 256, %s1157_s8, %s253_s17  }
  0x8c   : > { %p1307_p7 = scmp.ne.s32.totalorder %s1298_s28, 0 }
  0x8d   : > { %s1193_s12 = sand.u32 (!%p1307_p7), 1, %s923_s22  }
  0x8e   : > { %273 = sbr.rel (%p1307_p7) target bundleno = 363 (0x16b), region = 40  ;;  %s1196_s18 = sshll.u32 (!%p1307_p7), %s1193_s12, 4 }
  0x8f   : > { %s276_s19 = scalar_lea.sflag (!%p1307_p7), [#allocation3], %s1193_s12  ;;  %s279_s14 = scalar_lea.vmem (!%p1307_p7), [#allocation2], %s1196_s18 }
  0x95   : > { %898 = dma.done.wait (%p1136_p5), %s276_s19, 256  }
  0x96   : > { %900 = vsyncadd (%p1136_p5), %s276_s19, 4294967040  ;;  %p1308_p9 = scmp.eq.s32.totalorder %s996_s27, 0 }
  0x98   : > { %902 = dma.done.wait (%p1308_p9), [#allocation6], 64   ;;  %p1309_p10 = pmov %p1308_p9 }
  0x99   : > { %p1310_p11 = pmov %p1308_p9 }
  0x9a   : > { %904 = vsyncadd (%p1309_p10), [#allocation6], 4294967232 }
  0x9b   : > { %906 = dma.done.wait (%p1310_p11), [#allocation9], 64   ;;  %p1311_p1 = pmov %p1308_p9 }
  0x9c   : > { %v329_v0 = vld [vmem:[#allocation5] sm:$0x3]  ;;  %v331_v1 = vld [vmem:[#allocation7] sm:$0x3]  ;;  %v346_v8 = vlaneseq  ;;  %v338_v10 = vld [vmem:[#allocation8] sm:$0x3] }
  0x9d   : > { %908 = vsyncadd (%p1311_p1), [#allocation9], 4294967232  ;;  %v330_v2 = vmul.f32 0.041666668, %v329_v0  ;;  %v332_v3 = vmul.f32 0.041666668, %v331_v1 }
  0x9e   : > { %v347_v9 = vshrl.u32 %v346_v8, 7  ;;  %v340_v15 = vld [vmem:[#allocation10] sm:$0x3]  ;;  %v344_v17 = vld [vmem:[%s279_s14 + $0x8] sm:$0xff]  ;;  %s321_s28 = scalar_lea.vmem [#allocation11], %s1196_s18  ;;  %s585_s11 = sshll.u32 %s996_s27, 8 }
  0x9f   : > { %v333_v4 = vmul.f32 %v330_v2, %v330_v2  ;;  %v343_v16 = vld [vmem:[%s279_s14] sm:$0xff]  ;;  %s404_s29 = sshll.u32 %s321_s28, 4  ;;  %s1219_s17 = scalar_lea.hbm %s1293_s5, %s585_s11  ;;  %s405_s29 = int_to_ptr.vmem [resolvable:$true] %s404_s29 }
  0xa0   : > { %v348_v11 = vsub.s32 0, %v347_v9  ;;  %v352_v12 = vsub.s32 1, %v347_v9  ;;  %s385_s20 = scalar_lea.sflag [#allocation4], %s1193_s12  ;;  %s825_s15 = scalar_lea.vmem %s405_s29, 256 }
  0xa1   : > { %v334_v5 = vsub.f32 %v332_v3, %v333_v4  ;;  %p826_p5 = scmp.ne.s32.totalorder %s405_s29, %s825_s15  ;;  %p1312_p4 = scmp.ne.s32.totalorder %s1304_s16, 0 }
  0xa2   : > { %s938_s25 = smov [#allocation11]  }
  0xa3   : > { %v335_v6 = vmax.f32 %v334_v5, 0.0  ;;  %p827_p6 = pnand %p826_p5, %p1312_p4  ;;  %s829_s7 = sshll.u32 %s938_s25, 4  ;;  %s830_s7 = int_to_ptr.vmem [resolvable:$false] %s829_s7 }
  0xa4   : > { %s831_s13 = scalar_lea.vmem %s830_s7, 512  ;;  %p832_p12 = scmp.lt.s32.totalorder %s405_s29, %s830_s7 }
  0xa5   : > { %v336_v7 = vadd.f32 1e-05, %v335_v6  ;;  %p828_p8 = pneg %p827_p6  ;;  %p833_p3 = scmp.lt.s32.totalorder %s831_s13, %s825_s15 }
  0xa7   : > { %679 = vrsqrt.f32 %v336_v7  ;;  %p834_p13 = por %p833_p3, %p832_p12 }
  0xa9   : > { %p835_p0 = pnand %p834_p13, %p828_p8 }
  0xb1   : > { %v680_v13 = vpop.eup %679 }
  0xb2   : > { %v339_v14 = vmul.f32 %v680_v13, %v338_v10 }
  0xb4   : > { %v341_v18 = vmul.f32 %v339_v14, %v330_v2  ;;  %v349_v19 = vrot.slane %v339_v14, %v348_v11  ;;  %v353_v20 = vrot.slane %v339_v14, %v352_v12 }
  0xb6   : > { %v342_v21 = vsub.f32 %v340_v15, %v341_v18  ;;  %v356_v22 = vmul.f32 %v349_v19, %v343_v16  ;;  %v357_v23 = vmul.f32 %v353_v20, %v344_v17 }
  0xb8   : > { %v362_v24 = vrot.slane %v342_v21, %v348_v11  ;;  %v366_v25 = vrot.slane %v342_v21, %v352_v12 }
  0xba   : > { %v369_v26 = vadd.f32 %v362_v24, %v356_v22  ;;  %v370_v27 = vadd.f32 %v366_v25, %v357_v23 }
  0xbc   : > { %v373_v28 = vmul.f32 %v369_v26, %v369_v26  ;;  %v374_v29 = vmul.f32 %v370_v27, %v370_v27  ;;  %371 = vst [vmem:[%s321_s28] sm:$0xff] %v369_v26  ;;  %372 = vst [vmem:[%s321_s28 + $0x8] sm:$0xff] %v370_v27 }
  0xbe   : > { %v375_v30 = vadd.f32 %v374_v29, %v373_v28 }
  0xc0   : > { %376 = vadd.xlane.f32.xlu0 %v375_v30 }
  0xc1   : > { %838 = shalt.err (!%p835_p0)
}
  0xc2   : > { %s839_s19 = scalar_lea.hbm %s1219_s17, 256  ;;  %s843_s8 = scalar_lea.hbm %s1293_s5, 768 }
  0xc3   : > { %p840_p2 = scmp.ne.s32.totalorder %s1219_s17, %s839_s19  ;;  %p844_p10 = scmp.lt.u32.totalorder %s1219_s17, %s1293_s5 }
  0xc4   : > { %p845_p11 = scmp.lt.u32.totalorder %s843_s8, %s839_s19  ;;  %p847_p5 = scmp.lt.u32.totalorder %s839_s19, %s1219_s17 }
  0xc5   : > { %p841_p7 = pnand %p840_p2, %p1312_p4 }
  0xc6   : > { %p846_p1 = por %p845_p11, %p844_p10 }
  0xc7   : > { %p842_p9 = pneg %p841_p7 }
  0xc8   : > { %p848_p6 = por %p847_p5, %p846_p1 }
  0xca   : > { %p849_p8 = pnand %p848_p6, %p842_p9 }
  0xcc   : > { %852 = shalt.err (!%p849_p8)
}
  0xcd   : > { %605 = dma.vmem_to_hbm [thread:$0]  (%p1312_p4), %s405_s29, 256, %s1219_s17, %s385_s20  }
  0xce   : > { %s328_s15 = scalar_lea.vmem [#allocation12], %s1196_s18  ;;  %s1245_s14 = scalar_lea.hbm %s1294_s6, %s585_s11 }
  0xcf   : > { %s418_s7 = sshll.u32 %s328_s15, 4  ;;  %s390_s29 = scalar_lea.sflag [#allocation13], %s1193_s12  ;;  %s1247_s7 = int_to_ptr.vmem [resolvable:$true] %s418_s7 }
  0xd0   : > { %s853_s17 = scalar_lea.vmem %s1247_s7, 256  ;;  %s939_s18 = smov [#allocation12]  }
  0xd1   : > { %p854_p12 = scmp.ne.s32.totalorder %s1247_s7, %s853_s17  ;;  %s857_s27 = sshll.u32 %s939_s18, 4  ;;  %s858_s27 = int_to_ptr.vmem [resolvable:$false] %s857_s27 }
  0xd2   : > { %s859_s20 = scalar_lea.vmem %s858_s27, 512  ;;  %p860_p0 = scmp.lt.s32.totalorder %s1247_s7, %s858_s27 }
  0xd3   : > { %p855_p3 = pnand %p854_p12, %p1312_p4  ;;  %p861_p2 = scmp.lt.s32.totalorder %s859_s20, %s853_s17 }
  0xd5   : > { %p856_p13 = pneg %p855_p3  ;;  %p862_p7 = por %p861_p2, %p860_p0 }
  0xd7   : > { %p863_p9 = pnand %p862_p7, %p856_p13 }
 0x14d   : > { %v377_v31 = vpop.xlane.xlu0 %376 }
 0x14e   : > { %v378_v32 = vmax.f32 %v377_v31, 1e-24 }
 0x150   : > { %681 = vrsqrt.f32 %v378_v32 }
 0x15a   : > { %v682_v33 = vpop.eup %681 }
 0x15b   : > { %v380_v34 = vmul.f32 %v682_v33, %v369_v26  ;;  %v381_v35 = vmul.f32 %v682_v33, %v370_v27 }
 0x15d   : > { %382 = vst [vmem:[%s328_s15] sm:$0xff] %v380_v34  ;;  %383 = vst [vmem:[%s328_s15 + $0x8] sm:$0xff] %v381_v35 }
 0x15e   : > { %866 = shalt.err (!%p863_p9)
}
 0x15f   : > { %s867_s12 = scalar_lea.hbm %s1245_s14, 256  ;;  %s871_s8 = scalar_lea.hbm %s1294_s6, 768 }
 0x160   : > { %p868_p10 = scmp.ne.s32.totalorder %s1245_s14, %s867_s12  ;;  %p872_p5 = scmp.lt.u32.totalorder %s1245_s14, %s1294_s6 }
 0x161   : > { %p873_p6 = scmp.lt.u32.totalorder %s871_s8, %s867_s12  ;;  %p875_p12 = scmp.lt.u32.totalorder %s867_s12, %s1245_s14 }
 0x162   : > { %p869_p11 = pnand %p868_p10, %p1312_p4 }
 0x163   : > { %p874_p8 = por %p873_p6, %p872_p5 }
 0x164   : > { %p870_p1 = pneg %p869_p11 }
 0x165   : > { %p876_p3 = por %p875_p12, %p874_p8 }
 0x167   : > { %p877_p13 = pnand %p876_p3, %p870_p1 }
 0x169   : > { %880 = shalt.err (!%p877_p13)
}
 0x16a   : > { %606 = dma.vmem_to_hbm [thread:$0]  (%p1312_p4), %s1247_s7, 256, %s1245_s14, %s390_s29  }
 0x16b PF: > { %p642_p0 = scmp.ge.s32.totalorder %s931_s24, 2  ;;  %s430_s15 = sand.u32 1, %s919_s21  }
 0x16c   : > { %p1313_p2 = scmp.ne.s32.totalorder %s1305_s26, 0  ;;  %s431_s13 = scalar_lea.sflag [#allocation4], %s430_s15 }
 0x16e   : > { %p627_p7 = pnand %p642_p0, %p1313_p2 }
 0x170   : > { %910 = dma.done.wait (!%p627_p7), %s431_s13, 256  }
 0x171   : > { %912 = vsyncadd (!%p627_p7), %s431_s13, 4294967040  ;;  %s440_s19 = scalar_lea.sflag [#allocation13], %s430_s15 }
 0x172   : > { %914 = dma.done.wait (!%p627_p7), %s440_s19, 256  }
 0x173   : > { %916 = vsyncadd (!%p627_p7), %s440_s19, 4294967040  ;;  %p25_p4 = scmp.ge.s32.totalorder %s1117_s9, 5   ;;  %s1314_s21 = smov %s923_s22 }
 0x174   : > { %s1315_s22 = smov %s927_s23  ;;  %s1316_s23 = smov %s1128_s30 }
 0x175   : > { %s1317_s24 = smov %s1117_s9  ;;  %27 = sbr.rel (!%p25_p4) target bundleno = 9 (0x9), region = 118 }
 0x17c   :  { %445 = vsyncpa [#allocation3], 1 }
 0x17d   :  { %447 = vsyncpa [#allocation3 + $0x1], 1 }
 0x17e   :  { %448 = vsyncpa [#allocation6], 1 }
 0x17f   :  { %449 = vsyncpa [#allocation9], 1 }
 0x180   :  { %450 = vsyncpa [#allocation4], 1 }
 0x181   :  { %452 = vsyncpa [#allocation4 + $0x1], 1 }
 0x182   :  { %453 = vsyncpa [#allocation13], 1 }
 0x183   :  { %455 = vsyncpa [#allocation13 + $0x1], 1 }

// kernel: autoenc2_forward_train.29
= control target key start
LH: loop header
LB: loop body
LE: loop exit
PB: predicated region body
PF: predicated region fallthrough
CT: control target
= control target key end

     0   :  { %10 = vsyncpa [#allocation3], 0  ;;  %s1117_s0 = inlined_call_operand.hbm [shape: f32[24,384], index: 0, kind: input, shape index: {}]   ;;  %s1118_s1 = inlined_call_operand.hbm [shape: f32[1,384], index: 1, kind: input, shape index: {}]   ;;  %s1119_s2 = inlined_call_operand.hbm [shape: f32[1,384], index: 2, kind: input, shape index: {}]   ;;  %s1120_s3 = inlined_call_operand.hbm [shape: f32[1,384], index: 3, kind: input, shape index: {}]   ;;  %s1121_s4 = inlined_call_operand.hbm [shape: f32[1,384], index: 4, kind: input, shape index: {}]   ;;  %s1122_s5 = inlined_call_operand.hbm [shape: f32[24,384], index: 5, kind: output, shape index: {}]  }
   0x1   :  { %12 = vsyncpa [#allocation3 + $0x1], 0 }
   0x2   :  { %13 = vsyncpa [#allocation6], 0 }
   0x3   :  { %14 = vsyncpa [#allocation9], 0 }
   0x4   :  { %15 = vsyncpa [#allocation4], 0 }
   0x5   :  { %17 = vsyncpa [#allocation4 + $0x1], 0  ;;  %s835_s18 = smov 0   ;;  %s837_s19 = smov 0  }
   0x6   :  { %s839_s20 = smov 0   ;;  %s841_s21 = smov 0  }
   0x7 LB: > { %s799_s22 = smov [#allocation5]   ;;  %s856_s24 = sadd.s32 4294967295, %s797_s21   ;;  %s797_s21 = sphi %s841_s21, %s1144_s21   ;;  %s793_s20 = sphi %s839_s20, %s1143_s20   ;;  %s789_s19 = sphi %s837_s19, %s1142_s19   ;;  %s785_s18 = sphi %s835_s18, %s1141_s18  }
   0x8   : > { %s177_s23 = sshll.u32 %s799_s22, 4  ;;  %p473_p0 = scmp.ge.s32.totalorder %s797_s21, 1  ;;  %s861_s23 = int_to_ptr.vmem [resolvable:$true] %s177_s23 }
   0x9   : > { %p1123_p1 = scmp.eq.s32.totalorder %s856_s24, 0  ;;  %p164_p2 = scmp.lt.s32.totalorder %s797_s21, 4 }
   0xa   : > { %s800_s26 = smov [#allocation8]   ;;  %s801_s28 = smov [#allocation7]  }
   0xb   : > { %p863_p3 = pnand %p473_p0, %p164_p2  ;;  %s199_s27 = sshll.u32 %s800_s26, 4  ;;  %s869_s27 = int_to_ptr.vmem [resolvable:$true] %s199_s27 }
   0xc   : > { %s188_s29 = sshll.u32 %s801_s28, 4  ;;  %s802_s6 = smov [#allocation10]   ;;  %s877_s29 = int_to_ptr.vmem [resolvable:$true] %s188_s29 }
   0xd   : > { %s1126_s25 = scalar_select %p863_p3, 1, 0 }
   0xe   : > { %p512_p4 = pneg %p863_p3  ;;  %s879_s7 = sshll.u32 %s802_s6, 4  ;;  %s211_s7 = int_to_ptr.vmem [resolvable:$true] %s879_s7 }
   0xf   : > { %s581_s10 = scalar_lea.hbm %s1118_s1, 48 }
  0x10   : > { %p873_p5 = pnand %p512_p4, %p1123_p1  ;;  %p582_p6 = scmp.ne.s32.totalorder %s1118_s1, %s581_s10 }
  0x11   : > { %p588_p10 = scmp.lt.u32.totalorder %s581_s10, %s1118_s1 }
  0x12   : > { %p889_p7 = pneg %p873_p5 }
  0x14   : > { %p584_p8 = pnand %p889_p7, %p582_p6 }
  0x16   : > { %p585_p9 = pneg %p584_p8 }
  0x18   : > { %p590_p11 = pnand %p588_p10, %p585_p9 }
  0x1a   : > { %593 = shalt.err (!%p590_p11)
}
  0x1b   : > { %s594_s16 = scalar_lea.vmem %s861_s23, 48  ;;  %s601_s17 = scalar_lea.vmem %s861_s23, 64 }
  0x1c   : > { %p595_p12 = scmp.ne.s32.totalorder %s861_s23, %s594_s16  ;;  %p602_p2 = scmp.lt.s32.totalorder %s861_s23, %s861_s23 }
  0x1d   : > { %p603_p4 = scmp.lt.s32.totalorder %s601_s17, %s594_s16 }
  0x1e   : > { %p597_p13 = pnand %p595_p12, %p889_p7 }
  0x1f   : > { %p604_p6 = por %p603_p4, %p602_p2 }
  0x20   : > { %p598_p0 = pneg %p597_p13 }
  0x22   : > { %p605_p8 = pnand %p604_p6, %p598_p0 }
  0x24   : > { %608 = shalt.err (!%p605_p8)
}
  0x25   : > { %515 = dma.hbm_to_vmem [thread:$0]  (!%p873_p5), %s1118_s1, 48, %s861_s23, [#allocation6]  }
  0x26   : > { %s609_s8 = scalar_lea.hbm %s1120_s3, 48 }
  0x27   : > { %p610_p9 = scmp.ne.s32.totalorder %s1120_s3, %s609_s8  ;;  %p616_p12 = scmp.lt.u32.totalorder %s609_s8, %s1120_s3 }
  0x29   : > { %p612_p10 = pnand %p610_p9, %p889_p7 }
  0x2b   : > { %p613_p11 = pneg %p612_p10 }
  0x2d   : > { %p618_p13 = pnand %p616_p12, %p613_p11 }
  0x2f   : > { %621 = shalt.err (!%p618_p13)
}
  0x30   : > { %s622_s23 = scalar_lea.vmem %s869_s27, 48  ;;  %s629_s14 = scalar_lea.vmem %s869_s27, 64 }
  0x31   : > { %p623_p0 = scmp.ne.s32.totalorder %s869_s27, %s622_s23  ;;  %p630_p6 = scmp.lt.s32.totalorder %s869_s27, %s869_s27 }
  0x32   : > { %p631_p8 = scmp.lt.s32.totalorder %s629_s14, %s622_s23 }
  0x33   : > { %p625_p2 = pnand %p623_p0, %p889_p7 }
  0x34   : > { %p632_p9 = por %p631_p8, %p630_p6 }
  0x35   : > { %p626_p4 = pneg %p625_p2 }
  0x37   : > { %p633_p10 = pnand %p632_p9, %p626_p4 }
  0x39   : > { %636 = shalt.err (!%p633_p10)
}
  0x3a   : > { %521 = dma.hbm_to_vmem [thread:$0]  (!%p873_p5), %s1120_s3, 48, %s869_s27, [#allocation9]  }
  0x3b   : > { %s637_s26 = scalar_lea.hbm %s1119_s2, 48 }
  0x3c   : > { %p638_p11 = scmp.ne.s32.totalorder %s1119_s2, %s637_s26  ;;  %p644_p0 = scmp.lt.u32.totalorder %s637_s26, %s1119_s2 }
  0x3e   : > { %p640_p12 = pnand %p638_p11, %p889_p7 }
  0x40   : > { %p641_p13 = pneg %p640_p12 }
  0x42   : > { %p646_p2 = pnand %p644_p0, %p641_p13 }
  0x44   : > { %649 = shalt.err (!%p646_p2)
}
  0x45   : > { %s650_s27 = scalar_lea.vmem %s877_s29, 48  ;;  %s657_s10 = scalar_lea.vmem %s877_s29, 64 }
  0x46   : > { %p651_p4 = scmp.ne.s32.totalorder %s877_s29, %s650_s27  ;;  %p658_p9 = scmp.lt.s32.totalorder %s877_s29, %s877_s29 }
  0x47   : > { %p659_p10 = scmp.lt.s32.totalorder %s657_s10, %s650_s27 }
  0x48   : > { %p653_p6 = pnand %p651_p4, %p889_p7 }
  0x49   : > { %p660_p11 = por %p659_p10, %p658_p9 }
  0x4a   : > { %p654_p8 = pneg %p653_p6 }
  0x4c   : > { %p661_p12 = pnand %p660_p11, %p654_p8 }
  0x4e   : > { %664 = shalt.err (!%p661_p12)
}
  0x4f   : > { %518 = dma.hbm_to_vmem [thread:$0]  (!%p873_p5), %s1119_s2, 48, %s877_s29, [#allocation6]  }
  0x50   : > { %s665_s15 = scalar_lea.hbm %s1121_s4, 48 }
  0x51   : > { %p666_p13 = scmp.ne.s32.totalorder %s1121_s4, %s665_s15  ;;  %p672_p4 = scmp.lt.u32.totalorder %s665_s15, %s1121_s4 }
  0x53   : > { %p668_p0 = pnand %p666_p13, %p889_p7 }
  0x55   : > { %p669_p2 = pneg %p668_p0 }
  0x57   : > { %p674_p6 = pnand %p672_p4, %p669_p2 }
  0x59   : > { %677 = shalt.err (!%p674_p6)
}
  0x5a   : > { %s678_s28 = scalar_lea.vmem %s211_s7, 48  ;;  %s685_s29 = scalar_lea.vmem %s211_s7, 64 }
  0x5b   : > { %p679_p8 = scmp.ne.s32.totalorder %s211_s7, %s678_s28  ;;  %p686_p11 = scmp.lt.s32.totalorder %s211_s7, %s211_s7 }
  0x5c   : > { %p687_p12 = scmp.lt.s32.totalorder %s685_s29, %s678_s28 }
  0x5d   : > { %p681_p9 = pnand %p679_p8, %p889_p7 }
  0x5e   : > { %p688_p1 = por %p687_p12, %p686_p11 }
  0x5f   : > { %p682_p10 = pneg %p681_p9 }
  0x61   : > { %p689_p3 = pnand %p688_p1, %p682_p10 }
  0x63   : > { %692 = shalt.err (!%p689_p3)
}
  0x64   : > { %524 = dma.hbm_to_vmem [thread:$0]  (!%p873_p5), %s1121_s4, 48, %s211_s7, [#allocation9]  }
  0x65   : > { %s472_s13 = sadd.s32 4294967294, %s797_s21   ;;  %s980_s30 = sadd.s32 1, %s797_s21  }
  0x66   : > { %s27_s9 = ssub.s32 %s797_s21, %s980_s30  ;;  %s30_s27 = sadd.s32 1, %s793_s20 }
  0x67   : > { %p28_p1 = scmp.eq.s32.totalorder %s27_s9, 0  ;;  %p37_p3 = scmp.ne.s32.totalorder %s793_s20, %s789_s19 }
  0x68   : > { %p38_p7 = scmp.eq.s32.totalorder %s797_s21, 0  ;;  %p43_p13 = scmp.ne.s32.totalorder %s789_s19, %s785_s18 }
  0x69   : > { %s991_s10 = scalar_select %p28_p1, %s793_s20, %s30_s27  }
  0x6a   : > { %p39_p0 = por %p38_p7, %p37_p3  ;;  %p1129_p2 = scmp.eq.s32.totalorder %s856_s24, 0 }
  0x6b   : > { %p151_p5 = scmp.eq.s32.totalorder %s856_s24, 2  ;;  %p157_p6 = scmp.eq.s32.totalorder %s472_s13, 2 }
  0x6c   : > { %p995_p4 = por %p1129_p2, %p43_p13  ;;  %p537_p8 = scmp.lt.s32.totalorder %s797_s21, 3 }
  0x6d   : > { %s221_s7 = sand.u32 1, %s793_s20   ;;  %p1002_p9 = por %p151_p5, %p37_p3 }
  0x6e   : > { %p1006_p10 = por %p157_p6, %p43_p13  ;;  %s488_s14 = smul.u32 24, %s221_s7 }
  0x6f   : > { %s1131_s12 = scalar_select %p1002_p9, 1, 0 }
  0x70   : > { %s1132_s23 = scalar_select %p1006_p10, 1, 0 }
  0x71   : > { %s489_s15 = smul.u32 384, %s797_s21  ;;  %p1011_p11 = pnand %p537_p8, %p39_p0 }
  0x72   : > { %s225_s28 = scalar_lea.vmem [#allocation2], %s488_s14  ;;  %s222_s6 = scalar_lea.sflag [#allocation3], %s221_s7 }
  0x73   : > { %s1018_s26 = scalar_lea.hbm %s1117_s0, %s489_s15  ;;  %s233_s29 = sshll.u32 %s225_s28, 4  ;;  %s1020_s29 = int_to_ptr.vmem [resolvable:$true] %s233_s29 }
  0x74   : > { %s693_s8 = scalar_lea.hbm %s1018_s26, 384  ;;  %p695_p1 = pneg %p1011_p11 }
  0x75   : > { %p694_p12 = scmp.ne.s32.totalorder %s1018_s26, %s693_s8  ;;  %s698_s27 = scalar_lea.hbm %s1117_s0, 1152 }
  0x76   : > { %p699_p13 = scmp.lt.u32.totalorder %s1018_s26, %s1117_s0  ;;  %p700_p0 = scmp.lt.u32.totalorder %s698_s27, %s693_s8 }
  0x77   : > { %p696_p3 = pnand %p695_p1, %p694_p12  ;;  %p702_p5 = scmp.lt.u32.totalorder %s693_s8, %s1018_s26 }
  0x78   : > { %p701_p2 = por %p700_p0, %p699_p13 }
  0x79   : > { %p697_p7 = pneg %p696_p3 }
  0x7a   : > { %p703_p6 = por %p702_p5, %p701_p2 }
  0x7c   : > { %p704_p8 = pnand %p703_p6, %p697_p7 }
  0x7e   : > { %707 = shalt.err (!%p704_p8)
}
  0x7f   : > { %s708_s7 = scalar_lea.vmem %s1020_s29, 384  ;;  %s803_s14 = smov [#allocation2]  }
  0x80   : > { %p709_p12 = scmp.ne.s32.totalorder %s1020_s29, %s708_s7  ;;  %s713_s22 = sshll.u32 %s803_s14, 4  ;;  %s714_s22 = int_to_ptr.vmem [resolvable:$false] %s713_s22 }
  0x81   : > { %s715_s28 = scalar_lea.vmem %s714_s22, 768  ;;  %p716_p9 = scmp.lt.s32.totalorder %s1020_s29, %s714_s22 }
  0x82   : > { %p711_p3 = pnand %p709_p12, %p695_p1  ;;  %p717_p13 = scmp.lt.s32.totalorder %s715_s28, %s708_s7 }
  0x84   : > { %p712_p10 = pneg %p711_p3  ;;  %p718_p0 = por %p717_p13, %p716_p9 }
  0x86   : > { %p719_p2 = pnand %p718_p0, %p712_p10 }
  0x88   : > { %722 = shalt.err (!%p719_p2)
}
  0x89   : > { %528 = dma.hbm_to_vmem [thread:$0]  (!%p1011_p11), %s1018_s26, 384, %s1020_s29, %s222_s6  }
  0x8a   : > { %p1134_p7 = scmp.ne.s32.totalorder %s1126_s25, 0 }
  0x8b   : > { %s1050_s8 = sand.u32 (!%p1134_p7), 1, %s789_s19  }
  0x8c   : > { %242 = sbr.rel (%p1134_p7) target bundleno = 201 (0xc9), region = 40  ;;  %s245_s9 = scalar_lea.sflag (!%p1134_p7), [#allocation3], %s1050_s8 }
  0x8d   : > { %s490_s13 = smul.u32 (!%p1134_p7), 24, %s1050_s8 }
  0x8f   : > { %s248_s27 = scalar_lea.vmem (!%p1134_p7), [#allocation2], %s490_s13 }
  0x93   : > { %768 = dma.done.wait (%p995_p4), %s245_s9, 384  }
  0x94   : > { %770 = vsyncadd (%p995_p4), %s245_s9, 4294966912  ;;  %p1135_p9 = scmp.eq.s32.totalorder %s856_s24, 0 }
  0x96   : > { %772 = dma.done.wait (%p1135_p9), [#allocation6], 96   ;;  %p1136_p10 = pmov %p1135_p9 }
  0x97   : > { %p1137_p11 = pmov %p1135_p9 }
  0x98   : > { %774 = vsyncadd (%p1136_p10), [#allocation6], 4294967200 }
  0x99   : > { %776 = dma.done.wait (%p1137_p11), [#allocation9], 96   ;;  %p1138_p1 = pmov %p1135_p9 }
  0x9a   : > { %v291_v0 = vld [vmem:[#allocation5] sm:$0x7]  ;;  %v293_v1 = vld [vmem:[#allocation7] sm:$0x7]  ;;  %v309_v8 = vlaneseq  ;;  %v300_v10 = vld [vmem:[#allocation8] sm:$0x7] }
  0x9b   : > { %778 = vsyncadd (%p1138_p1), [#allocation9], 4294967200  ;;  %v292_v2 = vmul.f32 0.041666668, %v291_v0  ;;  %v294_v3 = vmul.f32 0.041666668, %v293_v1 }
  0x9c   : > { %v310_v9 = vshrl.u32 %v309_v8, 7  ;;  %v302_v16 = vld [vmem:[#allocation10] sm:$0x7]  ;;  %v306_v18 = vld [vmem:[%s248_s27 + $0x8] sm:$0xff]  ;;  %v307_v19 = vld [vmem:[%s248_s27 + $0x10] sm:$0xff]  ;;  %s491_s25 = smul.u32 384, %s856_s24 }
  0x9d   : > { %v295_v4 = vmul.f32 %v292_v2, %v292_v2  ;;  %v305_v17 = vld [vmem:[%s248_s27] sm:$0xff]  ;;  %s290_s11 = scalar_lea.vmem [#allocation11], %s490_s13  ;;  %s350_s24 = scalar_lea.sflag [#allocation4], %s1050_s8 }
  0x9e   : > { %v311_v11 = vsub.s32 0, %v310_v9  ;;  %v315_v12 = vsub.s32 1, %v310_v9  ;;  %v319_v13 = vsub.s32 2, %v310_v9  ;;  %s364_s16 = sshll.u32 %s290_s11, 4  ;;  %s1076_s6 = scalar_lea.hbm %s1122_s5, %s491_s25  ;;  %s1071_s16 = int_to_ptr.vmem [resolvable:$true] %s364_s16 }
  0x9f   : > { %v296_v5 = vsub.f32 %v294_v3, %v295_v4  ;;  %s723_s15 = scalar_lea.vmem %s1071_s16, 384  ;;  %p1139_p5 = scmp.ne.s32.totalorder %s1131_s12, 0 }
  0xa0   : > { %p724_p4 = scmp.ne.s32.totalorder %s1071_s16, %s723_s15  ;;  %s804_s17 = smov [#allocation11]  }
  0xa1   : > { %v297_v6 = vmax.f32 %v296_v5, 0.0  ;;  %s727_s7 = sshll.u32 %s804_s17, 4  ;;  %s728_s7 = int_to_ptr.vmem [resolvable:$false] %s727_s7 }
  0xa2   : > { %p725_p6 = pnand %p724_p4, %p1139_p5  ;;  %s729_s14 = scalar_lea.vmem %s728_s7, 768 }
  0xa3   : > { %v298_v7 = vadd.f32 1e-05, %v297_v6  ;;  %p730_p12 = scmp.lt.s32.totalorder %s1071_s16, %s728_s7  ;;  %p731_p3 = scmp.lt.s32.totalorder %s729_s14, %s723_s15 }
  0xa4   : > { %p726_p8 = pneg %p725_p6 }
  0xa5   : > { %579 = vrsqrt.f32 %v298_v7  ;;  %p732_p13 = por %p731_p3, %p730_p12 }
  0xa7   : > { %p733_p0 = pnand %p732_p13, %p726_p8 }
  0xaf   : > { %v580_v14 = vpop.eup %579 }
  0xb0   : > { %v301_v15 = vmul.f32 %v580_v14, %v300_v10 }
  0xb2   : > { %v303_v20 = vmul.f32 %v301_v15, %v292_v2  ;;  %v312_v21 = vrot.slane %v301_v15, %v311_v11  ;;  %v316_v22 = vrot.slane %v301_v15, %v315_v12  ;;  %v320_v23 = vrot.slane %v301_v15, %v319_v13 }
  0xb4   : > { %v304_v24 = vsub.f32 %v302_v16, %v303_v20  ;;  %v324_v25 = vmul.f32 %v312_v21, %v305_v17  ;;  %v325_v26 = vmul.f32 %v316_v22, %v306_v18  ;;  %v326_v27 = vmul.f32 %v320_v23, %v307_v19 }
  0xb6   : > { %v331_v28 = vrot.slane %v304_v24, %v311_v11  ;;  %v335_v29 = vrot.slane %v304_v24, %v315_v12  ;;  %v339_v30 = vrot.slane %v304_v24, %v319_v13 }
  0xb8   : > { %v343_v31 = vadd.f32 %v331_v28, %v324_v25  ;;  %v344_v32 = vadd.f32 %v335_v29, %v325_v26  ;;  %v345_v33 = vadd.f32 %v339_v30, %v326_v27 }
  0xba   : > { %346 = vst [vmem:[%s290_s11] sm:$0xff] %v343_v31  ;;  %347 = vst [vmem:[%s290_s11 + $0x8] sm:$0xff] %v344_v32 }
  0xbb   : > { %348 = vst [vmem:[%s290_s11 + $0x10] sm:$0xff] %v345_v33 }
  0xbc   : > { %736 = shalt.err (!%p733_p0)
}
  0xbd   : > { %s737_s22 = scalar_lea.hbm %s1076_s6, 384  ;;  %s741_s13 = scalar_lea.hbm %s1122_s5, 1152 }
  0xbe   : > { %p738_p2 = scmp.ne.s32.totalorder %s1076_s6, %s737_s22  ;;  %p742_p10 = scmp.lt.u32.totalorder %s1076_s6, %s1122_s5 }
  0xbf   : > { %p743_p11 = scmp.lt.u32.totalorder %s741_s13, %s737_s22  ;;  %p745_p4 = scmp.lt.u32.totalorder %s737_s22, %s1076_s6 }
  0xc0   : > { %p739_p7 = pnand %p738_p2, %p1139_p5 }
  0xc1   : > { %p744_p1 = por %p743_p11, %p742_p10 }
  0xc2   : > { %p740_p9 = pneg %p739_p7 }
  0xc3   : > { %p746_p6 = por %p745_p4, %p744_p1 }
  0xc5   : > { %p747_p8 = pnand %p746_p6, %p740_p9 }
  0xc7   : > { %750 = shalt.err (!%p747_p8)
}
  0xc8   : > { %510 = dma.vmem_to_hbm [thread:$0]  (%p1139_p5), %s1071_s16, 384, %s1076_s6, %s350_s24  }
  0xc9 PF: > { %p542_p12 = scmp.ge.s32.totalorder %s797_s21, 2  ;;  %s376_s25 = sand.u32 1, %s785_s18  }
  0xca   : > { %p1140_p3 = scmp.ne.s32.totalorder %s1132_s23, 0  ;;  %s377_s11 = scalar_lea.sflag [#allocation4], %s376_s25 }
  0xcc   : > { %p530_p13 = pnand %p542_p12, %p1140_p3 }
  0xce   : > { %780 = dma.done.wait (!%p530_p13), %s377_s11, 384  }
  0xcf   : > { %782 = vsyncadd (!%p530_p13), %s377_s11, 4294966912  ;;  %p20_p0 = scmp.ge.s32.totalorder %s980_s30, 5   ;;  %s1141_s18 = smov %s789_s19 }
  0xd0   : > { %s1142_s19 = smov %s793_s20  ;;  %s1143_s20 = smov %s991_s10 }
  0xd1   : > { %s1144_s21 = smov %s980_s30  ;;  %22 = sbr.rel (!%p20_p0) target bundleno = 7 (0x7), region = 101 }
  0xd8   :  { %382 = vsyncpa [#allocation3], 1 }
  0xd9   :  { %384 = vsyncpa [#allocation3 + $0x1], 1 }
  0xda   :  { %385 = vsyncpa [#allocation6], 1 }
  0xdb   :  { %386 = vsyncpa [#allocation9], 1 }
  0xdc   :  { %387 = vsyncpa [#allocation4], 1 }
  0xdd   :  { %389 = vsyncpa [#allocation4 + $0x1], 1 }

// kernel: autoenc2_forward_train.22
= control target key start
LH: loop header
LB: loop body
LE: loop exit
PB: predicated region body
PF: predicated region fallthrough
CT: control target
= control target key end

     0   :  { %s1740_s0 = inlined_call_operand.hbm [shape: f32[24,384], index: 0, kind: input, shape index: {}]   ;;  %s1741_s1 = inlined_call_operand.hbm [shape: bf16[384,256], index: 1, kind: input, shape index: {}]   ;;  %s1742_s2 = inlined_call_operand.hbm [shape: f32[1,256], index: 2, kind: input, shape index: {}]   ;;  %s1743_s3 = inlined_call_operand.hbm [shape: f32[24,256], index: 3, kind: output, shape index: {0}]   ;;  %s1744_s4 = inlined_call_operand.hbm [shape: f32[1,256], index: 4, kind: output, shape index: {1}]   ;;  %s1745_s5 = inlined_call_operand.hbm [shape: f32[1,256], index: 5, kind: output, shape index: {2}]  }
   0x1   :  { %1762 = sst [smem:[#allocation25_spill]] %s1740_s0 }
   0x2   :  { %1763 = sst [smem:[#allocation26_spill]] %s1742_s2 }
   0x3   :  { %1764 = sst [smem:[#allocation27_spill]] %s1743_s3 }
   0x4   :  { %1765 = sst [smem:[#allocation28_spill]] %s1744_s4 }
   0x5   :  { %1766 = sst [smem:[#allocation29_spill]] %s1745_s5 }
   0x6   :  { %11 = vsyncpa [#allocation4], 0 }
   0x7   :  { %13 = vsyncpa [#allocation4 + $0x1], 0 }
   0x8   :  { %14 = vsyncpa [#allocation7], 0 }
   0x9   :  { %16 = vsyncpa [#allocation7 + $0x1], 0 }
   0xa   :  { %17 = vsyncpa [#allocation5], 0 }
   0xb   :  { %19 = vsyncpa [#allocation5 + $0x1], 0 }
   0xc   :  { %20 = vsyncpa [#allocation11], 0  ;;  %s1311_s18 = smov 0   ;;  %s1313_s19 = smov 0  }
   0xd   :  { %s1315_s20 = smov 0   ;;  %s1317_s21 = smov 0  }
   0xe   :  { %s1319_s22 = smov 0   ;;  %s1321_s23 = smov 0  }
   0xf   :  { %s1323_s24 = smov 0   ;;  %s1325_s25 = smov 0  }
  0x10   :  { %s1327_s26 = smov 0   ;;  %s1329_s27 = smov 0  }
  0x11   :  { %s1331_s28 = smov 0   ;;  %s1333_s29 = smov 0  }
  0x12   :  { %s1335_s30 = smov 0   ;;  %s1337_s6 = smov 0  }
  0x13 LB: > { %1767 = sst [smem:[#allocation18_spill]] %s1215_s18  ;;  %s1378_s7 = sadd.s32 4294967295, %s1267_s6   ;;  %s1267_s6 = sphi %s1337_s6, %s26_s6   ;;  %s1263_s30 = sphi %s1335_s30, %s1831_s30   ;;  %s1259_s29 = sphi %s1333_s29, %s1830_s29   ;;  %s1255_s28 = sphi %s1331_s28, %s1829_s28   ;;  %s1251_s27 = sphi %s1329_s27, %s1828_s27   ;;  %s1247_s26 = sphi %s1327_s26, %s1827_s26   ;;  %s1243_s25 = sphi %s1325_s25, %s1826_s25   ;;  %s1239_s24 = sphi %s1323_s24, %s1825_s24   ;;  %s1235_s23 = sphi %s1321_s23, %s1824_s23   ;;  %s1231_s22 = sphi %s1319_s22, %s1823_s22   ;;  %s1227_s21 = sphi %s1317_s21, %s1822_s21   ;;  %s1223_s20 = sphi %s1315_s20, %s1821_s20   ;;  %s1219_s19 = sphi %s1313_s19, %s1820_s19   ;;  %s1215_s18 = sphi %s1311_s18, %s1819_s18  }
  0x14   : > { %1768 = sst [smem:[#allocation19_spill]] %s1219_s19  ;;  %s736_s8 = sadd.s32 4294967294, %s1267_s6  }
  0x15   : > { %1769 = sst [smem:[#allocation20_spill]] %s1251_s27  ;;  %p60_p0 = scmp.ne.s32.totalorder %s1243_s25, %s1239_s24 }
  0x16   : > { %1770 = sst [smem:[#allocation21_spill]] %s1255_s28  ;;  %p1750_p1 = scmp.eq.s32.totalorder %s1378_s7, 0 }
  0x17   : > { %p86_p3 = scmp.ne.s32.totalorder %s1231_s22, %s1227_s21  ;;  %p130_p6 = scmp.ne.s32.totalorder %s1223_s20, %s1219_s19 }
  0x18   : > { %p1388_p4 = por %p1750_p1, %p60_p0  ;;  %p1748_p7 = scmp.eq.s32.totalorder %s1378_s7, 8 }
  0x19   : > { %p1395_p5 = por %p86_p3, %p1750_p1  ;;  %p136_p8 = scmp.ne.s32.totalorder %s1219_s19, %s1215_s18 }
  0x1a   : > { %s1771_s9 = scalar_select %p1388_p4, 1, 0 }
  0x1b   : > { %s1772_s11 = scalar_select %p1395_p5, 1, 0 }
  0x1c   : > { %p137_p9 = scmp.eq.s32.totalorder %s736_s8, 8  ;;  %p737_p10 = scmp.ge.s32.totalorder %s1267_s6, 1 }
  0x1d   : > { %p1407_p11 = por %p1748_p7, %p130_p6  ;;  %p186_p12 = scmp.lt.s32.totalorder %s1267_s6, 10 }
  0x1e   : > { %p1412_p13 = por %p137_p9, %p136_p8  ;;  %s1269_s15 = smov [#allocation8]  }
  0x1f   : > { %s1773_s12 = scalar_select %p1407_p11, 1, 0 }
  0x20   : > { %s1775_s13 = scalar_select %p1412_p13, 1, 0 }
  0x21   : > { %1774 = sst [smem:[#allocation22_spill]] %s1773_s12  ;;  %p1416_p0 = pnand %p737_p10, %p186_p12 }
  0x22   : > { %1776 = sst [smem:[#allocation23_spill]] %s1775_s13  ;;  %s199_s16 = sshll.u32 %s1269_s15, 4  ;;  %s200_s16 = int_to_ptr.vmem [resolvable:$true] %s199_s16 }
  0x23   : > { %s1777_s14 = scalar_select %p1416_p0, 1, 0 }
  0x24   : > { %p801_p3 = pneg %p1416_p0  ;;  %s1779_s2 = sld [smem:[#allocation26_spill]] }
  0x26   : > { %p1424_p6 = pnand %p801_p3, %p1750_p1 }
  0x28   : > { %p971_p9 = pneg %p1424_p6 }
  0x2a   : > { %s969_s8 = scalar_lea.hbm %s1779_s2, 32 }
  0x2b   : > { %p970_p8 = scmp.ne.s32.totalorder %s1779_s2, %s969_s8  ;;  %p976_p3 = scmp.lt.u32.totalorder %s969_s8, %s1779_s2 }
  0x2d   : > { %p972_p10 = pnand %p971_p9, %p970_p8 }
  0x2f   : > { %p973_p12 = pneg %p972_p10 }
  0x31   : > { %p978_p7 = pnand %p976_p3, %p973_p12 }
  0x33   : > { %981 = shalt.err (!%p978_p7)
}
  0x34   : > { %s982_s5 = scalar_lea.vmem %s200_s16, 32  ;;  %p990_p11 = scmp.lt.s32.totalorder %s200_s16, %s200_s16 }
  0x35   : > { %p983_p1 = scmp.ne.s32.totalorder %s200_s16, %s982_s5  ;;  %p991_p5 = scmp.lt.s32.totalorder %s982_s5, %s982_s5 }
  0x37   : > { %p985_p2 = pnand %p983_p1, %p971_p9  ;;  %p992_p4 = por %p991_p5, %p990_p11 }
  0x39   : > { %p986_p13 = pneg %p985_p2 }
  0x3b   : > { %p993_p0 = pnand %p992_p4, %p986_p13 }
  0x3d   : > { %996 = shalt.err (!%p993_p0)
}
  0x3e   : > { %804 = dma.hbm_to_vmem [thread:$0]  (!%p1424_p6), %s1779_s2, 32, %s200_s16, [#allocation7]  }
  0x3f   : > { %s35_s5 = sadd.s32 1, %s1259_s29  ;;  %s38_s18 = sadd.s32 1, %s1263_s30 }
  0x40   : > { %p36_p1 = scmp.ge.s32.totalorder %s35_s5, 3  ;;  %s47_s17 = sadd.s32 1, %s1247_s26 }
  0x41   : > { %p54_p2 = scmp.ne.s32.totalorder %s1247_s26, %s1243_s25  ;;  %p55_p4 = scmp.eq.s32.totalorder %s1267_s6, 0 }
  0x42   : > { %s1833_s5 = smov (%p36_p1, %s35_s5), 0  ;;  %s1835_s18 = smov (!%p36_p1, %s38_s18), %s1263_s30 }
  0x43   : > { %1780 = sst [smem:[#allocation24_spill]] %s1833_s5  ;;  %s43_s21 = ssub.s32 %s1259_s29, %s1833_s5 }
  0x44   : > { %p1455_p5 = por %p55_p4, %p54_p2  ;;  %p40_p7 = scmp.ge.s32.totalorder %s1835_s18, 3 }
  0x45   : > { %p71_p11 = scmp.eq.s32.totalorder %s43_s21, 0  ;;  %s73_s24 = sadd.s32 1, %s1235_s23 }
  0x46   : > { %p1782_p13 = scmp.ne.s32.totalorder %s1235_s23, %s1231_s22  ;;  %s1837_s18 = smov (%p40_p7, %s1835_s18), 0 }
  0x47   : > { %s1470_s15 = scalar_select %p71_p11, %s1235_s23, %s73_s24  }
  0x48   : > { %p1463_p0 = por %p1782_p13, %p55_p4  ;;  %s42_s10 = ssub.s32 %s1263_s30, %s1837_s18 }
  0x49   : > { %p817_p6 = scmp.lt.s32.totalorder %s1267_s6, 9  ;;  %s44_s13 = sor.u32 %s43_s21, %s42_s10 }
  0x4a   : > { %p118_p8 = scmp.eq.s32.totalorder %s42_s10, 0  ;;  %p45_p9 = scmp.eq.s32.totalorder %s44_s13, 0 }
  0x4b   : > { %s210_s2 = sand.u32 1, %s1247_s26   ;;  %s1784_s5 = sadd.s32 1, %s1223_s20 }
  0x4c   : > { %s1479_s3 = scalar_select %p118_p8, %s1223_s20, %s1784_s5  }
  0x4d   : > { %s1482_s12 = scalar_select %p45_p9, %s1247_s26, %s47_s17  }
  0x4e   : > { %s740_s4 = sshll.u32 %s210_s2, 3  ;;  %s782_s28 = smul.u32 3, %s1263_s30 }
  0x4f   : > { %s214_s27 = scalar_lea.vmem [#allocation3], %s740_s4  ;;  %p1489_p10 = pnand %p817_p6, %p1455_p5 }
  0x50   : > { %s223_s19 = sshll.u32 %s214_s27, 4  ;;  %s219_s21 = sadd.s32 %s1259_s29, %s782_s28  ;;  %s1494_s19 = int_to_ptr.vmem [resolvable:$true] %s223_s19 }
  0x51   : > { %s741_s10 = sshll.u32 %s219_s21, 7  ;;  %s1786_s0 = sld [smem:[#allocation25_spill]] }
  0x52   : > { %p1505_p12 = pnand %p817_p6, %p1463_p0  ;;  %s211_s27 = scalar_lea.sflag [#allocation4], %s210_s2 }
  0x53   : > { %p999_p1 = pneg %p1489_p10 }
  0x57   : > { %s1499_s17 = scalar_lea.hbm %s1786_s0, %s741_s10  ;;  %s1002_s21 = scalar_lea.hbm %s1786_s0, 1152 }
  0x58   : > { %s997_s28 = scalar_lea.hbm %s1499_s17, 128  ;;  %p1003_p5 = scmp.lt.u32.totalorder %s1499_s17, %s1786_s0 }
  0x59   : > { %p998_p3 = scmp.ne.s32.totalorder %s1499_s17, %s997_s28  ;;  %p1004_p7 = scmp.lt.u32.totalorder %s1002_s21, %s997_s28 }
  0x5a   : > { %p1006_p13 = scmp.lt.u32.totalorder %s997_s28, %s1499_s17 }
  0x5b   : > { %p1000_p2 = pnand %p999_p1, %p998_p3  ;;  %p1005_p11 = por %p1004_p7, %p1003_p5 }
  0x5d   : > { %p1001_p4 = pneg %p1000_p2  ;;  %p1007_p0 = por %p1006_p13, %p1005_p11 }
  0x5f   : > { %p1008_p6 = pnand %p1007_p0, %p1001_p4 }
  0x61   : > { %1011 = shalt.err (!%p1008_p6)
}
  0x62   : > { %s1012_s2 = scalar_lea.vmem %s1494_s19, 128  ;;  %s1270_s13 = smov [#allocation3]  }
  0x63   : > { %p1013_p8 = scmp.ne.s32.totalorder %s1494_s19, %s1012_s2  ;;  %s1017_s16 = sshll.u32 %s1270_s13, 4  ;;  %s1018_s16 = int_to_ptr.vmem [resolvable:$false] %s1017_s16 }
  0x64   : > { %s1019_s8 = scalar_lea.vmem %s1018_s16, 256  ;;  %p1020_p2 = scmp.lt.s32.totalorder %s1494_s19, %s1018_s16 }
  0x65   : > { %p1015_p9 = pnand %p1013_p8, %p999_p1  ;;  %p1021_p5 = scmp.lt.s32.totalorder %s1019_s8, %s1012_s2 }
  0x67   : > { %p1016_p3 = pneg %p1015_p9  ;;  %p1022_p7 = por %p1021_p5, %p1020_p2 }
  0x69   : > { %p1023_p11 = pnand %p1022_p7, %p1016_p3 }
  0x6b   : > { %1026 = shalt.err (!%p1023_p11)
}
  0x6c   : > { %808 = dma.hbm_to_vmem [thread:$0]  (!%p1489_p10), %s1499_s17, 128, %s1494_s19, %s211_s27  }
  0x6d   : > { %s230_s28 = sand.u32 1, %s1267_s6   ;;  %s232_s21 = sand.u32 1, %s1235_s23  }
  0x6e   : > { %s742_s10 = sshll.u32 %s232_s21, 7  ;;  %s780_s5 = sshll.u32 %s1259_s29, 11 }
  0x6f   : > { %s1540_s2 = scalar_lea.hbm %s1741_s1, %s780_s5  ;;  %s234_s24 = scalar_lea.vmem [#allocation6], %s742_s10 }
  0x70   : > { %s242_s8 = sshll.u32 %s234_s24, 4  ;;  %s1544_s0 = scalar_lea.sflag [#allocation7], %s230_s28  ;;  %s1542_s8 = int_to_ptr.vmem [resolvable:$true] %s242_s8 }
  0x71   : > { %s1027_s19 = scalar_lea.hbm %s1540_s2, 2048  ;;  %p1029_p1 = pneg %p1505_p12 }
  0x72   : > { %p1028_p10 = scmp.ne.s32.totalorder %s1540_s2, %s1027_s19  ;;  %s1032_s21 = scalar_lea.hbm %s1741_s1, 6144 }
  0x73   : > { %p1033_p0 = scmp.lt.u32.totalorder %s1540_s2, %s1741_s1  ;;  %p1034_p6 = scmp.lt.u32.totalorder %s1032_s21, %s1027_s19 }
  0x74   : > { %p1030_p4 = pnand %p1029_p1, %p1028_p10  ;;  %p1036_p9 = scmp.lt.u32.totalorder %s1027_s19, %s1540_s2 }
  0x75   : > { %p1035_p8 = por %p1034_p6, %p1033_p0 }
  0x76   : > { %p1031_p13 = pneg %p1030_p4 }
  0x77   : > { %p1037_p3 = por %p1036_p9, %p1035_p8 }
  0x79   : > { %p1038_p2 = pnand %p1037_p3, %p1031_p13 }
  0x7b   : > { %1041 = shalt.err (!%p1038_p2)
}
  0x7c   : > { %s1042_s28 = scalar_lea.vmem %s1542_s8, 2048  ;;  %s1271_s10 = smov [#allocation6]  }
  0x7d   : > { %p1043_p5 = scmp.ne.s32.totalorder %s1542_s8, %s1042_s28  ;;  %s1047_s16 = sshll.u32 %s1271_s10, 4  ;;  %s1048_s16 = int_to_ptr.vmem [resolvable:$false] %s1047_s16 }
  0x7e   : > { %s1049_s24 = scalar_lea.vmem %s1048_s16, 4096  ;;  %p1050_p10 = scmp.lt.s32.totalorder %s1542_s8, %s1048_s16 }
  0x7f   : > { %p1045_p7 = pnand %p1043_p5, %p1029_p1  ;;  %p1051_p4 = scmp.lt.s32.totalorder %s1049_s24, %s1042_s28 }
  0x81   : > { %p1046_p11 = pneg %p1045_p7  ;;  %p1052_p0 = por %p1051_p4, %p1050_p10 }
  0x83   : > { %p1053_p6 = pnand %p1052_p0, %p1046_p11 }
  0x85   : > { %1056 = shalt.err (!%p1053_p6)
}
  0x86   : > { %s1272_s19 = smov 128   ;;  %s1273_s17 = smov 8  }
  0x87   : > { %811 = dma.hbm_to_vmem [thread:$0]  (!%p1505_p12), %s1540_s2, 2048, %s1542_s8, %s1544_s0, %s1272_s19, %s1272_s19, %s1273_s17  }
  0x88   : > { %p1788_p1 = scmp.ne.s32.totalorder %s1777_s14, 0 }
  0x89   : > { %s256_s27 = sand.u32 (!%p1788_p1), 1, %s1243_s25   ;;  %p1789_p13 = scmp.ne.s32.totalorder (!%p1788_p1), %s1771_s9, 0 }
  0x8a   : > { %254 = sbr.rel (%p1788_p1) target bundleno = 541 (0x21d), region = 32  ;;  %s1575_s21 = sshll.u32 (!%p1788_p1), %s256_s27, 3 }
  0x8b   : > { %s257_s5 = scalar_lea.sflag (!%p1788_p1), [#allocation4], %s256_s27  ;;  %s260_s13 = scalar_lea.vmem (!%p1788_p1), [#allocation3], %s1575_s21 }
  0x91   : > { %1194 = dma.done.wait (%p1789_p13), %s257_s5, 128  }
  0x92   : > { %1196 = vsyncadd (%p1789_p13), %s257_s5, 4294967168  ;;  %s265_s0 = sand.u32 1, %s1378_s7   ;;  %s267_s4 = sand.u32 1, %s1231_s22  }
  0x93   : > { %s748_s14 = sshll.u32 %s267_s4, 7  ;;  %s266_s2 = scalar_lea.sflag [#allocation7], %s265_s0 }
  0x94   : > { %s1584_s8 = scalar_lea.vmem [#allocation6], %s748_s14  ;;  %p1790_p12 = scmp.ne.s32.totalorder %s1772_s11, 0 }
  0x96   : > { %1198 = dma.done.wait (%p1790_p12), %s266_s2, 2048  }
  0x97   : > { %1200 = vsyncadd (%p1790_p12), %s266_s2, 4294965248  ;;  %p1791_p8 = scmp.eq.s32.totalorder %s1378_s7, 0 }
  0x99   : > { %1202 = dma.done.wait (%p1791_p8), [#allocation7], 32   ;;  %p1792_p9 = pmov %p1791_p8 }
  0x9a   : > { %s1793_s9 = sld [smem:[#allocation19_spill]]  ;;  %s1794_s24 = sld [smem:[#allocation20_spill]] }
  0x9b   : > { %1204 = vsyncadd (%p1792_p9), [#allocation7], 4294967264 }
  0xa0   : > { %s298_s28 = sand.u32 1, %s1793_s9   ;;  %p751_p3 = scmp.ne.s32.totalorder %s1794_s24, 0 }
  0xa1   : > { %s750_s10 = sshll.u32 %s298_s28, 4  ;;  %v1274_v0 = vmov (!%p751_p3), 0.0  }
  0xa2   : > { %s1597_s16 = scalar_lea.vmem [#allocation9], %s750_s10  ;;  %310 = sbr.rel (%p751_p3) target bundleno = 169 (0xa9), region = 48  ;;  %311 = vst [vmem:[#allocation2] sm:$0xff] (!%p751_p3), %v1274_v0  ;;  %312 = vst [vmem:[#allocation2 + $0x8] sm:$0xff] (!%p751_p3), %v1274_v0 }
  0xa9 PF: > { %v945_v1 = vld [vmem:[%s1584_s8 + $0x4] ss:$8 sps:$4 sm:$0xff]   ;;  %v947_v2 = vld [vmem:[%s1584_s8] ss:$8 sps:$4 sm:$0xff]   ;;  %v1275_v3 = vmov 0   ;;  %v315_v18 = vld [vmem:[%s260_s13] sm:$0xff] }
  0xaa   : > { %445 = vmatprep.mubr.bf16.mxu0 %v1275_v3  ;;  %413 = vmatprep.subr.bf16.mxu0 %v945_v1  ;;  %v948_v4 = vld [vmem:[%s1584_s8 + $0x14] ss:$8 sps:$4 sm:$0xff]   ;;  %v950_v5 = vld [vmem:[%s1584_s8 + $0x10] ss:$8 sps:$4 sm:$0xff]   ;;  %v951_v6 = vld [vmem:[%s1584_s8 + $0x24] ss:$8 sps:$4 sm:$0xff]   ;;  %v316_v19 = vpack.c.bf16 %v315_v18, %v315_v18 }
  0xab   : > { %414 = vmatpush1.bf16.msra.mxu0 %v947_v2  ;;  %v953_v7 = vld [vmem:[%s1584_s8 + $0x20] ss:$8 sps:$4 sm:$0xff]   ;;  %v954_v8 = vld [vmem:[%s1584_s8 + $0x34] ss:$8 sps:$4 sm:$0xff]   ;;  %v956_v9 = vld [vmem:[%s1584_s8 + $0x30] ss:$8 sps:$4 sm:$0xff]  }
  0xac   : > { %415 = vmatprep.subr.bf16.mxu0 %v948_v4  ;;  %v957_v10 = vld [vmem:[%s1584_s8 + $0x44] ss:$8 sps:$4 sm:$0xff]   ;;  %v959_v11 = vld [vmem:[%s1584_s8 + $0x40] ss:$8 sps:$4 sm:$0xff]   ;;  %v960_v12 = vld [vmem:[%s1584_s8 + $0x54] ss:$8 sps:$4 sm:$0xff]  }
  0xad   : > { %v962_v13 = vld [vmem:[%s1584_s8 + $0x50] ss:$8 sps:$4 sm:$0xff]   ;;  %v963_v14 = vld [vmem:[%s1584_s8 + $0x64] ss:$8 sps:$4 sm:$0xff]   ;;  %v965_v15 = vld [vmem:[%s1584_s8 + $0x60] ss:$8 sps:$4 sm:$0xff]  }
  0xae   : > { %v966_v16 = vld [vmem:[%s1584_s8 + $0x74] ss:$8 sps:$4 sm:$0xff]   ;;  %v968_v17 = vld [vmem:[%s1584_s8 + $0x70] ss:$8 sps:$4 sm:$0xff]   ;;  %v313_v20 = vld [vmem:[#allocation2] sm:$0xff]  ;;  %s1795_s11 = sld [smem:[#allocation20_spill]] }
  0xaf   : > { %416 = vmatpush1.bf16.msra.mxu0 %v950_v5  ;;  %v314_v21 = vld [vmem:[#allocation2 + $0x8] sm:$0xff] }
  0xb0   : > { %417 = vmatprep.subr.bf16.mxu0 %v951_v6 }
  0xb3   : > { %418 = vmatpush1.bf16.msra.mxu0 %v953_v7 }
  0xb4   : > { %419 = vmatprep.subr.bf16.mxu0 %v954_v8  ;;  %p768_p2 = scmp.ne.s32.totalorder %s1795_s11, 2 }
  0xb5   : > { %v466_v28 = vlaneseq (!%p768_p2)  ;;  %v464_v30 = vld [vmem:[#allocation8] sm:$0x3] (!%p768_p2)  ;;  %s1796_s19 = sld [smem:[#allocation21_spill]] (!%p768_p2) }
  0xb7   : > { %420 = vmatpush1.bf16.msra.mxu0 %v956_v9  ;;  %v467_v29 = vshrl.u32 (!%p768_p2), %v466_v28, 7 }
  0xb8   : > { %421 = vmatprep.subr.bf16.mxu0 %v957_v10 }
  0xb9   : > { %v468_v31 = vsub.s32 (!%p768_p2), 0, %v467_v29  ;;  %v472_v32 = vsub.s32 (!%p768_p2), 1, %v467_v29 }
  0xbb   : > { %422 = vmatpush1.bf16.msra.mxu0 %v959_v11  ;;  %v469_v35 = vrot.slane (!%p768_p2), %v464_v30, %v468_v31  ;;  %v473_v36 = vrot.slane (!%p768_p2), %v464_v30, %v472_v32  ;;  %p769_p5 = scmp.ne.s32.totalorder (!%p768_p2), %s1796_s19, 0 }
  0xbc   : > { %423 = vmatprep.subr.bf16.mxu0 %v960_v12 }
  0xbf   : > { %424 = vmatpush1.bf16.msra.mxu0 %v962_v13 }
  0xc0   : > { %425 = vmatprep.subr.bf16.mxu0 %v963_v14 }
  0xc3   : > { %426 = vmatpush1.bf16.msra.mxu0 %v965_v15 }
  0xc4   : > { %427 = vmatprep.subr.bf16.mxu0 %v966_v16 }
  0xc7   : > { %428 = vmatpush1.bf16.msra.mxu0 %v968_v17 }
  0xca   : > { %446 = vmatmul.mubr.bf16.vlgmr.msra.gmra.mrb[0].mxu0 %v316_v19 }
 0x19b   : > { %461 = sbr.rel (%p768_p2) target bundleno = 452 (0x1c4), region = 52 }
 0x19d   : > { %v447_v22 = vpop.f32.mrb[0].mxu0 }
 0x19e   : > { %v454_v23 = vadd.f32 %v447_v22, %v313_v20  ;;  %v449_v24 = vpop.f32.mrb[1].mxu0 }
 0x19f   : > { %v455_v25 = vadd.f32 %v449_v24, %v314_v21  ;;  %v451_v26 = vpop.f32.mrb[2].mxu0 }
 0x1a0   : > { %456 = vst [vmem:[#allocation2] sm:$0xff] %v454_v23  ;;  %v452_v27 = vpop.f32.mrb[3].mxu0 }
 0x1a1   : > { %457 = vst [vmem:[#allocation2 + $0x8] sm:$0xff] %v455_v25 }
 0x1a2   : > { %vm486_vm0 = vcmp.lt.s32.totalorder (!%p769_p5), %v466_v28, 256  ;;  %v1276_v39 = vmov (!%p769_p5), 0.0  }
 0x1a3   : > { %488 = vst.msk [vmem:[#allocation10] sm:$0x3] (!%p769_p5), %vm486_vm0, %v1276_v39  ;;  %489 = vst.msk [vmem:[#allocation12] sm:$0x3] (!%p769_p5), %vm486_vm0, %v1276_v39 }
 0x1a5   : > { %483 = sbr.rel (%p769_p5) target bundleno = 428 (0x1ac), region = 56 }
 0x1a7   : > { %v462_v33 = vld [vmem:[#allocation2] sm:$0xff] }
 0x1a8   : > { %v463_v34 = vld [vmem:[#allocation2 + $0x8] sm:$0xff]  ;;  %v476_v37 = vadd.f32 %v469_v35, %v462_v33 }
 0x1a9   : > { %v477_v38 = vadd.f32 %v473_v36, %v463_v34 }
 0x1aa   : > { %478 = vst [vmem:[%s1597_s16] sm:$0xff] %v476_v37 }
 0x1ab   : > { %479 = vst [vmem:[%s1597_s16 + $0x8] sm:$0xff] %v477_v38 }
 0x1ac PF: > { %v491_v40 = vrot.slane %v476_v37, 4  ;;  %v497_v41 = vrot.slane %v477_v38, 4  ;;  %v528_v42 = vmul.f32 %v476_v37, %v476_v37  ;;  %v529_v43 = vmul.f32 %v477_v38, %v477_v38  ;;  %v490_v8 = vld [vmem:[#allocation10] sm:$0x3]  ;;  %v527_v13 = vld [vmem:[#allocation12] sm:$0x3] }
 0x1ad   : > { %v1277_v46 = vmov 1966171168   ;;  %vm524_vm1 = vcmp.lt.s32.totalorder %v466_v28, 256 }
 0x1ae   : > { %v492_v44 = vadd.f32 %v491_v40, %v476_v37  ;;  %v498_v45 = vadd.f32 %v497_v41, %v477_v38  ;;  %v507_v47 = vunpack.c.l.s4 %v1277_v46  ;;  %v530_v48 = vrot.slane %v528_v42, 4 }
 0x1af   : > { %v536_v49 = vrot.slane %v529_v43, 4 }
 0x1b0   : > { %v493_v50 = vrot.slane %v492_v44, 2  ;;  %v499_v51 = vrot.slane %v498_v45, 2  ;;  %v531_v52 = vadd.f32 %v530_v48, %v528_v42  ;;  %v508_v56 = vunpack.c.0.s8 %v507_v47 }
 0x1b1   : > { %v537_v53 = vadd.f32 %v536_v49, %v529_v43 }
 0x1b2   : > { %v494_v54 = vadd.f32 %v493_v50, %v492_v44  ;;  %v500_v55 = vadd.f32 %v499_v51, %v498_v45  ;;  %v532_v57 = vrot.slane %v531_v52, 2  ;;  %v511_v1 = vsub.s32 %v508_v56, %v467_v29 }
 0x1b3   : > { %v538_v58 = vrot.slane %v537_v53, 2 }
 0x1b4   : > { %v495_v59 = vrot.slane %v494_v54, 1  ;;  %v501_v60 = vrot.slane %v500_v55, 1  ;;  %v533_v61 = vadd.f32 %v532_v57, %v531_v52 }
 0x1b5   : > { %v539_v62 = vadd.f32 %v538_v58, %v537_v53 }
 0x1b6   : > { %v496_v63 = vadd.f32 %v495_v59, %v494_v54  ;;  %v502_v0 = vadd.f32 %v501_v60, %v500_v55  ;;  %v534_v2 = vrot.slane %v533_v61, 1 }
 0x1b7   : > { %v540_v3 = vrot.slane %v539_v62, 1 }
 0x1b8   : > { %v505_v4 = vcombine.low %v496_v63, %v502_v0  ;;  %v535_v5 = vadd.f32 %v534_v2, %v533_v61 }
 0x1b9   : > { %v541_v6 = vadd.f32 %v540_v3, %v539_v62 }
 0x1ba   : > { %v512_v7 = vrot.slane %v505_v4, %v511_v1 }
 0x1bb   : > { %v544_v9 = vcombine.low %v535_v5, %v541_v6 }
 0x1bc   : > { %v519_v10 = vrot.slane %v512_v7, %v511_v1 }
 0x1bd   : > { %v551_v11 = vrot.slane %v544_v9, %v511_v1 }
 0x1be   : > { %v521_v12 = vadd.f32 %v519_v10, %v490_v8 }
 0x1bf   : > { %v558_v14 = vrot.slane %v551_v11, %v511_v1 }
 0x1c0   : > { %526 = vst.msk [vmem:[#allocation10] sm:$0x3] %vm524_vm1, %v521_v12 }
 0x1c1   : > { %v560_v15 = vadd.f32 %v558_v14, %v527_v13 }
 0x1c3   : > { %561 = vst.msk [vmem:[#allocation12] sm:$0x3] %vm524_vm1, %v560_v15 }
 0x1c4 PF: > { %s1278_s17 = smov [#allocation10]   ;;  %s1797_s27 = sld [smem:[#allocation21_spill]] }
 0x1c5   : > { %s588_s21 = sshll.u32 %s1278_s17, 4  ;;  %p1798_p11 = scmp.eq.s32.totalorder %s1378_s7, 8  ;;  %s589_s21 = int_to_ptr.vmem [resolvable:$true] %s588_s21 }
 0x1c6   : > { %s1057_s13 = scalar_lea.vmem %s589_s21, 32  ;;  %p1064_p0 = scmp.lt.s32.totalorder %s589_s21, %s589_s21 }
 0x1c7   : > { %p1058_p7 = scmp.ne.s32.totalorder %s589_s21, %s1057_s13  ;;  %p1065_p6 = scmp.lt.s32.totalorder %s1057_s13, %s1057_s13 }
 0x1c9   : > { %p1059_p10 = pnand %p1058_p7, %p1798_p11  ;;  %p1066_p1 = por %p1065_p6, %p1064_p0 }
 0x1ca   : > { %s781_s5 = sshll.u32 %s1797_s27, 8 }
 0x1cb   : > { %p1060_p4 = pneg %p1059_p10 }
 0x1cd   : > { %p1067_p13 = pnand %p1066_p1, %p1060_p4 }
 0x1cf   : > { %1070 = shalt.err (!%p1067_p13)
}
 0x1d0   : > { %s1799_s14 = sld [smem:[#allocation28_spill]]  ;;  %p1800_p8 = pmov %p1798_p11 }
 0x1d6   : > { %s1071_s2 = scalar_lea.hbm %s1799_s14, 32 }
 0x1d7   : > { %p1072_p12 = scmp.ne.s32.totalorder %s1799_s14, %s1071_s2  ;;  %p1077_p2 = scmp.lt.u32.totalorder %s1071_s2, %s1799_s14 }
 0x1d9   : > { %p1073_p9 = pnand %p1072_p12, %p1800_p8 }
 0x1db   : > { %p1074_p3 = pneg %p1073_p9 }
 0x1dd   : > { %p1079_p5 = pnand %p1077_p2, %p1074_p3 }
 0x1df   : > { %1082 = shalt.err (!%p1079_p5)
}
 0x1e0   : > { %p1801_p7 = pmov %p1800_p8  ;;  %s1803_s27 = sld [smem:[#allocation22_spill]] }
 0x1e1   : > { %s1804_s4 = sld [smem:[#allocation27_spill]]  ;;  %s577_s9 = sshll.u32 %s1597_s16, 4  ;;  %s578_s9 = int_to_ptr.vmem [resolvable:$true] %s577_s9 }
 0x1e2   : > { %793 = dma.vmem_to_hbm [thread:$0]  (%p1801_p7), %s589_s21, 32, %s1799_s14, [#allocation11]  }
 0x1e3   : > { %s563_s2 = scalar_lea.sflag [#allocation5], %s298_s28  ;;  %s1083_s10 = scalar_lea.vmem %s578_s9, 256 }
 0x1e4   : > { %p1084_p11 = scmp.ne.s32.totalorder %s578_s9, %s1083_s10  ;;  %s1279_s24 = smov [#allocation9]  }
 0x1e5   : > { %s1087_s11 = sshll.u32 %s1279_s24, 4  ;;  %s1088_s11 = int_to_ptr.vmem [resolvable:$false] %s1087_s11 }
 0x1e6   : > { %p1805_p10 = scmp.ne.s32.totalorder %s1803_s27, 0  ;;  %s1089_s19 = scalar_lea.vmem %s1088_s11, 512 }
 0x1e7   : > { %s1644_s8 = scalar_lea.hbm %s1804_s4, %s781_s5  ;;  %p1090_p6 = scmp.lt.s32.totalorder %s578_s9, %s1088_s11 }
 0x1e8   : > { %p1085_p4 = pnand %p1084_p11, %p1805_p10  ;;  %p1091_p1 = scmp.lt.s32.totalorder %s1089_s19, %s1083_s10 }
 0x1ea   : > { %p1086_p0 = pneg %p1085_p4  ;;  %p1092_p13 = por %p1091_p1, %p1090_p6 }
 0x1ec   : > { %p1093_p12 = pnand %p1092_p13, %p1086_p0 }
 0x1ee   : > { %1096 = shalt.err (!%p1093_p12)
}
 0x1ef   : > { %s1097_s28 = scalar_lea.hbm %s1644_s8, 256  ;;  %s1101_s5 = scalar_lea.hbm %s1804_s4, 768 }
 0x1f0   : > { %p1098_p8 = scmp.ne.s32.totalorder %s1644_s8, %s1097_s28  ;;  %p1102_p2 = scmp.lt.u32.totalorder %s1644_s8, %s1804_s4 }
 0x1f1   : > { %p1103_p5 = scmp.lt.u32.totalorder %s1101_s5, %s1097_s28  ;;  %p1105_p11 = scmp.lt.u32.totalorder %s1097_s28, %s1644_s8 }
 0x1f2   : > { %p1099_p9 = pnand %p1098_p8, %p1805_p10 }
 0x1f3   : > { %p1104_p7 = por %p1103_p5, %p1102_p2 }
 0x1f4   : > { %p1100_p3 = pneg %p1099_p9 }
 0x1f5   : > { %p1106_p4 = por %p1105_p11, %p1104_p7 }
 0x1f7   : > { %p1107_p0 = pnand %p1106_p4, %p1100_p3 }
 0x1f9   : > { %1110 = shalt.err (!%p1107_p0)
}
 0x1fa   : > { %791 = dma.vmem_to_hbm [thread:$0]  (%p1805_p10), %s578_s9, 256, %s1644_s8, %s563_s2  }
 0x1fb   : > { %s1280_s0 = smov [#allocation12]   ;;  %p1806_p1 = scmp.eq.s32.totalorder %s1378_s7, 8 }
 0x1fc   : > { %s599_s10 = sshll.u32 %s1280_s0, 4  ;;  %s600_s10 = int_to_ptr.vmem [resolvable:$true] %s599_s10 }
 0x1fd   : > { %s1111_s24 = scalar_lea.vmem %s600_s10, 32  ;;  %p1118_p8 = scmp.lt.s32.totalorder %s600_s10, %s600_s10 }
 0x1fe   : > { %p1112_p6 = scmp.ne.s32.totalorder %s600_s10, %s1111_s24  ;;  %p1119_p9 = scmp.lt.s32.totalorder %s1111_s24, %s1111_s24 }
 0x200   : > { %p1113_p13 = pnand %p1112_p6, %p1806_p1  ;;  %p1120_p2 = por %p1119_p9, %p1118_p8 }
 0x202   : > { %p1114_p12 = pneg %p1113_p13 }
 0x204   : > { %p1121_p5 = pnand %p1120_p2, %p1114_p12 }
 0x206   : > { %1124 = shalt.err (!%p1121_p5)
}
 0x207   : > { %s1807_s28 = sld [smem:[#allocation29_spill]]  ;;  %p1809_p3 = pmov %p1806_p1 }
 0x20d   : > { %s1808_s16 = smov %s1807_s28  ;;  %s1125_s27 = scalar_lea.hbm %s1807_s28, 32 }
 0x20e   : > { %p1126_p10 = scmp.ne.s32.totalorder %s1808_s16, %s1125_s27  ;;  %p1131_p4 = scmp.lt.u32.totalorder %s1125_s27, %s1808_s16 }
 0x210   : > { %p1127_p7 = pnand %p1126_p10, %p1809_p3 }
 0x212   : > { %p1128_p11 = pneg %p1127_p7 }
 0x214   : > { %p1133_p0 = pnand %p1131_p4, %p1128_p11 }
 0x216   : > { %1136 = shalt.err (!%p1133_p0)
}
 0x217   : > { %p1810_p6 = pmov %p1806_p1 }
 0x219   : > { %795 = dma.vmem_to_hbm [thread:$0]  (%p1810_p6), %s600_s10, 32, %s1808_s16, [#allocation11]  }
 0x21a   : > { %1206 = dma.done.wait (%p1806_p1), [#allocation11], 64   ;;  %p1811_p13 = pmov %p1806_p1 }
 0x21c   : > { %1208 = vsyncadd (%p1811_p13), [#allocation11], 4294967232 }
 0x21d PF: > { %s1812_s13 = sld [smem:[#allocation18_spill]]  ;;  %s1813_s0 = sld [smem:[#allocation23_spill]] }
 0x21e   : > { %p823_p12 = scmp.ge.s32.totalorder %s1267_s6, 2 }
 0x223   : > { %s619_s24 = sand.u32 1, %s1812_s13   ;;  %p1814_p8 = scmp.ne.s32.totalorder %s1813_s0, 0 }
 0x224   : > { %s620_s11 = scalar_lea.sflag [#allocation5], %s619_s24 }
 0x225   : > { %p813_p9 = pnand %p823_p12, %p1814_p8 }
 0x227   : > { %1210 = dma.done.wait (!%p813_p9), %s620_s11, 256  }
 0x228   : > { %1212 = vsyncadd (!%p813_p9), %s620_s11, 4294967040  ;;  %s26_s6 = sadd.s32 1, %s1267_s6   ;;  %s1816_s19 = sld [smem:[#allocation19_spill]] }
 0x229   : > { %p1693_p2 = scmp.ge.s32.totalorder %s26_s6, 11   ;;  %s1817_s7 = sld [smem:[#allocation24_spill]] }
 0x22a   : > { %s1818_s8 = smov %s1837_s18  ;;  %s1822_s21 = smov %s1231_s22 }
 0x22b   : > { %s1823_s22 = smov %s1235_s23  ;;  %s1824_s23 = smov %s1470_s15 }
 0x22c   : > { %s1825_s24 = smov %s1243_s25  ;;  %s1826_s25 = smov %s1247_s26 }
 0x22d   : > { %s1827_s26 = smov %s1482_s12  ;;  %s1828_s27 = smov %s1259_s29 }
 0x22e   : > { %s1819_s18 = smov %s1816_s19  ;;  %s1820_s19 = smov %s1223_s20 }
 0x22f   : > { %s1821_s20 = smov %s1479_s3  ;;  %s1829_s28 = smov %s1263_s30 }
 0x230   : > { %s1830_s29 = smov %s1817_s7  ;;  %s1831_s30 = smov %s1818_s8 }
 0x231   :  { %25 = sbr.rel (!%p1693_p2) target bundleno = 19 (0x13), region = 122 }
 0x238   :  { %625 = vsyncpa [#allocation4], 1 }
 0x239   :  { %627 = vsyncpa [#allocation4 + $0x1], 1 }
 0x23a   :  { %628 = vsyncpa [#allocation7], 1 }
 0x23b   :  { %630 = vsyncpa [#allocation7 + $0x1], 1 }
 0x23c   :  { %631 = vsyncpa [#allocation5], 1 }
 0x23d   :  { %633 = vsyncpa [#allocation5 + $0x1], 1 }
 0x23e   :  { %634 = vsyncpa [#allocation11], 1 }

// kernel: autoenc2_forward_train.28
= control target key start
LH: loop header
LB: loop body
LE: loop exit
PB: predicated region body
PF: predicated region fallthrough
CT: control target
= control target key end

     0   :  { %11 = vsyncpa [#allocation4], 0  ;;  %s1863_s0 = inlined_call_operand.hbm [shape: f32[24,256], index: 0, kind: input, shape index: {}]   ;;  %s1864_s1 = inlined_call_operand.hbm [shape: bf16[256,384], index: 1, kind: input, shape index: {}]   ;;  %s1865_s2 = inlined_call_operand.hbm [shape: f32[1,384], index: 2, kind: input, shape index: {}]   ;;  %s1866_s3 = inlined_call_operand.hbm [shape: f32[24,384], index: 3, kind: output, shape index: {0}]   ;;  %s1867_s4 = inlined_call_operand.hbm [shape: f32[1,384], index: 4, kind: output, shape index: {1}]   ;;  %s1868_s5 = inlined_call_operand.hbm [shape: f32[1,384], index: 5, kind: output, shape index: {2}]  }
   0x1   :  { %13 = vsyncpa [#allocation4 + $0x1], 0 }
   0x2   :  { %14 = vsyncpa [#allocation7], 0 }
   0x3   :  { %15 = vsyncpa [#allocation5], 0 }
   0x4   :  { %17 = vsyncpa [#allocation5 + $0x1], 0 }
   0x5   :  { %18 = vsyncpa [#allocation11], 0  ;;  %s1544_s18 = smov 0   ;;  %s1546_s19 = smov 0  }
   0x6   :  { %s1548_s20 = smov 0   ;;  %s1550_s21 = smov 0  }
   0x7   :  { %s1552_s22 = smov 0   ;;  %s1554_s23 = smov 0  }
   0x8 LB: > { %s1015_s24 = sadd.s32 4294967295, %s1502_s23   ;;  %s1016_s25 = sadd.s32 4294967294, %s1502_s23   ;;  %s1502_s23 = sphi %s1554_s23, %s24_s23   ;;  %s1498_s22 = sphi %s1552_s22, %s1894_s22   ;;  %s1494_s21 = sphi %s1550_s21, %s1893_s21   ;;  %s1490_s20 = sphi %s1548_s20, %s1892_s20   ;;  %s1486_s19 = sphi %s1546_s19, %s1891_s19   ;;  %s1482_s18 = sphi %s1544_s18, %s1890_s18  }
   0x9   : > { %p58_p0 = scmp.ne.s32.totalorder %s1486_s19, %s1482_s18  ;;  %p1578_p1 = scmp.eq.s32.totalorder %s1015_s24, 0 }
   0xa   : > { %p1582_p2 = scmp.eq.s32.totalorder %s1015_s24, 2  ;;  %p135_p3 = scmp.eq.s32.totalorder %s1016_s25, 2 }
   0xb   : > { %s1874_s26 = scalar_select %p1578_p1, 1, 0 }
   0xc   : > { %s1875_s27 = scalar_select %p1582_p2, 1, 0 }
   0xd   : > { %p1588_p4 = por %p1578_p1, %p58_p0  ;;  %p1017_p5 = scmp.ge.s32.totalorder %s1502_s23, 1 }
   0xe   : > { %p1593_p6 = por %p135_p3, %p58_p0  ;;  %p184_p7 = scmp.lt.s32.totalorder %s1502_s23, 4 }
   0xf   : > { %s1876_s28 = scalar_select %p1588_p4, 1, 0 }
  0x10   : > { %s1877_s29 = scalar_select %p1593_p6, 1, 0 }
  0x11   : > { %p1598_p8 = pnand %p1017_p5, %p184_p7  ;;  %s1504_s6 = smov [#allocation6]  }
  0x12   : > { %s200_s7 = sshll.u32 %s1504_s6, 4  ;;  %s1505_s9 = smov [#allocation8]   ;;  %s201_s7 = int_to_ptr.vmem [resolvable:$true] %s200_s7 }
  0x13   : > { %s1878_s30 = scalar_select %p1598_p8, 1, 0 }
  0x14   : > { %p1129_p9 = pneg %p1598_p8  ;;  %s214_s10 = sshll.u32 %s1505_s9, 4  ;;  %s1610_s10 = int_to_ptr.vmem [resolvable:$true] %s214_s10 }
  0x15   : > { %s1274_s13 = scalar_lea.hbm %s1864_s1, 6144 }
  0x16   : > { %p1606_p10 = pnand %p1129_p9, %p1578_p1  ;;  %p1275_p11 = scmp.ne.s32.totalorder %s1864_s1, %s1274_s13 }
  0x17   : > { %p1281_p3 = scmp.lt.u32.totalorder %s1274_s13, %s1864_s1 }
  0x18   : > { %p1276_p12 = pneg %p1606_p10 }
  0x1a   : > { %p1277_p13 = pnand %p1276_p12, %p1275_p11 }
  0x1c   : > { %p1278_p0 = pneg %p1277_p13 }
  0x1e   : > { %p1283_p5 = pnand %p1281_p3, %p1278_p0 }
  0x20   : > { %1286 = shalt.err (!%p1283_p5)
}
  0x21   : > { %s1287_s24 = scalar_lea.vmem %s201_s7, 6144  ;;  %p1295_p1 = scmp.lt.s32.totalorder %s201_s7, %s201_s7 }
  0x22   : > { %p1288_p7 = scmp.ne.s32.totalorder %s201_s7, %s1287_s24  ;;  %p1296_p4 = scmp.lt.s32.totalorder %s1287_s24, %s1287_s24 }
  0x24   : > { %p1290_p9 = pnand %p1288_p7, %p1276_p12  ;;  %p1297_p8 = por %p1296_p4, %p1295_p1 }
  0x26   : > { %p1291_p6 = pneg %p1290_p9 }
  0x28   : > { %p1298_p2 = pnand %p1297_p8, %p1291_p6 }
  0x2a   : > { %1301 = shalt.err (!%p1298_p2)
}
  0x2b   : > { %s1506_s25 = smov 192   ;;  %s1507_s6 = smov 12  }
  0x2c   : > { %1132 = dma.hbm_to_vmem [thread:$0]  (!%p1606_p10), %s1864_s1, 6144, %s201_s7, [#allocation7], %s1506_s25, %s1506_s25, %s1507_s6  }
  0x2d   : > { %s1302_s14 = scalar_lea.hbm %s1865_s2, 48 }
  0x2e   : > { %p1303_p11 = scmp.ne.s32.totalorder %s1865_s2, %s1302_s14  ;;  %p1309_p4 = scmp.lt.u32.totalorder %s1302_s14, %s1865_s2 }
  0x30   : > { %p1305_p1 = pnand %p1303_p11, %p1276_p12 }
  0x32   : > { %p1306_p2 = pneg %p1305_p1 }
  0x34   : > { %p1311_p6 = pnand %p1309_p4, %p1306_p2 }
  0x36   : > { %1314 = shalt.err (!%p1311_p6)
}
  0x37   : > { %s1315_s7 = scalar_lea.vmem %s1610_s10, 48  ;;  %s1322_s25 = scalar_lea.vmem %s1610_s10, 64 }
  0x38   : > { %p1316_p8 = scmp.ne.s32.totalorder %s1610_s10, %s1315_s7  ;;  %p1323_p3 = scmp.lt.s32.totalorder %s1610_s10, %s1610_s10 }
  0x39   : > { %p1324_p5 = scmp.lt.s32.totalorder %s1322_s25, %s1315_s7 }
  0x3a   : > { %p1318_p13 = pnand %p1316_p8, %p1276_p12 }
  0x3b   : > { %p1325_p7 = por %p1324_p5, %p1323_p3 }
  0x3c   : > { %p1319_p0 = pneg %p1318_p13 }
  0x3e   : > { %p1326_p9 = pnand %p1325_p7, %p1319_p0 }
  0x40   : > { %1329 = shalt.err (!%p1326_p9)
}
  0x41   : > { %1135 = dma.hbm_to_vmem [thread:$0]  (!%p1606_p10), %s1865_s2, 48, %s1610_s10, [#allocation7]  }
  0x42   : > { %s36_s11 = sadd.s32 1, %s1498_s22  ;;  %s45_s12 = sadd.s32 1, %s1490_s20 }
  0x43   : > { %p38_p12 = scmp.ge.s32.totalorder %s36_s11, 3  ;;  %p52_p11 = scmp.ne.s32.totalorder %s1490_s20, %s1486_s19 }
  0x44   : > { %p53_p1 = scmp.eq.s32.totalorder %s1502_s23, 0  ;;  %p1146_p2 = scmp.lt.s32.totalorder %s1502_s23, 3 }
  0x45   : > { %s1896_s11 = smov (%p38_p12, %s36_s11), 0  ;;  %p1880_p6 = scmp.ne.s32.totalorder %s1875_s27, 0 }
  0x46   : > { %p54_p4 = por %p53_p1, %p52_p11  ;;  %s40_s13 = ssub.s32 %s1498_s22, %s1896_s11 }
  0x47   : > { %p1670_p8 = por %p1880_p6, %p52_p11  ;;  %s225_s14 = sand.u32 1, %s1490_s20  }
  0x48   : > { %p43_p13 = scmp.eq.s32.totalorder %s40_s13, 0  ;;  %s1021_s10 = sshll.u32 %s225_s14, 4 }
  0x49   : > { %s1084_s15 = sshll.u32 %s1498_s22, 8  ;;  %s229_s25 = scalar_lea.vmem [#allocation3], %s1021_s10 }
  0x4a   : > { %s1679_s16 = scalar_select %p43_p13, %s1490_s20, %s45_s12  }
  0x4b   : > { %s1684_s7 = scalar_lea.hbm %s1863_s0, %s1084_s15  ;;  %s239_s6 = sshll.u32 %s229_s25, 4  ;;  %s1692_s6 = int_to_ptr.vmem [resolvable:$true] %s239_s6 }
  0x4c   : > { %p1688_p10 = pnand %p1146_p2, %p54_p4  ;;  %s226_s12 = scalar_lea.sflag [#allocation4], %s225_s14 }
  0x4d   : > { %s1330_s13 = scalar_lea.hbm %s1684_s7, 256  ;;  %s1335_s17 = scalar_lea.hbm %s1863_s0, 768 }
  0x4e   : > { %p1331_p0 = scmp.ne.s32.totalorder %s1684_s7, %s1330_s13  ;;  %p1332_p3 = pneg %p1688_p10 }
  0x4f   : > { %p1336_p9 = scmp.lt.u32.totalorder %s1684_s7, %s1863_s0  ;;  %p1337_p12 = scmp.lt.u32.totalorder %s1335_s17, %s1330_s13 }
  0x50   : > { %p1333_p5 = pnand %p1332_p3, %p1331_p0  ;;  %p1339_p1 = scmp.lt.u32.totalorder %s1330_s13, %s1684_s7 }
  0x51   : > { %p1338_p11 = por %p1337_p12, %p1336_p9 }
  0x52   : > { %p1334_p7 = pneg %p1333_p5 }
  0x53   : > { %p1340_p2 = por %p1339_p1, %p1338_p11 }
  0x55   : > { %p1341_p4 = pnand %p1340_p2, %p1334_p7 }
  0x57   : > { %1344 = shalt.err (!%p1341_p4)
}
  0x58   : > { %s1345_s14 = scalar_lea.vmem %s1692_s6, 256  ;;  %s1508_s10 = smov [#allocation3]  }
  0x59   : > { %p1346_p6 = scmp.ne.s32.totalorder %s1692_s6, %s1345_s14  ;;  %s1350_s15 = sshll.u32 %s1508_s10, 4  ;;  %s1351_s15 = int_to_ptr.vmem [resolvable:$false] %s1350_s15 }
  0x5a   : > { %s1352_s24 = scalar_lea.vmem %s1351_s15, 512  ;;  %p1353_p5 = scmp.lt.s32.totalorder %s1692_s6, %s1351_s15 }
  0x5b   : > { %p1348_p13 = pnand %p1346_p6, %p1332_p3  ;;  %p1354_p9 = scmp.lt.s32.totalorder %s1352_s24, %s1345_s14 }
  0x5d   : > { %p1349_p0 = pneg %p1348_p13  ;;  %p1355_p12 = por %p1354_p9, %p1353_p5 }
  0x5f   : > { %p1356_p11 = pnand %p1355_p12, %p1349_p0 }
  0x61   : > { %1359 = shalt.err (!%p1356_p11)
}
  0x62   : > { %1139 = dma.hbm_to_vmem [thread:$0]  (!%p1688_p10), %s1684_s7, 256, %s1692_s6, %s226_s12  }
  0x63   : > { %p1883_p7 = scmp.ne.s32.totalorder %s1878_s30, 0 }
  0x64   : > { %s1722_s13 = sand.u32 (!%p1883_p7), 1, %s1486_s19   ;;  %p1884_p3 = scmp.ne.s32.totalorder (!%p1883_p7), %s1876_s28, 0 }
  0x65   : > { %248 = sbr.rel (%p1883_p7) target bundleno = 469 (0x1d5), region = 32  ;;  %s1025_s17 = sshll.u32 (!%p1883_p7), %s1722_s13, 4 }
  0x66   : > { %s251_s25 = scalar_lea.sflag (!%p1883_p7), [#allocation4], %s1722_s13  ;;  %s1726_s14 = scalar_lea.vmem (!%p1883_p7), [#allocation3], %s1025_s17 }
  0x6c   : > { %1465 = dma.done.wait (%p1884_p3), %s251_s25, 256  }
  0x6d   : > { %1467 = vsyncadd (%p1884_p3), %s251_s25, 4294967040  ;;  %p1885_p10 = scmp.ne.s32.totalorder %s1874_s26, 0 }
  0x6f   : > { %1469 = dma.done.wait (%p1885_p10), [#allocation7], 6192  }
  0x70   : > { %1471 = vsyncadd (%p1885_p10), [#allocation7], 4294961104  ;;  %v1210_v0 = vld [vmem:[#allocation6 + $0x4] ss:$12 sps:$4 sm:$0xff]   ;;  %v1212_v1 = vld [vmem:[#allocation6] ss:$12 sps:$4 sm:$0xff]   ;;  %v721_v52 = vlaneseq }
  0x71   : > { %626 = vmatprep.subr.bf16.mxu0 %v1210_v0  ;;  %v1213_v2 = vld [vmem:[#allocation6 + $0x1c] ss:$12 sps:$4 sm:$0xff]   ;;  %v1215_v3 = vld [vmem:[#allocation6 + $0x18] ss:$12 sps:$4 sm:$0xff]   ;;  %v1216_v4 = vld [vmem:[#allocation6 + $0x34] ss:$12 sps:$4 sm:$0xff]  }
  0x72   : > { %627 = vmatpush1.bf16.msra.mxu0 %v1212_v1  ;;  %v1218_v5 = vld [vmem:[#allocation6 + $0x30] ss:$12 sps:$4 sm:$0xff]   ;;  %v1219_v6 = vld [vmem:[#allocation6 + $0x4c] ss:$12 sps:$4 sm:$0xff]   ;;  %v1231_v7 = vld [vmem:[#allocation6 + $0xc8] ss:$12 sps:$4 sm:$0xff]  }
  0x73   : > { %628 = vmatprep.subr.bf16.mxu0 %v1213_v2  ;;  %v1221_v8 = vld [vmem:[#allocation6 + $0x48] ss:$12 sps:$4 sm:$0xff]   ;;  %v1222_v9 = vld [vmem:[#allocation6 + $0x64] ss:$12 sps:$4 sm:$0xff]   ;;  %1085 = vmatprep.subr.bf16.mxu1 %v1231_v7  ;;  %v1236_v11 = vld [vmem:[#allocation6 + $0xe0] ss:$12 sps:$4 sm:$0xff]  }
  0x74   : > { %v1234_v10 = vld [vmem:[#allocation6 + $0x8] ss:$12 sps:$4 sm:$0xff]   ;;  %v1224_v12 = vld [vmem:[#allocation6 + $0x60] ss:$12 sps:$4 sm:$0xff]   ;;  %v1241_v15 = vld [vmem:[#allocation6 + $0xf8] ss:$12 sps:$4 sm:$0xff]  }
  0x75   : > { %1086 = vmatpush3.bf16.msra.mxu1 %v1234_v10  ;;  %v1225_v13 = vld [vmem:[#allocation6 + $0x7c] ss:$12 sps:$4 sm:$0xff]   ;;  %v1239_v14 = vld [vmem:[#allocation6 + $0x20] ss:$12 sps:$4 sm:$0xff]   ;;  %v1227_v16 = vld [vmem:[#allocation6 + $0x78] ss:$12 sps:$4 sm:$0xff]  }
  0x76   : > { %629 = vmatpush1.bf16.msra.mxu0 %v1215_v3  ;;  %1087 = vmatprep.subr.bf16.mxu1 %v1236_v11  ;;  %v1244_v17 = vld [vmem:[#allocation6 + $0x38] ss:$12 sps:$4 sm:$0xff]   ;;  %v1228_v18 = vld [vmem:[#allocation6 + $0x94] ss:$12 sps:$4 sm:$0xff]   ;;  %v1246_v19 = vld [vmem:[#allocation6 + $0x110] ss:$12 sps:$4 sm:$0xff]  }
  0x77   : > { %630 = vmatprep.subr.bf16.mxu0 %v1216_v4  ;;  %v1230_v20 = vld [vmem:[#allocation6 + $0x90] ss:$12 sps:$4 sm:$0xff]   ;;  %v1251_v22 = vld [vmem:[#allocation6 + $0x128] ss:$12 sps:$4 sm:$0xff]   ;;  %v1232_v23 = vld [vmem:[#allocation6 + $0xac] ss:$12 sps:$4 sm:$0xff]  }
  0x78   : > { %v1249_v21 = vld [vmem:[#allocation6 + $0x50] ss:$12 sps:$4 sm:$0xff]   ;;  %v1235_v24 = vld [vmem:[#allocation6 + $0xa8] ss:$12 sps:$4 sm:$0xff]   ;;  %v1256_v26 = vld [vmem:[#allocation6 + $0x140] ss:$12 sps:$4 sm:$0xff]  }
  0x79   : > { %1088 = vmatpush3.bf16.msra.mxu1 %v1239_v14  ;;  %v1254_v25 = vld [vmem:[#allocation6 + $0x68] ss:$12 sps:$4 sm:$0xff]   ;;  %v1237_v27 = vld [vmem:[#allocation6 + $0xc4] ss:$12 sps:$4 sm:$0xff]   ;;  %v1240_v28 = vld [vmem:[#allocation6 + $0xc0] ss:$12 sps:$4 sm:$0xff]  }
  0x7a   : > { %631 = vmatpush1.bf16.msra.mxu0 %v1218_v5  ;;  %1089 = vmatprep.subr.bf16.mxu1 %v1241_v15  ;;  %v1259_v29 = vld [vmem:[#allocation6 + $0x80] ss:$12 sps:$4 sm:$0xff]   ;;  %v1261_v30 = vld [vmem:[#allocation6 + $0x158] ss:$12 sps:$4 sm:$0xff]   ;;  %v1242_v31 = vld [vmem:[#allocation6 + $0xdc] ss:$12 sps:$4 sm:$0xff]  }
  0x7b   : > { %632 = vmatprep.subr.bf16.mxu0 %v1219_v6  ;;  %v1264_v32 = vld [vmem:[#allocation6 + $0x98] ss:$12 sps:$4 sm:$0xff]   ;;  %v1266_v34 = vld [vmem:[#allocation6 + $0x170] ss:$12 sps:$4 sm:$0xff]   ;;  %v1247_v35 = vld [vmem:[#allocation6 + $0xf4] ss:$12 sps:$4 sm:$0xff]  }
  0x7c   : > { %v1245_v33 = vld [vmem:[#allocation6 + $0xd8] ss:$12 sps:$4 sm:$0xff]   ;;  %v1269_v38 = vld [vmem:[#allocation6 + $0xb0] ss:$12 sps:$4 sm:$0xff]   ;;  %v1255_v43 = vld [vmem:[#allocation6 + $0x108] ss:$12 sps:$4 sm:$0xff]  }
  0x7d   : > { %1090 = vmatpush3.bf16.msra.mxu1 %v1244_v17  ;;  %v303_v36 = vld [vmem:[%s1726_s14 + $0x8] sm:$0xff]  ;;  %v302_v39 = vld [vmem:[%s1726_s14] sm:$0xff]  ;;  %v1739_v53 = vshrl.u32 %v721_v52, 7  ;;  %s1107_s26 = smul.u32 24, %s1722_s13  ;;  %p1076_p1 = scmp.ne.s32.totalorder %s1494_s21, 0 }
  0x7e   : > { %633 = vmatpush1.bf16.msra.mxu0 %v1221_v8  ;;  %1091 = vmatprep.subr.bf16.mxu1 %v1246_v19  ;;  %v305_v37 = vpack.c.bf16 %v303_v36, %v303_v36  ;;  %v1250_v40 = vld [vmem:[#allocation6 + $0xf0] ss:$12 sps:$4 sm:$0xff]   ;;  %v1252_v41 = vld [vmem:[#allocation6 + $0x10c] ss:$12 sps:$4 sm:$0xff]   ;;  %v304_v42 = vpack.c.bf16 %v302_v39, %v302_v39  ;;  %v1267_v48 = vld [vmem:[#allocation6 + $0x154] ss:$12 sps:$4 sm:$0xff]  }
  0x7f   : > { %634 = vmatprep.subr.bf16.mxu0 %v1222_v9  ;;  %v1257_v44 = vld [vmem:[#allocation6 + $0x124] ss:$12 sps:$4 sm:$0xff]   ;;  %v1260_v45 = vld [vmem:[#allocation6 + $0x120] ss:$12 sps:$4 sm:$0xff]   ;;  %v1262_v46 = vld [vmem:[#allocation6 + $0x13c] ss:$12 sps:$4 sm:$0xff]  }
  0x80   : > { %699 = vmatprep.mubr.bf16.mxu1 %v305_v37  ;;  %658 = vmatprep.mubr.bf16.mxu0 %v305_v37  ;;  %v1265_v47 = vld [vmem:[#allocation6 + $0x138] ss:$12 sps:$4 sm:$0xff]   ;;  %v1270_v49 = vld [vmem:[#allocation6 + $0x150] ss:$12 sps:$4 sm:$0xff]   ;;  %v1273_v51 = vld [vmem:[#allocation6 + $0x168] ss:$12 sps:$4 sm:$0xff]  }
  0x81   : > { %1092 = vmatpush3.bf16.msra.mxu1 %v1249_v21  ;;  %v1271_v50 = vld [vmem:[#allocation6 + $0x16c] ss:$12 sps:$4 sm:$0xff]   ;;  %v731_v54 = vsub.s32 2, %v1739_v53  ;;  %v719_v55 = vld [vmem:[#allocation8] sm:$0x7]  ;;  %s1743_s28 = scalar_lea.vmem [#allocation9], %s1107_s26 }
  0x82   : > { %635 = vmatpush1.bf16.msra.mxu0 %v1224_v12  ;;  %1093 = vmatprep.subr.bf16.mxu1 %v1251_v22  ;;  %v723_v63 = vsub.s32 0, %v1739_v53  ;;  %v727_v0 = vsub.s32 1, %v1739_v53  ;;  %vm748_vm0 = vcmp.lt.s32.totalorder (!%p1076_p1), %v721_v52, 384  ;;  %v1509_v9 = vmov (!%p1076_p1), 0.0  }
  0x83   : > { %636 = vmatprep.subr.bf16.mxu0 %v1225_v13  ;;  %v732_v57 = vrot.slane %v719_v55, %v731_v54  ;;  %750 = vst.msk [vmem:[#allocation10] sm:$0x7] (!%p1076_p1), %vm748_vm0, %v1509_v9  ;;  %751 = vst.msk [vmem:[#allocation12] sm:$0x7] (!%p1076_p1), %vm748_vm0, %v1509_v9 }
  0x84   : > { %v724_v1 = vrot.slane %v719_v55, %v723_v63  ;;  %v728_v2 = vrot.slane %v719_v55, %v727_v0 }
  0x85   : > { %1094 = vmatpush3.bf16.msra.mxu1 %v1254_v25 }
  0x86   : > { %637 = vmatpush1.bf16.msra.mxu0 %v1227_v16  ;;  %1095 = vmatprep.subr.bf16.mxu1 %v1256_v26 }
  0x87   : > { %638 = vmatprep.subr.bf16.mxu0 %v1228_v18 }
  0x89   : > { %1096 = vmatpush3.bf16.msra.mxu1 %v1259_v29 }
  0x8a   : > { %639 = vmatpush1.bf16.msra.mxu0 %v1230_v20  ;;  %1097 = vmatprep.subr.bf16.mxu1 %v1261_v30 }
  0x8b   : > { %640 = vmatprep.subr.bf16.mxu0 %v1232_v23 }
  0x8d   : > { %1098 = vmatpush3.bf16.msra.mxu1 %v1264_v32 }
  0x8e   : > { %641 = vmatpush1.bf16.msra.mxu0 %v1235_v24  ;;  %1099 = vmatprep.subr.bf16.mxu1 %v1266_v34 }
  0x8f   : > { %642 = vmatprep.subr.bf16.mxu0 %v1237_v27 }
  0x91   : > { %1100 = vmatpush3.bf16.msra.mxu1 %v1269_v38 }
  0x92   : > { %643 = vmatpush1.bf16.msra.mxu0 %v1240_v28 }
  0x93   : > { %644 = vmatprep.subr.bf16.mxu0 %v1242_v31 }
  0x94   : > { %700 = vmatmul.mubr.bf16.vlgmr.msra.gmra.mrb[0].mxu1 %v304_v42 }
  0x96   : > { %645 = vmatpush1.bf16.msra.mxu0 %v1245_v33 }
  0x97   : > { %646 = vmatprep.subr.bf16.mxu0 %v1247_v35 }
  0x9a   : > { %647 = vmatpush1.bf16.msra.mxu0 %v1250_v40 }
  0x9b   : > { %648 = vmatprep.subr.bf16.mxu0 %v1252_v41 }
  0x9e   : > { %649 = vmatpush1.bf16.msra.mxu0 %v1255_v43 }
  0x9f   : > { %650 = vmatprep.subr.bf16.mxu0 %v1257_v44 }
  0xa2   : > { %651 = vmatpush1.bf16.msra.mxu0 %v1260_v45 }
  0xa3   : > { %652 = vmatprep.subr.bf16.mxu0 %v1262_v46 }
  0xa6   : > { %653 = vmatpush1.bf16.msra.mxu0 %v1265_v47 }
  0xa7   : > { %654 = vmatprep.subr.bf16.mxu0 %v1267_v48 }
  0xaa   : > { %655 = vmatpush1.bf16.msra.mxu0 %v1270_v49 }
  0xab   : > { %656 = vmatprep.subr.bf16.mxu0 %v1271_v50 }
  0xae   : > { %657 = vmatpush1.bf16.msra.mxu0 %v1273_v51 }
  0xb1   : > { %659 = vmatmul.mubr.bf16.vlgmr.msra.gmra.mrb[0].mxu0 %v304_v42 }
 0x167   : > { %v1101_v56 = vpop.f32.mrb[0].mxu1 }
 0x168   : > { %v1102_v58 = vpop.f32.mrb[1].mxu1 }
 0x169   : > { %v1103_v59 = vadd.f32 %v1102_v58, %v1101_v56  ;;  %v1104_v60 = vpop.f32.mrb[2].mxu1 }
 0x16a   : > { %v1105_v61 = vpop.f32.mrb[3].mxu1 }
 0x16b   : > { %v738_v62 = vadd.f32 %v1103_v59, %v732_v57 }
 0x16d   : > { %741 = vst [vmem:[%s1743_s28 + $0x10] sm:$0xff] %v738_v62 }
 0x182   : > { %745 = sbr.rel (%p1076_p1) target bundleno = 393 (0x189), region = 56 }
 0x184   : > { %v660_v3 = vpop.f32.mrb[0].mxu0 }
 0x185   : > { %v736_v4 = vadd.f32 %v724_v1, %v660_v3  ;;  %v662_v5 = vpop.f32.mrb[1].mxu0 }
 0x186   : > { %v737_v6 = vadd.f32 %v728_v2, %v662_v5  ;;  %v664_v7 = vpop.f32.mrb[2].mxu0 }
 0x187   : > { %739 = vst [vmem:[%s1743_s28] sm:$0xff] %v736_v4  ;;  %v665_v8 = vpop.f32.mrb[3].mxu0 }
 0x188   : > { %740 = vst [vmem:[%s1743_s28 + $0x8] sm:$0xff] %v737_v6 }
 0x189 PF: > { %v753_v10 = vrot.slane %v736_v4, 4  ;;  %v759_v11 = vrot.slane %v737_v6, 4  ;;  %v765_v12 = vrot.slane %v738_v62, 4  ;;  %v805_v13 = vmul.f32 %v736_v4, %v736_v4  ;;  %s1108_s30 = smul.u32 384, %s1494_s21  ;;  %s870_s7 = sshll.u32 %s1743_s28, 4  ;;  %s1759_s7 = int_to_ptr.vmem [resolvable:$true] %s870_s7 }
 0x18a   : > { %v806_v14 = vmul.f32 %v737_v6, %v737_v6  ;;  %v807_v15 = vmul.f32 %v738_v62, %v738_v62  ;;  %v1510_v19 = vmov 1966171168   ;;  %s856_s21 = scalar_lea.sflag [#allocation5], %s1722_s13  ;;  %s1360_s10 = scalar_lea.vmem %s1759_s7, 384 }
 0x18b   : > { %v754_v16 = vadd.f32 %v753_v10, %v736_v4  ;;  %v760_v17 = vadd.f32 %v759_v11, %v737_v6  ;;  %v766_v18 = vadd.f32 %v765_v12, %v738_v62  ;;  %v776_v20 = vunpack.c.l.s4 %v1510_v19  ;;  %s1757_s12 = scalar_lea.hbm %s1866_s3, %s1108_s30  ;;  %p1361_p2 = scmp.ne.s32.totalorder %s1759_s7, %s1360_s10 }
 0x18c   : > { %v808_v21 = vrot.slane %v805_v13, 4  ;;  %v814_v22 = vrot.slane %v806_v14, 4  ;;  %v820_v23 = vrot.slane %v807_v15, 4  ;;  %s1511_s15 = smov [#allocation9]  }
 0x18d   : > { %v755_v24 = vrot.slane %v754_v16, 2  ;;  %v761_v25 = vrot.slane %v760_v17, 2  ;;  %v767_v26 = vrot.slane %v766_v18, 2  ;;  %v777_v27 = vunpack.c.0.s8 %v776_v20  ;;  %p1362_p4 = pnand %p1361_p2, %p1670_p8  ;;  %s1364_s24 = sshll.u32 %s1511_s15, 4  ;;  %s1365_s24 = int_to_ptr.vmem [resolvable:$false] %s1364_s24 }
 0x18e   : > { %v809_v28 = vadd.f32 %v808_v21, %v805_v13  ;;  %v815_v29 = vadd.f32 %v814_v22, %v806_v14  ;;  %v821_v30 = vadd.f32 %v820_v23, %v807_v15  ;;  %s1366_s17 = scalar_lea.vmem %s1365_s24, 768  ;;  %p1367_p13 = scmp.lt.s32.totalorder %s1759_s7, %s1365_s24 }
 0x18f   : > { %v756_v31 = vadd.f32 %v755_v24, %v754_v16  ;;  %v762_v32 = vadd.f32 %v761_v25, %v760_v17  ;;  %v768_v33 = vadd.f32 %v767_v26, %v766_v18  ;;  %p1363_p6 = pneg %p1362_p4  ;;  %p1368_p0 = scmp.lt.s32.totalorder %s1366_s17, %s1360_s10 }
 0x191   : > { %p1369_p5 = por %p1368_p0, %p1367_p13 }
 0x193   : > { %p1370_p9 = pnand %p1369_p5, %p1363_p6 }
 0x195   : > { %1373 = shalt.err (!%p1370_p9)
}
 0x196   : > { %s1374_s13 = scalar_lea.hbm %s1757_s12, 384  ;;  %s1378_s26 = scalar_lea.hbm %s1866_s3, 1152 }
 0x197   : > { %p1375_p12 = scmp.ne.s32.totalorder %s1757_s12, %s1374_s13  ;;  %p1379_p3 = scmp.lt.u32.totalorder %s1757_s12, %s1866_s3 }
 0x198   : > { %p1380_p10 = scmp.lt.u32.totalorder %s1378_s26, %s1374_s13  ;;  %p1382_p2 = scmp.lt.u32.totalorder %s1374_s13, %s1757_s12 }
 0x199   : > { %p1376_p11 = pnand %p1375_p12, %p1670_p8 }
 0x19a   : > { %p1381_p1 = por %p1380_p10, %p1379_p3 }
 0x19b   : > { %p1377_p7 = pneg %p1376_p11 }
 0x19c   : > { %p1383_p4 = por %p1382_p2, %p1381_p1 }
 0x19e   : > { %p1384_p6 = pnand %p1383_p4, %p1377_p7 }
 0x1a0   : > { %1387 = shalt.err (!%p1384_p6)
}
 0x1a1   : > { %1119 = dma.vmem_to_hbm [thread:$0]  (%p1670_p8), %s1759_s7, 384, %s1757_s12, %s856_s21   ;;  %v810_v34 = vrot.slane %v809_v28, 2  ;;  %v816_v35 = vrot.slane %v815_v29, 2  ;;  %v822_v36 = vrot.slane %v821_v30, 2  ;;  %v757_v37 = vrot.slane %v756_v31, 1 }
 0x1a2   : > { %v763_v38 = vrot.slane %v762_v32, 1  ;;  %v769_v39 = vrot.slane %v768_v33, 1  ;;  %v780_v40 = vsub.s32 %v777_v27, %v1739_v53  ;;  %v752_v61 = vld [vmem:[#allocation10] sm:$0x7]  ;;  %s1512_s8 = smov [#allocation10]   ;;  %vm1785_vm1 = vcmp.lt.s32.totalorder %v721_v52, 384 }
 0x1a3   : > { %v811_v41 = vadd.f32 %v810_v34, %v809_v28  ;;  %v817_v42 = vadd.f32 %v816_v35, %v815_v29  ;;  %v823_v43 = vadd.f32 %v822_v36, %v821_v30  ;;  %v758_v44 = vadd.f32 %v757_v37, %v756_v31  ;;  %s881_s7 = sshll.u32 %s1512_s8, 4  ;;  %s1513_s6 = smov [#allocation12]   ;;  %v804_v2 = vld [vmem:[#allocation12] sm:$0x7]  ;;  %s882_s7 = int_to_ptr.vmem [resolvable:$true] %s881_s7 }
 0x1a4   : > { %v764_v45 = vadd.f32 %v763_v38, %v762_v32  ;;  %v770_v46 = vadd.f32 %v769_v39, %v768_v33  ;;  %s892_s9 = sshll.u32 %s1513_s6, 4  ;;  %s1388_s12 = scalar_lea.vmem %s882_s7, 48  ;;  %s1791_s9 = int_to_ptr.vmem [resolvable:$true] %s892_s9 }
 0x1a5   : > { %v812_v47 = vrot.slane %v811_v41, 1  ;;  %v818_v48 = vrot.slane %v817_v42, 1  ;;  %v824_v49 = vrot.slane %v823_v43, 1  ;;  %p1389_p8 = scmp.ne.s32.totalorder %s882_s7, %s1388_s12  ;;  %p1888_p13 = scmp.ne.s32.totalorder %s1875_s27, 0 }
 0x1a6   : > { %v774_v50 = vcombine.low %v758_v44, %v764_v45  ;;  %v788_v51 = vrot.slane %v770_v46, %v780_v40  ;;  %s1394_s21 = scalar_lea.vmem %s882_s7, 64  ;;  %p1395_p9 = scmp.lt.s32.totalorder %s882_s7, %s882_s7 }
 0x1a7   : > { %v813_v54 = vadd.f32 %v812_v47, %v811_v41  ;;  %v819_v55 = vadd.f32 %v818_v48, %v817_v42  ;;  %v825_v56 = vadd.f32 %v824_v49, %v823_v43  ;;  %p1390_p0 = pnand %p1389_p8, %p1888_p13  ;;  %p1396_p12 = scmp.lt.s32.totalorder %s1394_s21, %s1388_s12 }
 0x1a8   : > { %v781_v57 = vrot.slane %v774_v50, %v780_v40 }
 0x1a9   : > { %v829_v58 = vcombine.low %v813_v54, %v819_v55  ;;  %v843_v59 = vrot.slane %v825_v56, %v780_v40  ;;  %p1391_p5 = pneg %p1390_p0  ;;  %p1397_p11 = por %p1396_p12, %p1395_p9 }
 0x1aa   : > { %v789_v60 = vcombine.low %v781_v57, %v788_v51 }
 0x1ab   : > { %v836_v53 = vrot.slane %v829_v58, %v780_v40  ;;  %p1398_p7 = pnand %p1397_p11, %p1391_p5 }
 0x1ac   : > { %v796_v62 = vrot.slane %v789_v60, %v780_v40 }
 0x1ad   : > { %v844_v0 = vcombine.low %v836_v53, %v843_v59 }
 0x1ae   : > { %v798_v1 = vadd.f32 %v796_v62, %v752_v61 }
 0x1af   : > { %v851_v3 = vrot.slane %v844_v0, %v780_v40 }
 0x1b0   : > { %803 = vst.msk [vmem:[#allocation10] sm:$0x7] %vm1785_vm1, %v798_v1 }
 0x1b1   : > { %v853_v4 = vadd.f32 %v851_v3, %v804_v2 }
 0x1b2   : > { %1401 = shalt.err (!%p1398_p7)
}
 0x1b3   : > { %s1402_s24 = scalar_lea.hbm %s1867_s4, 48 }
 0x1b4   : > { %p1403_p3 = scmp.ne.s32.totalorder %s1867_s4, %s1402_s24  ;;  %p1408_p2 = scmp.lt.u32.totalorder %s1402_s24, %s1867_s4 }
 0x1b6   : > { %p1404_p10 = pnand %p1403_p3, %p1888_p13 }
 0x1b8   : > { %p1405_p1 = pneg %p1404_p10 }
 0x1ba   : > { %p1410_p4 = pnand %p1408_p2, %p1405_p1 }
 0x1bc   : > { %1413 = shalt.err (!%p1410_p4)
}
 0x1bd   : > { %1121 = dma.vmem_to_hbm [thread:$0]  (%p1888_p13), %s882_s7, 48, %s1867_s4, [#allocation11]   ;;  %854 = vst.msk [vmem:[#allocation12] sm:$0x7] %vm1785_vm1, %v853_v4 }
 0x1be   : > { %s1414_s30 = scalar_lea.vmem %s1791_s9, 48  ;;  %s1420_s8 = scalar_lea.vmem %s1791_s9, 64 }
 0x1bf   : > { %p1415_p6 = scmp.ne.s32.totalorder %s1791_s9, %s1414_s30  ;;  %p1421_p5 = scmp.lt.s32.totalorder %s1791_s9, %s1791_s9 }
 0x1c0   : > { %p1422_p9 = scmp.lt.s32.totalorder %s1420_s8, %s1414_s30 }
 0x1c1   : > { %p1416_p8 = pnand %p1415_p6, %p1888_p13 }
 0x1c2   : > { %p1423_p12 = por %p1422_p9, %p1421_p5 }
 0x1c3   : > { %p1417_p0 = pneg %p1416_p8 }
 0x1c5   : > { %p1424_p11 = pnand %p1423_p12, %p1417_p0 }
 0x1c7   : > { %1427 = shalt.err (!%p1424_p11)
}
 0x1c8   : > { %s1428_s7 = scalar_lea.hbm %s1868_s5, 48 }
 0x1c9   : > { %p1429_p7 = scmp.ne.s32.totalorder %s1868_s5, %s1428_s7  ;;  %p1434_p1 = scmp.lt.u32.totalorder %s1428_s7, %s1868_s5 }
 0x1cb   : > { %p1430_p3 = pnand %p1429_p7, %p1888_p13 }
 0x1cd   : > { %p1431_p10 = pneg %p1430_p3 }
 0x1cf   : > { %p1436_p2 = pnand %p1434_p1, %p1431_p10 }
 0x1d1   : > { %1439 = shalt.err (!%p1436_p2)
}
 0x1d2   : > { %1123 = dma.vmem_to_hbm [thread:$0]  (%p1888_p13), %s1791_s9, 48, %s1868_s5, [#allocation11]  }
 0x1d3   : > { %1473 = dma.done.wait (%p1888_p13), [#allocation11], 96  }
 0x1d4   : > { %1475 = vsyncadd (%p1888_p13), [#allocation11], 4294967200 }
 0x1d5 PF: > { %p1153_p4 = scmp.ge.s32.totalorder %s1502_s23, 2  ;;  %s912_s25 = sand.u32 1, %s1482_s18  }
 0x1d6   : > { %p1889_p6 = scmp.ne.s32.totalorder %s1877_s29, 0  ;;  %s913_s14 = scalar_lea.sflag [#allocation5], %s912_s25 }
 0x1d8   : > { %p1141_p8 = pnand %p1153_p4, %p1889_p6 }
 0x1da   : > { %1477 = dma.done.wait (!%p1141_p8), %s913_s14, 384  }
 0x1db   : > { %1479 = vsyncadd (!%p1141_p8), %s913_s14, 4294966912  ;;  %s24_s23 = sadd.s32 1, %s1502_s23   ;;  %s1890_s18 = smov %s1486_s19 }
 0x1dc   : > { %p21_p0 = scmp.ge.s32.totalorder %s24_s23, 5   ;;  %s1891_s19 = smov %s1490_s20 }
 0x1dd   : > { %s1892_s20 = smov %s1679_s16  ;;  %s1893_s21 = smov %s1498_s22 }
 0x1de   : > { %s1894_s22 = smov %s1896_s11  ;;  %23 = sbr.rel (!%p21_p0) target bundleno = 8 (0x8), region = 114 }
 0x1e5   :  { %918 = vsyncpa [#allocation4], 1 }
 0x1e6   :  { %920 = vsyncpa [#allocation4 + $0x1], 1 }
 0x1e7   :  { %921 = vsyncpa [#allocation7], 1 }
 0x1e8   :  { %922 = vsyncpa [#allocation5], 1 }
 0x1e9   :  { %924 = vsyncpa [#allocation5 + $0x1], 1 }
 0x1ea   :  { %925 = vsyncpa [#allocation11], 1 }

// kernel: autoenc2_forward_train.21
= control target key start
LH: loop header
LB: loop body
LE: loop exit
PB: predicated region body
PF: predicated region fallthrough
CT: control target
= control target key end

     0   :  { %12 = vsyncpa [#allocation3], 0  ;;  %s469_s0 = inlined_call_operand.hbm [shape: f32[8,256], index: 0, kind: input, shape index: {}]   ;;  %s470_s1 = inlined_call_operand.hbm [shape: f32[1,256], index: 1, kind: input, shape index: {}]   ;;  %s471_s2 = inlined_call_operand.hbm [shape: f32[1,256], index: 2, kind: input, shape index: {}]   ;;  %s472_s3 = inlined_call_operand.hbm [shape: f32[1,256], index: 3, kind: input, shape index: {}]   ;;  %s473_s4 = inlined_call_operand.hbm [shape: f32[1,256], index: 4, kind: input, shape index: {}]   ;;  %s474_s5 = inlined_call_operand.hbm [shape: f32[8,256], index: 5, kind: output, shape index: {0}]   ;;  %s475_s6 = inlined_call_operand.hbm [shape: f32[8,256], index: 6, kind: output, shape index: {1}]  }
   0x1   :  { %13 = vsyncpa [#allocation6], 0 }
   0x2   :  { %14 = vsyncpa [#allocation9], 0 }
   0x3   :  { %15 = vsyncpa [#allocation4], 0 }
   0x4   :  { %16 = vsyncpa [#allocation13], 0  ;;  %s343_s21 = smov [#allocation5]   ;;  %s344_s23 = smov [#allocation8]  }
   0x5   :  { %s33_s22 = sshll.u32 %s343_s21, 4  ;;  %s53_s24 = sshll.u32 %s344_s23, 4  ;;  %s34_s22 = int_to_ptr.vmem [resolvable:$true] %s33_s22  ;;  %s54_s24 = int_to_ptr.vmem [resolvable:$true] %s53_s24 }
   0x6   :  { %s179_s27 = scalar_lea.hbm %s470_s1, 32 }
   0x7   :  { %p180_p0 = scmp.ne.s32.totalorder %s470_s1, %s179_s27  ;;  %p183_p1 = scmp.lt.u32.totalorder %s179_s27, %s470_s1 }
   0x9   :  { %p185_p2 = pnand %p183_p1, %p180_p0 }
   0xb   :  { %188 = shalt.err (!%p185_p2)
}
   0xc   :  { %s189_s8 = scalar_lea.vmem %s34_s22, 32  ;;  %p194_p4 = scmp.lt.s32.totalorder %s34_s22, %s34_s22 }
   0xd   :  { %p190_p3 = scmp.ne.s32.totalorder %s34_s22, %s189_s8  ;;  %p195_p5 = scmp.lt.s32.totalorder %s189_s8, %s189_s8 }
   0xf   :  { %p196_p6 = por %p195_p5, %p194_p4 }
  0x11   :  { %p197_p7 = pnand %p196_p6, %p190_p3 }
  0x13   :  { %200 = shalt.err (!%p197_p7)
}
  0x14   :  { %36 = dma.hbm_to_vmem [thread:$0]  %s470_s1, 32, %s34_s22, [#allocation6]  }
  0x15   :  { %s201_s13 = scalar_lea.hbm %s472_s3, 32 }
  0x16   :  { %p202_p8 = scmp.ne.s32.totalorder %s472_s3, %s201_s13  ;;  %p205_p9 = scmp.lt.u32.totalorder %s201_s13, %s472_s3 }
  0x18   :  { %p207_p10 = pnand %p205_p9, %p202_p8 }
  0x1a   :  { %210 = shalt.err (!%p207_p10)
}
  0x1b   :  { %s211_s18 = scalar_lea.vmem %s54_s24, 32  ;;  %p216_p12 = scmp.lt.s32.totalorder %s54_s24, %s54_s24 }
  0x1c   :  { %p212_p11 = scmp.ne.s32.totalorder %s54_s24, %s211_s18  ;;  %p217_p13 = scmp.lt.s32.totalorder %s211_s18, %s211_s18 }
  0x1e   :  { %p218_p0 = por %p217_p13, %p216_p12 }
  0x20   :  { %p219_p1 = pnand %p218_p0, %p212_p11 }
  0x22   :  { %222 = shalt.err (!%p219_p1)
}
  0x23   :  { %56 = dma.hbm_to_vmem [thread:$0]  %s472_s3, 32, %s54_s24, [#allocation9]  }
  0x24   :  { %s345_s20 = smov [#allocation2]   ;;  %s346_s22 = smov [#allocation7]  }
  0x25   :  { %s23_s21 = sshll.u32 %s345_s20, 4  ;;  %s43_s23 = sshll.u32 %s346_s22, 4  ;;  %s24_s21 = int_to_ptr.vmem [resolvable:$true] %s23_s21  ;;  %s44_s23 = int_to_ptr.vmem [resolvable:$true] %s43_s23 }
  0x26   :  { %s223_s27 = scalar_lea.hbm %s469_s0, 256 }
  0x27   :  { %p224_p2 = scmp.ne.s32.totalorder %s469_s0, %s223_s27  ;;  %p227_p3 = scmp.lt.u32.totalorder %s223_s27, %s469_s0 }
  0x29   :  { %p229_p4 = pnand %p227_p3, %p224_p2 }
  0x2b   :  { %232 = shalt.err (!%p229_p4)
}
  0x2c   :  { %s233_s3 = scalar_lea.vmem %s24_s21, 256  ;;  %p238_p6 = scmp.lt.s32.totalorder %s24_s21, %s24_s21 }
  0x2d   :  { %p234_p5 = scmp.ne.s32.totalorder %s24_s21, %s233_s3  ;;  %p239_p7 = scmp.lt.s32.totalorder %s233_s3, %s233_s3 }
  0x2f   :  { %p240_p8 = por %p239_p7, %p238_p6 }
  0x31   :  { %p241_p9 = pnand %p240_p8, %p234_p5 }
  0x33   :  { %244 = shalt.err (!%p241_p9)
}
  0x34   :  { %26 = dma.hbm_to_vmem [thread:$0]  %s469_s0, 256, %s24_s21, [#allocation3]  }
  0x35   :  { %s245_s11 = scalar_lea.hbm %s471_s2, 32 }
  0x36   :  { %p246_p10 = scmp.ne.s32.totalorder %s471_s2, %s245_s11  ;;  %p249_p11 = scmp.lt.u32.totalorder %s245_s11, %s471_s2 }
  0x38   :  { %p251_p12 = pnand %p249_p11, %p246_p10 }
  0x3a   :  { %254 = shalt.err (!%p251_p12)
}
  0x3b   :  { %s255_s16 = scalar_lea.vmem %s44_s23, 32  ;;  %p260_p0 = scmp.lt.s32.totalorder %s44_s23, %s44_s23 }
  0x3c   :  { %p256_p13 = scmp.ne.s32.totalorder %s44_s23, %s255_s16  ;;  %p261_p1 = scmp.lt.s32.totalorder %s255_s16, %s255_s16 }
  0x3e   :  { %p262_p2 = por %p261_p1, %p260_p0 }
  0x40   :  { %p263_p3 = pnand %p262_p2, %p256_p13 }
  0x42   :  { %266 = shalt.err (!%p263_p3)
}
  0x43   :  { %46 = dma.hbm_to_vmem [thread:$0]  %s471_s2, 32, %s44_s23, [#allocation6]  }
  0x44   :  { %s347_s18 = smov [#allocation10]   ;;  %s267_s21 = scalar_lea.hbm %s473_s4, 32 }
  0x45   :  { %s63_s1 = sshll.u32 %s347_s18, 4  ;;  %p268_p4 = scmp.ne.s32.totalorder %s473_s4, %s267_s21  ;;  %s64_s1 = int_to_ptr.vmem [resolvable:$true] %s63_s1 }
  0x46   :  { %p271_p5 = scmp.lt.u32.totalorder %s267_s21, %s473_s4 }
  0x48   :  { %p273_p6 = pnand %p271_p5, %p268_p4 }
  0x4a   :  { %276 = shalt.err (!%p273_p6)
}
  0x4b   :  { %s277_s28 = scalar_lea.vmem %s64_s1, 32  ;;  %p282_p8 = scmp.lt.s32.totalorder %s64_s1, %s64_s1 }
  0x4c   :  { %p278_p7 = scmp.ne.s32.totalorder %s64_s1, %s277_s28  ;;  %p283_p9 = scmp.lt.s32.totalorder %s277_s28, %s277_s28 }
  0x4e   :  { %p284_p10 = por %p283_p9, %p282_p8 }
  0x50   :  { %p285_p11 = pnand %p284_p10, %p278_p7 }
  0x52   :  { %288 = shalt.err (!%p285_p11)
}
  0x53   :  { %66 = dma.hbm_to_vmem [thread:$0]  %s473_s4, 32, %s64_s1, [#allocation9]  }
  0x54   :  { %333 = dma.done.wait [#allocation3], 256  }
  0x55   :  { %334 = vsyncadd [#allocation3], 4294967040 }
  0x56   :  { %335 = dma.done.wait [#allocation6], 64  }
  0x57   :  { %336 = vsyncadd [#allocation6], 4294967232 }
  0x58   :  { %337 = dma.done.wait [#allocation9], 64  }
  0x59   :  { %338 = vsyncadd [#allocation9], 4294967232  ;;  %v82_v0 = vld [vmem:[#allocation5] sm:$0x3]  ;;  %v84_v1 = vld [vmem:[#allocation7] sm:$0x3]  ;;  %v99_v8 = vlaneseq }
  0x5a   :  { %v83_v2 = vmul.f32 0.125, %v82_v0  ;;  %v85_v3 = vmul.f32 0.125, %v84_v1  ;;  %v91_v10 = vld [vmem:[#allocation8] sm:$0x3]  ;;  %v93_v15 = vld [vmem:[#allocation10] sm:$0x3] }
  0x5b   :  { %v100_v9 = vshrl.u32 %v99_v8, 7  ;;  %v96_v16 = vld [vmem:[#allocation2] sm:$0xff]  ;;  %v97_v17 = vld [vmem:[#allocation2 + $0x8] sm:$0xff]  ;;  %s348_s4 = smov [#allocation11]  }
  0x5c   :  { %v86_v4 = vmul.f32 %v83_v2, %v83_v2  ;;  %s143_s29 = sshll.u32 %s348_s4, 4  ;;  %s144_s29 = int_to_ptr.vmem [resolvable:$true] %s143_s29 }
  0x5d   :  { %v101_v11 = vsub.s32 0, %v100_v9  ;;  %v105_v12 = vsub.s32 1, %v100_v9  ;;  %s289_s30 = scalar_lea.vmem %s144_s29, 256  ;;  %p294_p13 = scmp.lt.s32.totalorder %s144_s29, %s144_s29 }
  0x5e   :  { %v87_v5 = vsub.f32 %v85_v3, %v86_v4  ;;  %p290_p12 = scmp.ne.s32.totalorder %s144_s29, %s289_s30  ;;  %p295_p0 = scmp.lt.s32.totalorder %s289_s30, %s289_s30 }
  0x60   :  { %v88_v6 = vmax.f32 %v87_v5, 0.0  ;;  %p296_p1 = por %p295_p0, %p294_p13 }
  0x62   :  { %v89_v7 = vadd.f32 1e-05, %v88_v6  ;;  %p297_p2 = pnand %p296_p1, %p290_p12 }
  0x64   :  { %175 = vrsqrt.f32 %v89_v7 }
  0x6e   :  { %v176_v13 = vpop.eup %175 }
  0x6f   :  { %v92_v14 = vmul.f32 %v176_v13, %v91_v10 }
  0x71   :  { %v94_v18 = vmul.f32 %v92_v14, %v83_v2  ;;  %v102_v19 = vrot.slane %v92_v14, %v101_v11  ;;  %v106_v20 = vrot.slane %v92_v14, %v105_v12 }
  0x73   :  { %v95_v21 = vsub.f32 %v93_v15, %v94_v18  ;;  %v109_v22 = vmul.f32 %v102_v19, %v96_v16  ;;  %v110_v23 = vmul.f32 %v106_v20, %v97_v17 }
  0x75   :  { %v115_v24 = vrot.slane %v95_v21, %v101_v11  ;;  %v119_v25 = vrot.slane %v95_v21, %v105_v12 }
  0x77   :  { %v122_v26 = vadd.f32 %v115_v24, %v109_v22  ;;  %v123_v27 = vadd.f32 %v119_v25, %v110_v23 }
  0x79   :  { %v126_v28 = vmul.f32 %v122_v26, %v122_v26  ;;  %v127_v29 = vmul.f32 %v123_v27, %v123_v27  ;;  %124 = vst [vmem:[#allocation11] sm:$0xff] %v122_v26  ;;  %125 = vst [vmem:[#allocation11 + $0x8] sm:$0xff] %v123_v27 }
  0x7b   :  { %v128_v30 = vadd.f32 %v127_v29, %v126_v28 }
  0x7d   :  { %129 = vadd.xlane.f32.xlu0 %v128_v30 }
  0x7e   :  { %300 = shalt.err (!%p297_p2)
}
  0x7f   :  { %s301_s24 = scalar_lea.hbm %s474_s5, 256 }
  0x80   :  { %p302_p3 = scmp.ne.s32.totalorder %s474_s5, %s301_s24  ;;  %p305_p4 = scmp.lt.u32.totalorder %s301_s24, %s474_s5 }
  0x82   :  { %p307_p5 = pnand %p305_p4, %p302_p3 }
  0x84   :  { %310 = shalt.err (!%p307_p5)
}
  0x85   :  { %146 = dma.vmem_to_hbm [thread:$0]  %s144_s29, 256, %s474_s5, [#allocation4]  }
  0x86   :  { %s349_s14 = smov [#allocation12]  }
  0x87   :  { %s153_s15 = sshll.u32 %s349_s14, 4  ;;  %s154_s15 = int_to_ptr.vmem [resolvable:$true] %s153_s15 }
  0x88   :  { %s311_s16 = scalar_lea.vmem %s154_s15, 256  ;;  %p316_p7 = scmp.lt.s32.totalorder %s154_s15, %s154_s15 }
  0x89   :  { %p312_p6 = scmp.ne.s32.totalorder %s154_s15, %s311_s16  ;;  %p317_p8 = scmp.lt.s32.totalorder %s311_s16, %s311_s16 }
  0x8b   :  { %p318_p9 = por %p317_p8, %p316_p7 }
  0x8d   :  { %p319_p10 = pnand %p318_p9, %p312_p6 }
 0x10a   :  { %v130_v31 = vpop.xlane.xlu0 %129 }
 0x10b   :  { %v131_v32 = vmax.f32 %v130_v31, 1e-24 }
 0x10d   :  { %177 = vrsqrt.f32 %v131_v32 }
 0x117   :  { %v178_v33 = vpop.eup %177 }
 0x118   :  { %v133_v34 = vmul.f32 %v178_v33, %v122_v26  ;;  %v134_v35 = vmul.f32 %v178_v33, %v123_v27 }
 0x11a   :  { %135 = vst [vmem:[#allocation12] sm:$0xff] %v133_v34  ;;  %136 = vst [vmem:[#allocation12 + $0x8] sm:$0xff] %v134_v35 }
 0x11b   :  { %322 = shalt.err (!%p319_p10)
}
 0x11c   :  { %s323_s17 = scalar_lea.hbm %s475_s6, 256 }
 0x11d   :  { %p324_p11 = scmp.ne.s32.totalorder %s475_s6, %s323_s17  ;;  %p327_p12 = scmp.lt.u32.totalorder %s323_s17, %s475_s6 }
 0x11f   :  { %p329_p13 = pnand %p327_p12, %p324_p11 }
 0x121   :  { %332 = shalt.err (!%p329_p13)
}
 0x122   :  { %156 = dma.vmem_to_hbm [thread:$0]  %s154_s15, 256, %s475_s6, [#allocation13]  }
 0x123   :  { %339 = dma.done.wait [#allocation4], 256  }
 0x124   :  { %340 = vsyncadd [#allocation4], 4294967040 }
 0x125   :  { %341 = dma.done.wait [#allocation13], 256  }
 0x126   :  { %342 = vsyncadd [#allocation13], 4294967040 }
 0x127   :  { %163 = vsyncpa [#allocation3], 1 }
 0x128   :  { %164 = vsyncpa [#allocation6], 1 }
 0x129   :  { %165 = vsyncpa [#allocation9], 1 }
 0x12a   :  { %166 = vsyncpa [#allocation4], 1 }
 0x12b   :  { %167 = vsyncpa [#allocation13], 1 }

// kernel: autoenc2_forward_train.39
= control target key start
LH: loop header
LB: loop body
LE: loop exit
PB: predicated region body
PF: predicated region fallthrough
CT: control target
= control target key end

     0   :  { %10 = vsyncpa [#allocation3], 0  ;;  %s1131_s0 = inlined_call_operand.hbm [shape: f32[24,384], index: 0, kind: input, shape index: {}]   ;;  %s1132_s1 = inlined_call_operand.hbm [shape: f32[1,384], index: 1, kind: input, shape index: {}]   ;;  %s1133_s2 = inlined_call_operand.hbm [shape: f32[1,384], index: 2, kind: input, shape index: {}]   ;;  %s1134_s3 = inlined_call_operand.hbm [shape: f32[1,384], index: 3, kind: input, shape index: {}]   ;;  %s1135_s4 = inlined_call_operand.hbm [shape: f32[1,384], index: 4, kind: input, shape index: {}]   ;;  %s1136_s5 = inlined_call_operand.hbm [shape: f32[24,384], index: 5, kind: output, shape index: {}]  }
   0x1   :  { %12 = vsyncpa [#allocation3 + $0x1], 0 }
   0x2   :  { %13 = vsyncpa [#allocation6], 0 }
   0x3   :  { %14 = vsyncpa [#allocation9], 0 }
   0x4   :  { %15 = vsyncpa [#allocation4], 0 }
   0x5   :  { %17 = vsyncpa [#allocation4 + $0x1], 0  ;;  %s849_s18 = smov 0   ;;  %s851_s19 = smov 0  }
   0x6   :  { %s853_s20 = smov 0   ;;  %s855_s21 = smov 0  }
   0x7 LB: > { %s813_s22 = smov [#allocation5]   ;;  %s870_s24 = sadd.s32 4294967295, %s811_s21   ;;  %s811_s21 = sphi %s855_s21, %s1158_s21   ;;  %s807_s20 = sphi %s853_s20, %s1157_s20   ;;  %s803_s19 = sphi %s851_s19, %s1156_s19   ;;  %s799_s18 = sphi %s849_s18, %s1155_s18  }
   0x8   : > { %s177_s23 = sshll.u32 %s813_s22, 4  ;;  %p485_p0 = scmp.ge.s32.totalorder %s811_s21, 1  ;;  %s875_s23 = int_to_ptr.vmem [resolvable:$true] %s177_s23 }
   0x9   : > { %p1137_p1 = scmp.eq.s32.totalorder %s870_s24, 0  ;;  %p164_p2 = scmp.lt.s32.totalorder %s811_s21, 4 }
   0xa   : > { %s814_s26 = smov [#allocation8]   ;;  %s815_s28 = smov [#allocation7]  }
   0xb   : > { %p877_p3 = pnand %p485_p0, %p164_p2  ;;  %s199_s27 = sshll.u32 %s814_s26, 4  ;;  %s883_s27 = int_to_ptr.vmem [resolvable:$true] %s199_s27 }
   0xc   : > { %s188_s29 = sshll.u32 %s815_s28, 4  ;;  %s816_s6 = smov [#allocation10]   ;;  %s891_s29 = int_to_ptr.vmem [resolvable:$true] %s188_s29 }
   0xd   : > { %s1140_s25 = scalar_select %p877_p3, 1, 0 }
   0xe   : > { %p524_p4 = pneg %p877_p3  ;;  %s893_s7 = sshll.u32 %s816_s6, 4  ;;  %s211_s7 = int_to_ptr.vmem [resolvable:$true] %s893_s7 }
   0xf   : > { %s595_s10 = scalar_lea.hbm %s1132_s1, 48 }
  0x10   : > { %p887_p5 = pnand %p524_p4, %p1137_p1  ;;  %p596_p6 = scmp.ne.s32.totalorder %s1132_s1, %s595_s10 }
  0x11   : > { %p602_p10 = scmp.lt.u32.totalorder %s595_s10, %s1132_s1 }
  0x12   : > { %p903_p7 = pneg %p887_p5 }
  0x14   : > { %p598_p8 = pnand %p903_p7, %p596_p6 }
  0x16   : > { %p599_p9 = pneg %p598_p8 }
  0x18   : > { %p604_p11 = pnand %p602_p10, %p599_p9 }
  0x1a   : > { %607 = shalt.err (!%p604_p11)
}
  0x1b   : > { %s608_s16 = scalar_lea.vmem %s875_s23, 48  ;;  %s615_s17 = scalar_lea.vmem %s875_s23, 64 }
  0x1c   : > { %p609_p12 = scmp.ne.s32.totalorder %s875_s23, %s608_s16  ;;  %p616_p2 = scmp.lt.s32.totalorder %s875_s23, %s875_s23 }
  0x1d   : > { %p617_p4 = scmp.lt.s32.totalorder %s615_s17, %s608_s16 }
  0x1e   : > { %p611_p13 = pnand %p609_p12, %p903_p7 }
  0x1f   : > { %p618_p6 = por %p617_p4, %p616_p2 }
  0x20   : > { %p612_p0 = pneg %p611_p13 }
  0x22   : > { %p619_p8 = pnand %p618_p6, %p612_p0 }
  0x24   : > { %622 = shalt.err (!%p619_p8)
}
  0x25   : > { %527 = dma.hbm_to_vmem [thread:$0]  (!%p887_p5), %s1132_s1, 48, %s875_s23, [#allocation6]  }
  0x26   : > { %s623_s8 = scalar_lea.hbm %s1134_s3, 48 }
  0x27   : > { %p624_p9 = scmp.ne.s32.totalorder %s1134_s3, %s623_s8  ;;  %p630_p12 = scmp.lt.u32.totalorder %s623_s8, %s1134_s3 }
  0x29   : > { %p626_p10 = pnand %p624_p9, %p903_p7 }
  0x2b   : > { %p627_p11 = pneg %p626_p10 }
  0x2d   : > { %p632_p13 = pnand %p630_p12, %p627_p11 }
  0x2f   : > { %635 = shalt.err (!%p632_p13)
}
  0x30   : > { %s636_s23 = scalar_lea.vmem %s883_s27, 48  ;;  %s643_s14 = scalar_lea.vmem %s883_s27, 64 }
  0x31   : > { %p637_p0 = scmp.ne.s32.totalorder %s883_s27, %s636_s23  ;;  %p644_p6 = scmp.lt.s32.totalorder %s883_s27, %s883_s27 }
  0x32   : > { %p645_p8 = scmp.lt.s32.totalorder %s643_s14, %s636_s23 }
  0x33   : > { %p639_p2 = pnand %p637_p0, %p903_p7 }
  0x34   : > { %p646_p9 = por %p645_p8, %p644_p6 }
  0x35   : > { %p640_p4 = pneg %p639_p2 }
  0x37   : > { %p647_p10 = pnand %p646_p9, %p640_p4 }
  0x39   : > { %650 = shalt.err (!%p647_p10)
}
  0x3a   : > { %533 = dma.hbm_to_vmem [thread:$0]  (!%p887_p5), %s1134_s3, 48, %s883_s27, [#allocation9]  }
  0x3b   : > { %s651_s26 = scalar_lea.hbm %s1133_s2, 48 }
  0x3c   : > { %p652_p11 = scmp.ne.s32.totalorder %s1133_s2, %s651_s26  ;;  %p658_p0 = scmp.lt.u32.totalorder %s651_s26, %s1133_s2 }
  0x3e   : > { %p654_p12 = pnand %p652_p11, %p903_p7 }
  0x40   : > { %p655_p13 = pneg %p654_p12 }
  0x42   : > { %p660_p2 = pnand %p658_p0, %p655_p13 }
  0x44   : > { %663 = shalt.err (!%p660_p2)
}
  0x45   : > { %s664_s27 = scalar_lea.vmem %s891_s29, 48  ;;  %s671_s10 = scalar_lea.vmem %s891_s29, 64 }
  0x46   : > { %p665_p4 = scmp.ne.s32.totalorder %s891_s29, %s664_s27  ;;  %p672_p9 = scmp.lt.s32.totalorder %s891_s29, %s891_s29 }
  0x47   : > { %p673_p10 = scmp.lt.s32.totalorder %s671_s10, %s664_s27 }
  0x48   : > { %p667_p6 = pnand %p665_p4, %p903_p7 }
  0x49   : > { %p674_p11 = por %p673_p10, %p672_p9 }
  0x4a   : > { %p668_p8 = pneg %p667_p6 }
  0x4c   : > { %p675_p12 = pnand %p674_p11, %p668_p8 }
  0x4e   : > { %678 = shalt.err (!%p675_p12)
}
  0x4f   : > { %530 = dma.hbm_to_vmem [thread:$0]  (!%p887_p5), %s1133_s2, 48, %s891_s29, [#allocation6]  }
  0x50   : > { %s679_s15 = scalar_lea.hbm %s1135_s4, 48 }
  0x51   : > { %p680_p13 = scmp.ne.s32.totalorder %s1135_s4, %s679_s15  ;;  %p686_p4 = scmp.lt.u32.totalorder %s679_s15, %s1135_s4 }
  0x53   : > { %p682_p0 = pnand %p680_p13, %p903_p7 }
  0x55   : > { %p683_p2 = pneg %p682_p0 }
  0x57   : > { %p688_p6 = pnand %p686_p4, %p683_p2 }
  0x59   : > { %691 = shalt.err (!%p688_p6)
}
  0x5a   : > { %s692_s28 = scalar_lea.vmem %s211_s7, 48  ;;  %s699_s29 = scalar_lea.vmem %s211_s7, 64 }
  0x5b   : > { %p693_p8 = scmp.ne.s32.totalorder %s211_s7, %s692_s28  ;;  %p700_p11 = scmp.lt.s32.totalorder %s211_s7, %s211_s7 }
  0x5c   : > { %p701_p12 = scmp.lt.s32.totalorder %s699_s29, %s692_s28 }
  0x5d   : > { %p695_p9 = pnand %p693_p8, %p903_p7 }
  0x5e   : > { %p702_p1 = por %p701_p12, %p700_p11 }
  0x5f   : > { %p696_p10 = pneg %p695_p9 }
  0x61   : > { %p703_p3 = pnand %p702_p1, %p696_p10 }
  0x63   : > { %706 = shalt.err (!%p703_p3)
}
  0x64   : > { %536 = dma.hbm_to_vmem [thread:$0]  (!%p887_p5), %s1135_s4, 48, %s211_s7, [#allocation9]  }
  0x65   : > { %s484_s13 = sadd.s32 4294967294, %s811_s21   ;;  %s994_s30 = sadd.s32 1, %s811_s21  }
  0x66   : > { %s27_s9 = ssub.s32 %s811_s21, %s994_s30  ;;  %s30_s27 = sadd.s32 1, %s807_s20 }
  0x67   : > { %p28_p1 = scmp.eq.s32.totalorder %s27_s9, 0  ;;  %p37_p3 = scmp.ne.s32.totalorder %s807_s20, %s803_s19 }
  0x68   : > { %p38_p7 = scmp.eq.s32.totalorder %s811_s21, 0  ;;  %p43_p13 = scmp.ne.s32.totalorder %s803_s19, %s799_s18 }
  0x69   : > { %s1005_s10 = scalar_select %p28_p1, %s807_s20, %s30_s27  }
  0x6a   : > { %p39_p0 = por %p38_p7, %p37_p3  ;;  %p1143_p2 = scmp.eq.s32.totalorder %s870_s24, 0 }
  0x6b   : > { %p151_p5 = scmp.eq.s32.totalorder %s870_s24, 2  ;;  %p157_p6 = scmp.eq.s32.totalorder %s484_s13, 2 }
  0x6c   : > { %p1009_p4 = por %p1143_p2, %p43_p13  ;;  %p549_p8 = scmp.lt.s32.totalorder %s811_s21, 3 }
  0x6d   : > { %s221_s7 = sand.u32 1, %s807_s20   ;;  %p1016_p9 = por %p151_p5, %p37_p3 }
  0x6e   : > { %p1020_p10 = por %p157_p6, %p43_p13  ;;  %s500_s14 = smul.u32 24, %s221_s7 }
  0x6f   : > { %s1145_s12 = scalar_select %p1016_p9, 1, 0 }
  0x70   : > { %s1146_s23 = scalar_select %p1020_p10, 1, 0 }
  0x71   : > { %s501_s15 = smul.u32 384, %s811_s21  ;;  %p1025_p11 = pnand %p549_p8, %p39_p0 }
  0x72   : > { %s225_s28 = scalar_lea.vmem [#allocation2], %s500_s14  ;;  %s222_s6 = scalar_lea.sflag [#allocation3], %s221_s7 }
  0x73   : > { %s1032_s26 = scalar_lea.hbm %s1131_s0, %s501_s15  ;;  %s233_s29 = sshll.u32 %s225_s28, 4  ;;  %s1034_s29 = int_to_ptr.vmem [resolvable:$true] %s233_s29 }
  0x74   : > { %s707_s8 = scalar_lea.hbm %s1032_s26, 384  ;;  %p709_p1 = pneg %p1025_p11 }
  0x75   : > { %p708_p12 = scmp.ne.s32.totalorder %s1032_s26, %s707_s8  ;;  %s712_s27 = scalar_lea.hbm %s1131_s0, 1152 }
  0x76   : > { %p713_p13 = scmp.lt.u32.totalorder %s1032_s26, %s1131_s0  ;;  %p714_p0 = scmp.lt.u32.totalorder %s712_s27, %s707_s8 }
  0x77   : > { %p710_p3 = pnand %p709_p1, %p708_p12  ;;  %p716_p5 = scmp.lt.u32.totalorder %s707_s8, %s1032_s26 }
  0x78   : > { %p715_p2 = por %p714_p0, %p713_p13 }
  0x79   : > { %p711_p7 = pneg %p710_p3 }
  0x7a   : > { %p717_p6 = por %p716_p5, %p715_p2 }
  0x7c   : > { %p718_p8 = pnand %p717_p6, %p711_p7 }
  0x7e   : > { %721 = shalt.err (!%p718_p8)
}
  0x7f   : > { %s722_s7 = scalar_lea.vmem %s1034_s29, 384  ;;  %s817_s14 = smov [#allocation2]  }
  0x80   : > { %p723_p12 = scmp.ne.s32.totalorder %s1034_s29, %s722_s7  ;;  %s727_s22 = sshll.u32 %s817_s14, 4  ;;  %s728_s22 = int_to_ptr.vmem [resolvable:$false] %s727_s22 }
  0x81   : > { %s729_s28 = scalar_lea.vmem %s728_s22, 768  ;;  %p730_p9 = scmp.lt.s32.totalorder %s1034_s29, %s728_s22 }
  0x82   : > { %p725_p3 = pnand %p723_p12, %p709_p1  ;;  %p731_p13 = scmp.lt.s32.totalorder %s729_s28, %s722_s7 }
  0x84   : > { %p726_p10 = pneg %p725_p3  ;;  %p732_p0 = por %p731_p13, %p730_p9 }
  0x86   : > { %p733_p2 = pnand %p732_p0, %p726_p10 }
  0x88   : > { %736 = shalt.err (!%p733_p2)
}
  0x89   : > { %540 = dma.hbm_to_vmem [thread:$0]  (!%p1025_p11), %s1032_s26, 384, %s1034_s29, %s222_s6  }
  0x8a   : > { %p1148_p7 = scmp.ne.s32.totalorder %s1140_s25, 0 }
  0x8b   : > { %s1064_s8 = sand.u32 (!%p1148_p7), 1, %s803_s19  }
  0x8c   : > { %242 = sbr.rel (%p1148_p7) target bundleno = 364 (0x16c), region = 40  ;;  %s245_s9 = scalar_lea.sflag (!%p1148_p7), [#allocation3], %s1064_s8 }
  0x8d   : > { %s502_s13 = smul.u32 (!%p1148_p7), 24, %s1064_s8 }
  0x8f   : > { %s248_s27 = scalar_lea.vmem (!%p1148_p7), [#allocation2], %s502_s13 }
  0x93   : > { %782 = dma.done.wait (%p1009_p4), %s245_s9, 384  }
  0x94   : > { %784 = vsyncadd (%p1009_p4), %s245_s9, 4294966912  ;;  %p1149_p9 = scmp.eq.s32.totalorder %s870_s24, 0 }
  0x96   : > { %786 = dma.done.wait (%p1149_p9), [#allocation6], 96   ;;  %p1150_p10 = pmov %p1149_p9 }
  0x97   : > { %p1151_p11 = pmov %p1149_p9 }
  0x98   : > { %788 = vsyncadd (%p1150_p10), [#allocation6], 4294967200 }
  0x99   : > { %790 = dma.done.wait (%p1151_p11), [#allocation9], 96   ;;  %p1152_p1 = pmov %p1149_p9 }
  0x9a   : > { %v291_v0 = vld [vmem:[#allocation5] sm:$0x7]  ;;  %v293_v1 = vld [vmem:[#allocation7] sm:$0x7]  ;;  %v309_v8 = vlaneseq  ;;  %v300_v10 = vld [vmem:[#allocation8] sm:$0x7] }
  0x9b   : > { %792 = vsyncadd (%p1152_p1), [#allocation9], 4294967200  ;;  %v292_v2 = vmul.f32 0.041666668, %v291_v0  ;;  %v294_v3 = vmul.f32 0.041666668, %v293_v1 }
  0x9c   : > { %v310_v9 = vshrl.u32 %v309_v8, 7  ;;  %v302_v16 = vld [vmem:[#allocation10] sm:$0x7]  ;;  %v306_v18 = vld [vmem:[%s248_s27 + $0x8] sm:$0xff]  ;;  %v307_v19 = vld [vmem:[%s248_s27 + $0x10] sm:$0xff]  ;;  %s503_s25 = smul.u32 384, %s870_s24 }
  0x9d   : > { %v295_v4 = vmul.f32 %v292_v2, %v292_v2  ;;  %v305_v17 = vld [vmem:[%s248_s27] sm:$0xff]  ;;  %s290_s11 = scalar_lea.vmem [#allocation11], %s502_s13  ;;  %s362_s24 = scalar_lea.sflag [#allocation4], %s1064_s8 }
  0x9e   : > { %v311_v11 = vsub.s32 0, %v310_v9  ;;  %v315_v12 = vsub.s32 1, %v310_v9  ;;  %v319_v13 = vsub.s32 2, %v310_v9  ;;  %s376_s16 = sshll.u32 %s290_s11, 4  ;;  %s1088_s6 = scalar_lea.hbm %s1136_s5, %s503_s25  ;;  %s1090_s16 = int_to_ptr.vmem [resolvable:$true] %s376_s16 }
  0x9f   : > { %v296_v5 = vsub.f32 %v294_v3, %v295_v4  ;;  %s737_s15 = scalar_lea.vmem %s1090_s16, 384  ;;  %p1153_p5 = scmp.ne.s32.totalorder %s1145_s12, 0 }
  0xa0   : > { %p738_p4 = scmp.ne.s32.totalorder %s1090_s16, %s737_s15  ;;  %s818_s17 = smov [#allocation11]  }
  0xa1   : > { %v297_v6 = vmax.f32 %v296_v5, 0.0  ;;  %s741_s7 = sshll.u32 %s818_s17, 4  ;;  %s742_s7 = int_to_ptr.vmem [resolvable:$false] %s741_s7 }
  0xa2   : > { %p739_p6 = pnand %p738_p4, %p1153_p5  ;;  %s743_s14 = scalar_lea.vmem %s742_s7, 768 }
  0xa3   : > { %v298_v7 = vadd.f32 1e-05, %v297_v6  ;;  %p744_p12 = scmp.lt.s32.totalorder %s1090_s16, %s742_s7  ;;  %p745_p3 = scmp.lt.s32.totalorder %s743_s14, %s737_s15 }
  0xa4   : > { %p740_p8 = pneg %p739_p6 }
  0xa5   : > { %591 = vrsqrt.f32 %v298_v7  ;;  %p746_p13 = por %p745_p3, %p744_p12 }
  0xa7   : > { %p747_p0 = pnand %p746_p13, %p740_p8 }
  0xaf   : > { %v592_v14 = vpop.eup %591 }
  0xb0   : > { %v301_v15 = vmul.f32 %v592_v14, %v300_v10 }
  0xb2   : > { %v303_v20 = vmul.f32 %v301_v15, %v292_v2  ;;  %v312_v21 = vrot.slane %v301_v15, %v311_v11  ;;  %v316_v22 = vrot.slane %v301_v15, %v315_v12  ;;  %v320_v23 = vrot.slane %v301_v15, %v319_v13 }
  0xb4   : > { %v304_v24 = vsub.f32 %v302_v16, %v303_v20  ;;  %v324_v25 = vmul.f32 %v312_v21, %v305_v17  ;;  %v325_v26 = vmul.f32 %v316_v22, %v306_v18  ;;  %v326_v27 = vmul.f32 %v320_v23, %v307_v19 }
  0xb6   : > { %v331_v28 = vrot.slane %v304_v24, %v311_v11  ;;  %v335_v29 = vrot.slane %v304_v24, %v315_v12  ;;  %v339_v30 = vrot.slane %v304_v24, %v319_v13 }
  0xb8   : > { %v343_v31 = vadd.f32 %v331_v28, %v324_v25  ;;  %v344_v32 = vadd.f32 %v335_v29, %v325_v26  ;;  %v345_v33 = vadd.f32 %v339_v30, %v326_v27 }
  0xba   : > { %v346_v34 = vmul.f32 %v343_v31, %v343_v31  ;;  %v347_v35 = vmul.f32 %v344_v32, %v344_v32  ;;  %v348_v36 = vmul.f32 %v345_v33, %v345_v33 }
  0xbc   : > { %v349_v37 = vadd.f32 %v347_v35, %v346_v34 }
  0xbe   : > { %v350_v38 = vadd.f32 %v349_v37, %v348_v36 }
  0xc0   : > { %351 = vadd.xlane.f32.xlu0 %v350_v38 }
 0x14d   : > { %v352_v39 = vpop.xlane.xlu0 %351 }
 0x14e   : > { %v353_v40 = vmax.f32 %v352_v39, 1e-24 }
 0x150   : > { %593 = vrsqrt.f32 %v353_v40 }
 0x15a   : > { %v594_v41 = vpop.eup %593 }
 0x15b   : > { %v355_v42 = vmul.f32 %v594_v41, %v343_v31  ;;  %v356_v43 = vmul.f32 %v594_v41, %v344_v32  ;;  %v357_v44 = vmul.f32 %v594_v41, %v345_v33 }
 0x15d   : > { %358 = vst [vmem:[%s290_s11] sm:$0xff] %v355_v42  ;;  %359 = vst [vmem:[%s290_s11 + $0x8] sm:$0xff] %v356_v43 }
 0x15e   : > { %360 = vst [vmem:[%s290_s11 + $0x10] sm:$0xff] %v357_v44 }
 0x15f   : > { %750 = shalt.err (!%p747_p0)
}
 0x160   : > { %s751_s22 = scalar_lea.hbm %s1088_s6, 384  ;;  %s755_s13 = scalar_lea.hbm %s1136_s5, 1152 }
 0x161   : > { %p752_p2 = scmp.ne.s32.totalorder %s1088_s6, %s751_s22  ;;  %p756_p10 = scmp.lt.u32.totalorder %s1088_s6, %s1136_s5 }
 0x162   : > { %p757_p11 = scmp.lt.u32.totalorder %s755_s13, %s751_s22  ;;  %p759_p4 = scmp.lt.u32.totalorder %s751_s22, %s1088_s6 }
 0x163   : > { %p753_p7 = pnand %p752_p2, %p1153_p5 }
 0x164   : > { %p758_p1 = por %p757_p11, %p756_p10 }
 0x165   : > { %p754_p9 = pneg %p753_p7 }
 0x166   : > { %p760_p6 = por %p759_p4, %p758_p1 }
 0x168   : > { %p761_p8 = pnand %p760_p6, %p754_p9 }
 0x16a   : > { %764 = shalt.err (!%p761_p8)
}
 0x16b   : > { %522 = dma.vmem_to_hbm [thread:$0]  (%p1153_p5), %s1090_s16, 384, %s1088_s6, %s362_s24  }
 0x16c PF: > { %p554_p12 = scmp.ge.s32.totalorder %s811_s21, 2  ;;  %s388_s25 = sand.u32 1, %s799_s18  }
 0x16d   : > { %p1154_p3 = scmp.ne.s32.totalorder %s1146_s23, 0  ;;  %s389_s11 = scalar_lea.sflag [#allocation4], %s388_s25 }
 0x16f   : > { %p542_p13 = pnand %p554_p12, %p1154_p3 }
 0x171   : > { %794 = dma.done.wait (!%p542_p13), %s389_s11, 384  }
 0x172   : > { %796 = vsyncadd (!%p542_p13), %s389_s11, 4294966912  ;;  %p20_p0 = scmp.ge.s32.totalorder %s994_s30, 5   ;;  %s1155_s18 = smov %s803_s19 }
 0x173   : > { %s1156_s19 = smov %s807_s20  ;;  %s1157_s20 = smov %s1005_s10 }
 0x174   : > { %s1158_s21 = smov %s994_s30  ;;  %22 = sbr.rel (!%p20_p0) target bundleno = 7 (0x7), region = 101 }
 0x17b   :  { %394 = vsyncpa [#allocation3], 1 }
 0x17c   :  { %396 = vsyncpa [#allocation3 + $0x1], 1 }
 0x17d   :  { %397 = vsyncpa [#allocation6], 1 }
 0x17e   :  { %398 = vsyncpa [#allocation9], 1 }
 0x17f   :  { %399 = vsyncpa [#allocation4], 1 }
 0x180   :  { %401 = vsyncpa [#allocation4 + $0x1], 1 }

// kernel: autoenc2_forward_train.20
= control target key start
LH: loop header
LB: loop body
LE: loop exit
PB: predicated region body
PF: predicated region fallthrough
CT: control target
= control target key end

     0   :  { %11 = vsyncpa [#allocation4], 0  ;;  %s1456_s0 = inlined_call_operand.hbm [shape: f32[8,384], index: 0, kind: input, shape index: {}]   ;;  %s1457_s1 = inlined_call_operand.hbm [shape: bf16[384,256], index: 1, kind: input, shape index: {}]   ;;  %s1458_s2 = inlined_call_operand.hbm [shape: f32[1,256], index: 2, kind: input, shape index: {}]   ;;  %s1459_s3 = inlined_call_operand.hbm [shape: f32[8,256], index: 3, kind: output, shape index: {0}]   ;;  %s1460_s4 = inlined_call_operand.hbm [shape: f32[1,256], index: 4, kind: output, shape index: {1}]   ;;  %s1461_s5 = inlined_call_operand.hbm [shape: f32[1,256], index: 5, kind: output, shape index: {2}]  }
   0x1   :  { %13 = vsyncpa [#allocation4 + $0x1], 0 }
   0x2   :  { %14 = vsyncpa [#allocation7], 0 }
   0x3   :  { %16 = vsyncpa [#allocation7 + $0x1], 0 }
   0x4   :  { %17 = vsyncpa [#allocation5], 0 }
   0x5   :  { %18 = vsyncpa [#allocation11], 0  ;;  %s1143_s18 = smov 0   ;;  %s1145_s19 = smov 0  }
   0x6   :  { %s1147_s20 = smov 0   ;;  %s1149_s21 = smov 0  }
   0x7   :  { %s1151_s22 = smov 0   ;;  %s1153_s23 = smov 0  }
   0x8 LB: > { %s1172_s24 = sadd.s32 4294967295, %s1099_s23   ;;  %s45_s25 = sadd.s32 1, %s1087_s20  ;;  %s1099_s23 = sphi %s1153_s23, %s24_s23   ;;  %s1095_s22 = sphi %s1151_s22, %s1484_s22   ;;  %s1091_s21 = sphi %s1149_s21, %s1483_s21   ;;  %s1087_s20 = sphi %s1147_s20, %s1482_s20   ;;  %s1083_s19 = sphi %s1145_s19, %s1481_s19   ;;  %s1079_s18 = sphi %s1143_s18, %s1480_s18  }
   0x9   : > { %p52_p0 = scmp.ne.s32.totalorder %s1087_s20, %s1083_s19  ;;  %p58_p1 = scmp.ne.s32.totalorder %s1083_s19, %s1079_s18 }
   0xa   : > { %p1462_p2 = scmp.eq.s32.totalorder %s1172_s24, 0  ;;  %p704_p3 = scmp.ge.s32.totalorder %s1099_s23, 1 }
   0xb   : > { %p184_p4 = scmp.lt.s32.totalorder %s1099_s23, 4  ;;  %s1101_s28 = smov [#allocation8]  }
   0xc   : > { %p1183_p5 = por %p1462_p2, %p58_p1  ;;  %s197_s29 = sshll.u32 %s1101_s28, 4  ;;  %s198_s29 = int_to_ptr.vmem [resolvable:$true] %s197_s29 }
   0xd   : > { %p1187_p6 = pnand %p704_p3, %p184_p4  ;;  %p53_p8 = scmp.eq.s32.totalorder %s1099_s23, 0 }
   0xe   : > { %s1465_s26 = scalar_select %p1183_p5, 1, 0 }
   0xf   : > { %s1466_s27 = scalar_select %p1187_p6, 1, 0 }
  0x10   : > { %p765_p7 = pneg %p1187_p6  ;;  %s33_s6 = sadd.s32 1, %s1095_s22 }
  0x11   : > { %p1201_p10 = scmp.ge.s32.totalorder %s33_s6, 3  ;;  %p1208_p11 = por %p53_p8, %p52_p0 }
  0x12   : > { %p1196_p9 = pnand %p765_p7, %p1462_p2  ;;  %s867_s11 = scalar_lea.hbm %s1458_s2, 32 }
  0x13   : > { %s1468_s7 = scalar_select %p1201_p10, 1, 0 }
  0x14   : > { %s1469_s8 = scalar_select %p1208_p11, 1, 0 }
  0x15   : > { %p868_p13 = scmp.ne.s32.totalorder %s1458_s2, %s867_s11  ;;  %p869_p1 = pneg %p1196_p9 }
  0x16   : > { %p874_p0 = scmp.lt.u32.totalorder %s867_s11, %s1458_s2 }
  0x17   : > { %p870_p3 = pnand %p869_p1, %p868_p13 }
  0x19   : > { %p871_p4 = pneg %p870_p3 }
  0x1b   : > { %p876_p7 = pnand %p874_p0, %p871_p4 }
  0x1d   : > { %879 = shalt.err (!%p876_p7)
}
  0x1e   : > { %s880_s16 = scalar_lea.vmem %s198_s29, 32  ;;  %p888_p5 = scmp.lt.s32.totalorder %s198_s29, %s198_s29 }
  0x1f   : > { %p881_p8 = scmp.ne.s32.totalorder %s198_s29, %s880_s16  ;;  %p889_p6 = scmp.lt.s32.totalorder %s880_s16, %s880_s16 }
  0x21   : > { %p883_p2 = pnand %p881_p8, %p869_p1  ;;  %p890_p11 = por %p889_p6, %p888_p5 }
  0x23   : > { %p884_p12 = pneg %p883_p2 }
  0x25   : > { %p891_p10 = pnand %p890_p11, %p884_p12 }
  0x27   : > { %894 = shalt.err (!%p891_p10)
}
  0x28   : > { %768 = dma.hbm_to_vmem [thread:$0]  (!%p1196_p9), %s1458_s2, 32, %s198_s29, [#allocation7]  }
  0x29   : > { %p1470_p2 = scmp.ne.s32.totalorder %s1468_s7, 0  ;;  %s1234_s28 = sand.u32 1, %s1087_s20  }
  0x2a   : > { %s708_s30 = sshll.u32 %s1095_s22, 7  ;;  %s707_s10 = sshll.u32 %s1234_s28, 3 }
  0x2b   : > { %s1486_s6 = smov (%p1470_p2, %s33_s6), 0  ;;  %s1243_s13 = scalar_lea.hbm %s1456_s0, %s708_s30 }
  0x2c   : > { %s41_s9 = ssub.s32 %s1095_s22, %s1486_s6  ;;  %s212_s7 = scalar_lea.vmem [#allocation3], %s707_s10 }
  0x2d   : > { %p43_p5 = scmp.eq.s32.totalorder %s41_s9, 0  ;;  %s221_s14 = sshll.u32 %s212_s7, 4  ;;  %s1258_s14 = int_to_ptr.vmem [resolvable:$true] %s221_s14 }
  0x2e   : > { %p1471_p6 = scmp.ne.s32.totalorder %s1469_s8, 0  ;;  %p1472_p9 = scmp.lt.s32.totalorder %s1099_s23, 3 }
  0x2f   : > { %s1248_s29 = scalar_select %p43_p5, %s1087_s20, %s45_s25  }
  0x30   : > { %p1254_p10 = pnand %p1472_p9, %p1471_p6  ;;  %s709_s16 = sshll.u32 %s1234_s28, 7 }
  0x31   : > { %s209_s17 = scalar_lea.sflag [#allocation4], %s1234_s28  ;;  %s895_s18 = scalar_lea.hbm %s1243_s13, 128 }
  0x32   : > { %p896_p11 = scmp.ne.s32.totalorder %s1243_s13, %s895_s18  ;;  %p897_p12 = pneg %p1254_p10 }
  0x33   : > { %s900_s30 = scalar_lea.hbm %s1456_s0, 384  ;;  %p901_p3 = scmp.lt.u32.totalorder %s1243_s13, %s1456_s0 }
  0x34   : > { %p898_p13 = pnand %p897_p12, %p896_p11  ;;  %p902_p4 = scmp.lt.u32.totalorder %s900_s30, %s895_s18 }
  0x35   : > { %p904_p7 = scmp.lt.u32.totalorder %s895_s18, %s1243_s13 }
  0x36   : > { %p899_p1 = pneg %p898_p13  ;;  %p903_p0 = por %p902_p4, %p901_p3 }
  0x38   : > { %p905_p8 = por %p904_p7, %p903_p0 }
  0x3a   : > { %p906_p2 = pnand %p905_p8, %p899_p1 }
  0x3c   : > { %909 = shalt.err (!%p906_p2)
}
  0x3d   : > { %s910_s11 = scalar_lea.vmem %s1258_s14, 128  ;;  %s1102_s12 = smov [#allocation3]  }
  0x3e   : > { %p911_p5 = scmp.ne.s32.totalorder %s1258_s14, %s910_s11  ;;  %s915_s7 = sshll.u32 %s1102_s12, 4  ;;  %s916_s7 = int_to_ptr.vmem [resolvable:$false] %s915_s7 }
  0x3f   : > { %s917_s25 = scalar_lea.vmem %s916_s7, 256  ;;  %p918_p11 = scmp.lt.s32.totalorder %s1258_s14, %s916_s7 }
  0x40   : > { %p913_p6 = pnand %p911_p5, %p897_p12  ;;  %p919_p13 = scmp.lt.s32.totalorder %s917_s25, %s910_s11 }
  0x42   : > { %p914_p9 = pneg %p913_p6  ;;  %p920_p3 = por %p919_p13, %p918_p11 }
  0x44   : > { %p921_p4 = pnand %p920_p3, %p914_p9 }
  0x46   : > { %924 = shalt.err (!%p921_p4)
}
  0x47   : > { %772 = dma.hbm_to_vmem [thread:$0]  (!%p1254_p10), %s1243_s13, 128, %s1258_s14, %s209_s17  }
  0x48   : > { %s744_s18 = sshll.u32 %s1095_s22, 11  ;;  %s232_s8 = scalar_lea.vmem [#allocation6], %s709_s16 }
  0x49   : > { %s240_s30 = sshll.u32 %s232_s8, 4  ;;  %s228_s9 = sand.u32 1, %s1099_s23   ;;  %s1290_s30 = int_to_ptr.vmem [resolvable:$true] %s240_s30 }
  0x4a   : > { %s1296_s12 = scalar_lea.hbm %s1457_s1, %s744_s18  ;;  %s1298_s7 = scalar_lea.sflag [#allocation7], %s228_s9 }
  0x4b   : > { %s925_s25 = scalar_lea.hbm %s1296_s12, 2048  ;;  %s930_s14 = scalar_lea.hbm %s1457_s1, 6144 }
  0x4c   : > { %p926_p1 = scmp.ne.s32.totalorder %s1296_s12, %s925_s25  ;;  %p931_p8 = scmp.lt.u32.totalorder %s1296_s12, %s1457_s1 }
  0x4d   : > { %p932_p2 = scmp.lt.u32.totalorder %s930_s14, %s925_s25  ;;  %p934_p6 = scmp.lt.u32.totalorder %s925_s25, %s1296_s12 }
  0x4e   : > { %p928_p0 = pnand %p926_p1, %p897_p12 }
  0x4f   : > { %p933_p5 = por %p932_p2, %p931_p8 }
  0x50   : > { %p929_p7 = pneg %p928_p0 }
  0x51   : > { %p935_p9 = por %p934_p6, %p933_p5 }
  0x53   : > { %p936_p11 = pnand %p935_p9, %p929_p7 }
  0x55   : > { %939 = shalt.err (!%p936_p11)
}
  0x56   : > { %s940_s18 = scalar_lea.vmem %s1290_s30, 2048  ;;  %s1103_s8 = smov [#allocation6]  }
  0x57   : > { %p941_p13 = scmp.ne.s32.totalorder %s1290_s30, %s940_s18  ;;  %s945_s9 = sshll.u32 %s1103_s8, 4  ;;  %s946_s9 = int_to_ptr.vmem [resolvable:$false] %s945_s9 }
  0x58   : > { %s947_s10 = scalar_lea.vmem %s946_s9, 4096  ;;  %p948_p1 = scmp.lt.s32.totalorder %s1290_s30, %s946_s9 }
  0x59   : > { %p943_p3 = pnand %p941_p13, %p897_p12  ;;  %p949_p0 = scmp.lt.s32.totalorder %s947_s10, %s940_s18 }
  0x5b   : > { %p944_p4 = pneg %p943_p3  ;;  %p950_p8 = por %p949_p0, %p948_p1 }
  0x5d   : > { %p951_p2 = pnand %p950_p8, %p944_p4 }
  0x5f   : > { %954 = shalt.err (!%p951_p2)
}
  0x60   : > { %s1104_s11 = smov 128   ;;  %s1105_s25 = smov 8  }
  0x61   : > { %775 = dma.hbm_to_vmem [thread:$0]  (!%p1254_p10), %s1296_s12, 2048, %s1290_s30, %s1298_s7, %s1104_s11, %s1104_s11, %s1105_s25  }
  0x62   : > { %p1474_p12 = scmp.ne.s32.totalorder %s1466_s27, 0 }
  0x63   : > { %s254_s28 = sand.u32 (!%p1474_p12), 1, %s1083_s19   ;;  %p1475_p7 = scmp.ne.s32.totalorder (!%p1474_p12), %s1465_s26, 0 }
  0x64   : > { %252 = sbr.rel (%p1474_p12) target bundleno = 475 (0x1db), region = 32  ;;  %s714_s13 = sshll.u32 (!%p1474_p12), %s254_s28, 3 }
  0x65   : > { %s255_s14 = scalar_lea.sflag (!%p1474_p12), [#allocation4], %s254_s28  ;;  %s1327_s16 = scalar_lea.vmem (!%p1474_p12), [#allocation3], %s714_s13 }
  0x6b   : > { %1058 = dma.done.wait (%p1475_p7), %s255_s14, 128  }
  0x6c   : > { %1060 = vsyncadd (%p1475_p7), %s255_s14, 4294967168  ;;  %s263_s17 = sand.u32 1, %s1172_s24   ;;  %s715_s15 = sshll.u32 %s254_s28, 7 }
  0x6d   : > { %s264_s30 = scalar_lea.sflag [#allocation7], %s263_s17  ;;  %s1334_s12 = scalar_lea.vmem [#allocation6], %s715_s15 }
  0x6e   : > { %1062 = dma.done.wait (%p1475_p7), %s264_s30, 2048  }
  0x6f   : > { %1064 = vsyncadd (%p1475_p7), %s264_s30, 4294965248  ;;  %p1476_p10 = scmp.eq.s32.totalorder %s1172_s24, 0 }
  0x71   : > { %1066 = dma.done.wait (%p1476_p10), [#allocation7], 32   ;;  %p1477_p5 = pmov %p1476_p10 }
  0x72   : > { %p717_p6 = scmp.ne.s32.totalorder %s1091_s21, 0 }
  0x73   : > { %1068 = vsyncadd (%p1477_p5), [#allocation7], 4294967264  ;;  %v1106_v0 = vmov (!%p717_p6), 0.0  }
  0x74   : > { %303 = sbr.rel (%p717_p6) target bundleno = 123 (0x7b), region = 48  ;;  %304 = vst [vmem:[#allocation2] sm:$0xff] (!%p717_p6), %v1106_v0  ;;  %305 = vst [vmem:[#allocation2 + $0x8] sm:$0xff] (!%p717_p6), %v1106_v0 }
  0x7b PF: > { %v843_v1 = vld [vmem:[%s1334_s12 + $0x4] ss:$8 sps:$4 sm:$0xff]   ;;  %v845_v2 = vld [vmem:[%s1334_s12] ss:$8 sps:$4 sm:$0xff]   ;;  %v1107_v3 = vmov 0   ;;  %v308_v18 = vld [vmem:[%s1327_s16] sm:$0xff] }
  0x7c   : > { %438 = vmatprep.mubr.bf16.mxu0 %v1107_v3  ;;  %406 = vmatprep.subr.bf16.mxu0 %v843_v1  ;;  %v846_v4 = vld [vmem:[%s1334_s12 + $0x14] ss:$8 sps:$4 sm:$0xff]   ;;  %v848_v5 = vld [vmem:[%s1334_s12 + $0x10] ss:$8 sps:$4 sm:$0xff]   ;;  %v849_v6 = vld [vmem:[%s1334_s12 + $0x24] ss:$8 sps:$4 sm:$0xff]   ;;  %v309_v19 = vpack.c.bf16 %v308_v18, %v308_v18 }
  0x7d   : > { %407 = vmatpush1.bf16.msra.mxu0 %v845_v2  ;;  %v851_v7 = vld [vmem:[%s1334_s12 + $0x20] ss:$8 sps:$4 sm:$0xff]   ;;  %v852_v8 = vld [vmem:[%s1334_s12 + $0x34] ss:$8 sps:$4 sm:$0xff]   ;;  %v854_v9 = vld [vmem:[%s1334_s12 + $0x30] ss:$8 sps:$4 sm:$0xff]  }
  0x7e   : > { %408 = vmatprep.subr.bf16.mxu0 %v846_v4  ;;  %v855_v10 = vld [vmem:[%s1334_s12 + $0x44] ss:$8 sps:$4 sm:$0xff]   ;;  %v857_v11 = vld [vmem:[%s1334_s12 + $0x40] ss:$8 sps:$4 sm:$0xff]   ;;  %v858_v12 = vld [vmem:[%s1334_s12 + $0x54] ss:$8 sps:$4 sm:$0xff]  }
  0x7f   : > { %v860_v13 = vld [vmem:[%s1334_s12 + $0x50] ss:$8 sps:$4 sm:$0xff]   ;;  %v861_v14 = vld [vmem:[%s1334_s12 + $0x64] ss:$8 sps:$4 sm:$0xff]   ;;  %v863_v15 = vld [vmem:[%s1334_s12 + $0x60] ss:$8 sps:$4 sm:$0xff]  }
  0x80   : > { %v864_v16 = vld [vmem:[%s1334_s12 + $0x74] ss:$8 sps:$4 sm:$0xff]   ;;  %v866_v17 = vld [vmem:[%s1334_s12 + $0x70] ss:$8 sps:$4 sm:$0xff]   ;;  %v306_v20 = vld [vmem:[#allocation2] sm:$0xff]  ;;  %p734_p9 = scmp.ne.s32.totalorder %s1091_s21, 2 }
  0x81   : > { %409 = vmatpush1.bf16.msra.mxu0 %v848_v5  ;;  %v307_v21 = vld [vmem:[#allocation2 + $0x8] sm:$0xff]  ;;  %v459_v28 = vlaneseq (!%p734_p9)  ;;  %v1108_v31 = vmov (!%p734_p9), 0.0   ;;  %v457_v32 = vld [vmem:[#allocation8] sm:$0x3] (!%p734_p9)  ;;  %v1109_v45 = vmov (!%p734_p9), 1966171168  }
  0x82   : > { %410 = vmatprep.subr.bf16.mxu0 %v849_v6  ;;  %v500_v46 = vunpack.c.l.s4 (!%p734_p9), %v1109_v45 }
  0x83   : > { %v460_v29 = vshrl.u32 (!%p734_p9), %v459_v28, 7  ;;  %vm1363_vm0 = vcmp.lt.s32.totalorder (!%p734_p9), %v459_v28, 256 }
  0x84   : > { %481 = vst.msk [vmem:[#allocation10] sm:$0x3] (!%p734_p9), %vm1363_vm0, %v1108_v31  ;;  %482 = vst.msk [vmem:[#allocation12] sm:$0x3] (!%p734_p9), %vm1363_vm0, %v1108_v31  ;;  %v501_v55 = vunpack.c.0.s8 (!%p734_p9), %v500_v46 }
  0x85   : > { %411 = vmatpush1.bf16.msra.mxu0 %v851_v7  ;;  %v461_v33 = vsub.s32 (!%p734_p9), 0, %v460_v29  ;;  %v465_v34 = vsub.s32 (!%p734_p9), 1, %v460_v29 }
  0x86   : > { %412 = vmatprep.subr.bf16.mxu0 %v852_v8  ;;  %v504_v0 = vsub.s32 (!%p734_p9), %v501_v55, %v460_v29 }
  0x87   : > { %v462_v37 = vrot.slane (!%p734_p9), %v457_v32, %v461_v33  ;;  %v466_v38 = vrot.slane (!%p734_p9), %v457_v32, %v465_v34 }
  0x89   : > { %413 = vmatpush1.bf16.msra.mxu0 %v854_v9 }
  0x8a   : > { %414 = vmatprep.subr.bf16.mxu0 %v855_v10 }
  0x8b   : > { %v483_v10 = vld [vmem:[#allocation10] sm:$0x3] (!%p734_p9) }
  0x8d   : > { %415 = vmatpush1.bf16.msra.mxu0 %v857_v11 }
  0x8e   : > { %416 = vmatprep.subr.bf16.mxu0 %v858_v12 }
  0x91   : > { %417 = vmatpush1.bf16.msra.mxu0 %v860_v13  ;;  %v520_v13 = vld [vmem:[#allocation12] sm:$0x3] (!%p734_p9) }
  0x92   : > { %418 = vmatprep.subr.bf16.mxu0 %v861_v14 }
  0x95   : > { %419 = vmatpush1.bf16.msra.mxu0 %v863_v15 }
  0x96   : > { %420 = vmatprep.subr.bf16.mxu0 %v864_v16 }
  0x99   : > { %421 = vmatpush1.bf16.msra.mxu0 %v866_v17 }
  0x9c   : > { %439 = vmatmul.mubr.bf16.vlgmr.msra.gmra.mrb[0].mxu0 %v309_v19 }
 0x16d   : > { %454 = sbr.rel (%p734_p9) target bundleno = 404 (0x194), region = 52 }
 0x16f   : > { %v440_v22 = vpop.f32.mrb[0].mxu0 }
 0x170   : > { %v447_v23 = vadd.f32 %v440_v22, %v306_v20  ;;  %v442_v24 = vpop.f32.mrb[1].mxu0 }
 0x171   : > { %v448_v25 = vadd.f32 %v442_v24, %v307_v21  ;;  %v444_v26 = vpop.f32.mrb[2].mxu0 }
 0x172   : > { %449 = vst [vmem:[#allocation2] sm:$0xff] %v447_v23  ;;  %v445_v27 = vpop.f32.mrb[3].mxu0 }
 0x173   : > { %450 = vst [vmem:[#allocation2 + $0x8] sm:$0xff] %v448_v25 }
 0x179   : > { %v455_v35 = vld [vmem:[#allocation2] sm:$0xff] }
 0x17a   : > { %v456_v36 = vld [vmem:[#allocation2 + $0x8] sm:$0xff]  ;;  %v469_v39 = vadd.f32 %v462_v37, %v455_v35 }
 0x17b   : > { %v470_v40 = vadd.f32 %v466_v38, %v456_v36 }
 0x17c   : > { %471 = vst [vmem:[#allocation9] sm:$0xff] %v469_v39  ;;  %v484_v41 = vrot.slane %v469_v39, 4  ;;  %v521_v42 = vmul.f32 %v469_v39, %v469_v39 }
 0x17d   : > { %472 = vst [vmem:[#allocation9 + $0x8] sm:$0xff] %v470_v40  ;;  %v490_v43 = vrot.slane %v470_v40, 4  ;;  %v522_v44 = vmul.f32 %v470_v40, %v470_v40 }
 0x17e   : > { %v485_v47 = vadd.f32 %v484_v41, %v469_v39  ;;  %v523_v48 = vrot.slane %v521_v42, 4 }
 0x17f   : > { %v491_v49 = vadd.f32 %v490_v43, %v470_v40  ;;  %v529_v50 = vrot.slane %v522_v44, 4 }
 0x180   : > { %v486_v51 = vrot.slane %v485_v47, 2  ;;  %v524_v53 = vadd.f32 %v523_v48, %v521_v42 }
 0x181   : > { %v492_v52 = vrot.slane %v491_v49, 2  ;;  %v530_v54 = vadd.f32 %v529_v50, %v522_v44 }
 0x182   : > { %v487_v56 = vadd.f32 %v486_v51, %v485_v47  ;;  %v525_v58 = vrot.slane %v524_v53, 2 }
 0x183   : > { %v493_v57 = vadd.f32 %v492_v52, %v491_v49  ;;  %v531_v59 = vrot.slane %v530_v54, 2 }
 0x184   : > { %v488_v60 = vrot.slane %v487_v56, 1  ;;  %v526_v62 = vadd.f32 %v525_v58, %v524_v53 }
 0x185   : > { %v494_v61 = vrot.slane %v493_v57, 1  ;;  %v532_v63 = vadd.f32 %v531_v59, %v530_v54 }
 0x186   : > { %v489_v1 = vadd.f32 %v488_v60, %v487_v56  ;;  %v527_v3 = vrot.slane %v526_v62, 1 }
 0x187   : > { %v495_v2 = vadd.f32 %v494_v61, %v493_v57  ;;  %v533_v4 = vrot.slane %v532_v63, 1 }
 0x188   : > { %v528_v6 = vadd.f32 %v527_v3, %v526_v62 }
 0x189   : > { %v498_v5 = vcombine.low %v489_v1, %v495_v2  ;;  %v534_v7 = vadd.f32 %v533_v4, %v532_v63 }
 0x18b   : > { %v505_v8 = vrot.slane %v498_v5, %v504_v0  ;;  %v537_v9 = vcombine.low %v528_v6, %v534_v7 }
 0x18d   : > { %v512_v11 = vrot.slane %v505_v8, %v504_v0  ;;  %v544_v12 = vrot.slane %v537_v9, %v504_v0 }
 0x18f   : > { %v514_v14 = vadd.f32 %v512_v11, %v483_v10  ;;  %v551_v15 = vrot.slane %v544_v12, %v504_v0 }
 0x191   : > { %519 = vst.msk [vmem:[#allocation10] sm:$0x3] %vm1363_vm0, %v514_v14  ;;  %v553_v16 = vadd.f32 %v551_v15, %v520_v13 }
 0x193   : > { %554 = vst.msk [vmem:[#allocation12] sm:$0x3] %vm1363_vm0, %v553_v16 }
 0x194 PF: > { %p779_p11 = scmp.eq.s32.totalorder %s1172_s24, 2  ;;  %s1110_s21 = smov [#allocation10]  }
 0x195   : > { %s576_s26 = sshll.u32 %s1110_s21, 4  ;;  %s577_s26 = int_to_ptr.vmem [resolvable:$true] %s576_s26 }
 0x196   : > { %s955_s27 = scalar_lea.vmem %s577_s26, 32  ;;  %p962_p1 = scmp.lt.s32.totalorder %s577_s26, %s577_s26 }
 0x197   : > { %p956_p13 = scmp.ne.s32.totalorder %s577_s26, %s955_s27  ;;  %p963_p0 = scmp.lt.s32.totalorder %s955_s27, %s955_s27 }
 0x199   : > { %p957_p3 = pnand %p956_p13, %p779_p11  ;;  %p964_p8 = por %p963_p0, %p962_p1 }
 0x19b   : > { %p958_p4 = pneg %p957_p3 }
 0x19d   : > { %p965_p2 = pnand %p964_p8, %p958_p4 }
 0x19f   : > { %968 = shalt.err (!%p965_p2)
}
 0x1a0   : > { %s969_s8 = scalar_lea.hbm %s1460_s4, 32 }
 0x1a1   : > { %p970_p12 = scmp.ne.s32.totalorder %s1460_s4, %s969_s8  ;;  %p975_p5 = scmp.lt.u32.totalorder %s969_s8, %s1460_s4 }
 0x1a3   : > { %p971_p7 = pnand %p970_p12, %p779_p11 }
 0x1a5   : > { %p972_p10 = pneg %p971_p7 }
 0x1a7   : > { %p977_p6 = pnand %p975_p5, %p972_p10 }
 0x1a9   : > { %980 = shalt.err (!%p977_p6)
}
 0x1aa   : > { %756 = dma.vmem_to_hbm [thread:$0]  (%p779_p11), %s577_s26, 32, %s1460_s4, [#allocation11]  }
 0x1ab   : > { %s1111_s14 = smov [#allocation9]   ;;  %s1112_s17 = smov [#allocation12]  }
 0x1ac   : > { %s565_s16 = sshll.u32 %s1111_s14, 4  ;;  %s587_s15 = sshll.u32 %s1112_s17, 4  ;;  %s566_s16 = int_to_ptr.vmem [resolvable:$true] %s565_s16  ;;  %s588_s15 = int_to_ptr.vmem [resolvable:$true] %s587_s15 }
 0x1ad   : > { %s981_s30 = scalar_lea.vmem %s566_s16, 256  ;;  %p988_p4 = scmp.lt.s32.totalorder %s566_s16, %s566_s16 }
 0x1ae   : > { %p982_p9 = scmp.ne.s32.totalorder %s566_s16, %s981_s30  ;;  %p989_p1 = scmp.lt.s32.totalorder %s981_s30, %s981_s30 }
 0x1b0   : > { %p983_p13 = pnand %p982_p9, %p779_p11  ;;  %p990_p0 = por %p989_p1, %p988_p4 }
 0x1b2   : > { %p984_p3 = pneg %p983_p13 }
 0x1b4   : > { %p991_p8 = pnand %p990_p0, %p984_p3 }
 0x1b6   : > { %994 = shalt.err (!%p991_p8)
}
 0x1b7   : > { %s995_s26 = scalar_lea.hbm %s1459_s3, 256 }
 0x1b8   : > { %p996_p2 = scmp.ne.s32.totalorder %s1459_s3, %s995_s26  ;;  %p1001_p10 = scmp.lt.u32.totalorder %s995_s26, %s1459_s3 }
 0x1ba   : > { %p997_p12 = pnand %p996_p2, %p779_p11 }
 0x1bc   : > { %p998_p7 = pneg %p997_p12 }
 0x1be   : > { %p1003_p5 = pnand %p1001_p10, %p998_p7 }
 0x1c0   : > { %1006 = shalt.err (!%p1003_p5)
}
 0x1c1   : > { %754 = dma.vmem_to_hbm [thread:$0]  (%p779_p11), %s566_s16, 256, %s1459_s3, [#allocation5]  }
 0x1c2   : > { %s1007_s11 = scalar_lea.vmem %s588_s15, 32  ;;  %p1014_p3 = scmp.lt.s32.totalorder %s588_s15, %s588_s15 }
 0x1c3   : > { %p1008_p6 = scmp.ne.s32.totalorder %s588_s15, %s1007_s11  ;;  %p1015_p4 = scmp.lt.s32.totalorder %s1007_s11, %s1007_s11 }
 0x1c5   : > { %p1009_p9 = pnand %p1008_p6, %p779_p11  ;;  %p1016_p1 = por %p1015_p4, %p1014_p3 }
 0x1c7   : > { %p1010_p13 = pneg %p1009_p9 }
 0x1c9   : > { %p1017_p0 = pnand %p1016_p1, %p1010_p13 }
 0x1cb   : > { %1020 = shalt.err (!%p1017_p0)
}
 0x1cc   : > { %s1021_s13 = scalar_lea.hbm %s1461_s5, 32 }
 0x1cd   : > { %p1022_p8 = scmp.ne.s32.totalorder %s1461_s5, %s1021_s13  ;;  %p1027_p7 = scmp.lt.u32.totalorder %s1021_s13, %s1461_s5 }
 0x1cf   : > { %p1023_p2 = pnand %p1022_p8, %p779_p11 }
 0x1d1   : > { %p1024_p12 = pneg %p1023_p2 }
 0x1d3   : > { %p1029_p10 = pnand %p1027_p7, %p1024_p12 }
 0x1d5   : > { %1032 = shalt.err (!%p1029_p10)
}
 0x1d6   : > { %758 = dma.vmem_to_hbm [thread:$0]  (%p779_p11), %s588_s15, 32, %s1461_s5, [#allocation11]  }
 0x1d7   : > { %1070 = dma.done.wait (%p779_p11), [#allocation5], 256  }
 0x1d8   : > { %1072 = vsyncadd (%p779_p11), [#allocation5], 4294967040 }
 0x1d9   : > { %1074 = dma.done.wait (%p779_p11), [#allocation11], 64  }
 0x1da   : > { %1076 = vsyncadd (%p779_p11), [#allocation11], 4294967232 }
 0x1db PF: > { %s24_s23 = sadd.s32 1, %s1099_s23   ;;  %s1480_s18 = smov %s1083_s19 }
 0x1dc   : > { %p21_p5 = scmp.ge.s32.totalorder %s24_s23, 5   ;;  %s1481_s19 = smov %s1087_s20 }
 0x1dd   : > { %s1482_s20 = smov %s1248_s29  ;;  %s1483_s21 = smov %s1095_s22 }
 0x1de   : > { %s1484_s22 = smov %s1486_s6  ;;  %23 = sbr.rel (!%p21_p5) target bundleno = 8 (0x8), region = 115 }
 0x1e5   :  { %608 = vsyncpa [#allocation4], 1 }
 0x1e6   :  { %610 = vsyncpa [#allocation4 + $0x1], 1 }
 0x1e7   :  { %611 = vsyncpa [#allocation7], 1 }
 0x1e8   :  { %613 = vsyncpa [#allocation7 + $0x1], 1 }
 0x1e9   :  { %614 = vsyncpa [#allocation5], 1 }
 0x1ea   :  { %616 = vsyncpa [#allocation5 + $0x1], 1 }
 0x1eb   :  { %617 = vsyncpa [#allocation11], 1 }

// kernel: autoenc2_forward_train.26
= control target key start
LH: loop header
LB: loop body
LE: loop exit
PB: predicated region body
PF: predicated region fallthrough
CT: control target
= control target key end

     0   :  { %11 = vsyncpa [#allocation4], 0  ;;  %s1090_s0 = inlined_call_operand.hbm [shape: f32[8,256], index: 0, kind: input, shape index: {}]   ;;  %s1091_s1 = inlined_call_operand.hbm [shape: bf16[256,384], index: 1, kind: input, shape index: {}]   ;;  %s1092_s2 = inlined_call_operand.hbm [shape: f32[1,384], index: 2, kind: input, shape index: {}]   ;;  %s1093_s3 = inlined_call_operand.hbm [shape: f32[8,384], index: 3, kind: output, shape index: {0}]   ;;  %s1094_s4 = inlined_call_operand.hbm [shape: f32[1,384], index: 4, kind: output, shape index: {1}]   ;;  %s1095_s5 = inlined_call_operand.hbm [shape: f32[1,384], index: 5, kind: output, shape index: {2}]  }
   0x1   :  { %12 = vsyncpa [#allocation7], 0 }
   0x2   :  { %13 = vsyncpa [#allocation5], 0 }
   0x3   :  { %14 = vsyncpa [#allocation11], 0  ;;  %s947_s18 = smov [#allocation6]   ;;  %s807_s22 = scalar_lea.hbm %s1091_s1, 6144 }
   0x4   :  { %s30_s19 = sshll.u32 %s947_s18, 4  ;;  %p808_p0 = scmp.ne.s32.totalorder %s1091_s1, %s807_s22  ;;  %s31_s19 = int_to_ptr.vmem [resolvable:$true] %s30_s19 }
   0x5   :  { %p811_p1 = scmp.lt.u32.totalorder %s807_s22, %s1091_s1 }
   0x7   :  { %p813_p2 = pnand %p811_p1, %p808_p0 }
   0x9   :  { %816 = shalt.err (!%p813_p2)
}
   0xa   :  { %s817_s27 = scalar_lea.vmem %s31_s19, 6144  ;;  %p822_p4 = scmp.lt.s32.totalorder %s31_s19, %s31_s19 }
   0xb   :  { %p818_p3 = scmp.ne.s32.totalorder %s31_s19, %s817_s27  ;;  %p823_p5 = scmp.lt.s32.totalorder %s817_s27, %s817_s27 }
   0xd   :  { %p824_p6 = por %p823_p5, %p822_p4 }
   0xf   :  { %p825_p7 = pnand %p824_p6, %p818_p3 }
  0x11   :  { %828 = shalt.err (!%p825_p7)
}
  0x12   :  { %s948_s28 = smov 192   ;;  %s949_s29 = smov 12  }
  0x13   :  { %36 = dma.hbm_to_vmem [thread:$0]  %s1091_s1, 6144, %s31_s19, [#allocation7], %s948_s28, %s948_s28, %s949_s29  }
  0x14   :  { %s950_s7 = smov [#allocation3]   ;;  %s951_s9 = smov [#allocation8]  }
  0x15   :  { %s21_s8 = sshll.u32 %s950_s7, 4  ;;  %s43_s10 = sshll.u32 %s951_s9, 4  ;;  %s22_s8 = int_to_ptr.vmem [resolvable:$true] %s21_s8  ;;  %s44_s10 = int_to_ptr.vmem [resolvable:$true] %s43_s10 }
  0x16   :  { %s829_s13 = scalar_lea.hbm %s1090_s0, 256 }
  0x17   :  { %p830_p8 = scmp.ne.s32.totalorder %s1090_s0, %s829_s13  ;;  %p833_p9 = scmp.lt.u32.totalorder %s829_s13, %s1090_s0 }
  0x19   :  { %p835_p10 = pnand %p833_p9, %p830_p8 }
  0x1b   :  { %838 = shalt.err (!%p835_p10)
}
  0x1c   :  { %s839_s1 = scalar_lea.vmem %s22_s8, 256  ;;  %p844_p12 = scmp.lt.s32.totalorder %s22_s8, %s22_s8 }
  0x1d   :  { %p840_p11 = scmp.ne.s32.totalorder %s22_s8, %s839_s1  ;;  %p845_p13 = scmp.lt.s32.totalorder %s839_s1, %s839_s1 }
  0x1f   :  { %p846_p0 = por %p845_p13, %p844_p12 }
  0x21   :  { %p847_p1 = pnand %p846_p0, %p840_p11 }
  0x23   :  { %850 = shalt.err (!%p847_p1)
}
  0x24   :  { %24 = dma.hbm_to_vmem [thread:$0]  %s1090_s0, 256, %s22_s8, [#allocation4]  }
  0x25   :  { %s851_s22 = scalar_lea.hbm %s1092_s2, 48 }
  0x26   :  { %p852_p2 = scmp.ne.s32.totalorder %s1092_s2, %s851_s22  ;;  %p855_p3 = scmp.lt.u32.totalorder %s851_s22, %s1092_s2 }
  0x28   :  { %p857_p4 = pnand %p855_p3, %p852_p2 }
  0x2a   :  { %860 = shalt.err (!%p857_p4)
}
  0x2b   :  { %s861_s27 = scalar_lea.vmem %s44_s10, 48  ;;  %s865_s28 = scalar_lea.vmem %s44_s10, 64 }
  0x2c   :  { %p862_p5 = scmp.ne.s32.totalorder %s44_s10, %s861_s27  ;;  %p866_p6 = scmp.lt.s32.totalorder %s44_s10, %s44_s10 }
  0x2d   :  { %p867_p7 = scmp.lt.s32.totalorder %s865_s28, %s861_s27 }
  0x2f   :  { %p868_p8 = por %p867_p7, %p866_p6 }
  0x31   :  { %p869_p9 = pnand %p868_p8, %p862_p5 }
  0x33   :  { %872 = shalt.err (!%p869_p9)
}
  0x34   :  { %46 = dma.hbm_to_vmem [thread:$0]  %s1092_s2, 48, %s44_s10, [#allocation7]  }
  0x35   :  { %939 = dma.done.wait [#allocation4], 256  }
  0x36   :  { %940 = vsyncadd [#allocation4], 4294967040 }
  0x37   :  { %941 = dma.done.wait [#allocation7], 6192  }
  0x38   :  { %942 = vsyncadd [#allocation7], 4294961104  ;;  %v743_v0 = vld [vmem:[#allocation6 + $0x4] ss:$12 sps:$4 sm:$0xff]   ;;  %v745_v1 = vld [vmem:[#allocation6] ss:$12 sps:$4 sm:$0xff]   ;;  %v486_v52 = vlaneseq }
  0x39   :  { %391 = vmatprep.subr.bf16.mxu0 %v743_v0  ;;  %v746_v2 = vld [vmem:[#allocation6 + $0x1c] ss:$12 sps:$4 sm:$0xff]   ;;  %v748_v3 = vld [vmem:[#allocation6 + $0x18] ss:$12 sps:$4 sm:$0xff]   ;;  %v749_v4 = vld [vmem:[#allocation6 + $0x34] ss:$12 sps:$4 sm:$0xff]  }
  0x3a   :  { %392 = vmatpush1.bf16.msra.mxu0 %v745_v1  ;;  %v751_v5 = vld [vmem:[#allocation6 + $0x30] ss:$12 sps:$4 sm:$0xff]   ;;  %v752_v6 = vld [vmem:[#allocation6 + $0x4c] ss:$12 sps:$4 sm:$0xff]   ;;  %v754_v7 = vld [vmem:[#allocation6 + $0x48] ss:$12 sps:$4 sm:$0xff]  }
  0x3b   :  { %393 = vmatprep.subr.bf16.mxu0 %v746_v2  ;;  %v764_v8 = vld [vmem:[#allocation6 + $0xc8] ss:$12 sps:$4 sm:$0xff]   ;;  %v755_v10 = vld [vmem:[#allocation6 + $0x64] ss:$12 sps:$4 sm:$0xff]   ;;  %v769_v11 = vld [vmem:[#allocation6 + $0xe0] ss:$12 sps:$4 sm:$0xff]  }
  0x3c   :  { %v765_v9 = vld [vmem:[#allocation6 + $0x8] ss:$12 sps:$4 sm:$0xff]   ;;  %711 = vmatprep.subr.bf16.mxu1 %v764_v8  ;;  %v770_v12 = vld [vmem:[#allocation6 + $0x20] ss:$12 sps:$4 sm:$0xff]   ;;  %v774_v15 = vld [vmem:[#allocation6 + $0xf8] ss:$12 sps:$4 sm:$0xff]  }
  0x3d   :  { %712 = vmatpush3.bf16.msra.mxu1 %v765_v9  ;;  %v757_v13 = vld [vmem:[#allocation6 + $0x60] ss:$12 sps:$4 sm:$0xff]   ;;  %v758_v14 = vld [vmem:[#allocation6 + $0x7c] ss:$12 sps:$4 sm:$0xff]   ;;  %v775_v16 = vld [vmem:[#allocation6 + $0x38] ss:$12 sps:$4 sm:$0xff]  }
  0x3e   :  { %394 = vmatpush1.bf16.msra.mxu0 %v748_v3  ;;  %713 = vmatprep.subr.bf16.mxu1 %v769_v11  ;;  %v760_v17 = vld [vmem:[#allocation6 + $0x78] ss:$12 sps:$4 sm:$0xff]   ;;  %v761_v18 = vld [vmem:[#allocation6 + $0x94] ss:$12 sps:$4 sm:$0xff]   ;;  %v779_v19 = vld [vmem:[#allocation6 + $0x110] ss:$12 sps:$4 sm:$0xff]  }
  0x3f   :  { %395 = vmatprep.subr.bf16.mxu0 %v749_v4  ;;  %v780_v20 = vld [vmem:[#allocation6 + $0x50] ss:$12 sps:$4 sm:$0xff]   ;;  %v784_v22 = vld [vmem:[#allocation6 + $0x128] ss:$12 sps:$4 sm:$0xff]   ;;  %v766_v23 = vld [vmem:[#allocation6 + $0xac] ss:$12 sps:$4 sm:$0xff]  }
  0x40   :  { %v763_v21 = vld [vmem:[#allocation6 + $0x90] ss:$12 sps:$4 sm:$0xff]   ;;  %v785_v24 = vld [vmem:[#allocation6 + $0x68] ss:$12 sps:$4 sm:$0xff]   ;;  %v789_v25 = vld [vmem:[#allocation6 + $0x140] ss:$12 sps:$4 sm:$0xff]  }
  0x41   :  { %714 = vmatpush3.bf16.msra.mxu1 %v770_v12  ;;  %v768_v26 = vld [vmem:[#allocation6 + $0xa8] ss:$12 sps:$4 sm:$0xff]   ;;  %v771_v27 = vld [vmem:[#allocation6 + $0xc4] ss:$12 sps:$4 sm:$0xff]   ;;  %v790_v28 = vld [vmem:[#allocation6 + $0x80] ss:$12 sps:$4 sm:$0xff]  }
  0x42   :  { %396 = vmatpush1.bf16.msra.mxu0 %v751_v5  ;;  %715 = vmatprep.subr.bf16.mxu1 %v774_v15  ;;  %v794_v29 = vld [vmem:[#allocation6 + $0x158] ss:$12 sps:$4 sm:$0xff]   ;;  %v773_v30 = vld [vmem:[#allocation6 + $0xc0] ss:$12 sps:$4 sm:$0xff]   ;;  %v776_v31 = vld [vmem:[#allocation6 + $0xdc] ss:$12 sps:$4 sm:$0xff]  }
  0x43   :  { %397 = vmatprep.subr.bf16.mxu0 %v752_v6  ;;  %v795_v32 = vld [vmem:[#allocation6 + $0x98] ss:$12 sps:$4 sm:$0xff]   ;;  %v799_v33 = vld [vmem:[#allocation6 + $0x170] ss:$12 sps:$4 sm:$0xff]   ;;  %v781_v36 = vld [vmem:[#allocation6 + $0xf4] ss:$12 sps:$4 sm:$0xff]  }
  0x44   :  { %v778_v34 = vld [vmem:[#allocation6 + $0xd8] ss:$12 sps:$4 sm:$0xff]   ;;  %v800_v38 = vld [vmem:[#allocation6 + $0xb0] ss:$12 sps:$4 sm:$0xff]   ;;  %v788_v43 = vld [vmem:[#allocation6 + $0x108] ss:$12 sps:$4 sm:$0xff]  }
  0x45   :  { %716 = vmatpush3.bf16.msra.mxu1 %v775_v16  ;;  %v68_v35 = vld [vmem:[#allocation3 + $0x8] sm:$0xff]  ;;  %v67_v39 = vld [vmem:[#allocation3] sm:$0xff]  ;;  %v793_v45 = vld [vmem:[#allocation6 + $0x120] ss:$12 sps:$4 sm:$0xff]   ;;  %vm1023_vm0 = vcmp.lt.s32.totalorder %v486_v52, 384  ;;  %v952_v54 = vmov 0.0  }
  0x46   :  { %398 = vmatpush1.bf16.msra.mxu0 %v754_v7  ;;  %717 = vmatprep.subr.bf16.mxu1 %v779_v19  ;;  %v70_v37 = vpack.c.bf16 %v68_v35, %v68_v35  ;;  %v783_v40 = vld [vmem:[#allocation6 + $0xf0] ss:$12 sps:$4 sm:$0xff]   ;;  %v786_v41 = vld [vmem:[#allocation6 + $0x10c] ss:$12 sps:$4 sm:$0xff]   ;;  %v69_v42 = vpack.c.bf16 %v67_v39, %v67_v39  ;;  %v801_v48 = vld [vmem:[#allocation6 + $0x154] ss:$12 sps:$4 sm:$0xff]  }
  0x47   :  { %399 = vmatprep.subr.bf16.mxu0 %v755_v10  ;;  %v791_v44 = vld [vmem:[#allocation6 + $0x124] ss:$12 sps:$4 sm:$0xff]   ;;  %v796_v46 = vld [vmem:[#allocation6 + $0x13c] ss:$12 sps:$4 sm:$0xff]   ;;  %v804_v50 = vld [vmem:[#allocation6 + $0x16c] ss:$12 sps:$4 sm:$0xff]  }
  0x48   :  { %464 = vmatprep.mubr.bf16.mxu1 %v70_v37  ;;  %423 = vmatprep.mubr.bf16.mxu0 %v70_v37  ;;  %v798_v47 = vld [vmem:[#allocation6 + $0x138] ss:$12 sps:$4 sm:$0xff]   ;;  %v803_v49 = vld [vmem:[#allocation6 + $0x150] ss:$12 sps:$4 sm:$0xff]   ;;  %v806_v51 = vld [vmem:[#allocation6 + $0x168] ss:$12 sps:$4 sm:$0xff]  }
  0x49   :  { %718 = vmatpush3.bf16.msra.mxu1 %v780_v20  ;;  %515 = vst.msk [vmem:[#allocation10] sm:$0x7] %vm1023_vm0, %v952_v54  ;;  %516 = vst.msk [vmem:[#allocation12] sm:$0x7] %vm1023_vm0, %v952_v54  ;;  %v487_v55 = vshrl.u32 %v486_v52, 7  ;;  %s954_s2 = smov [#allocation9]  }
  0x4a   :  { %400 = vmatpush1.bf16.msra.mxu0 %v757_v13  ;;  %719 = vmatprep.subr.bf16.mxu1 %v784_v22  ;;  %v484_v57 = vld [vmem:[#allocation8] sm:$0x7]  ;;  %v953_v2 = vmov 1966171168   ;;  %s626_s30 = sshll.u32 %s954_s2, 4  ;;  %s627_s30 = int_to_ptr.vmem [resolvable:$true] %s626_s30 }
  0x4b   :  { %401 = vmatprep.subr.bf16.mxu0 %v758_v14  ;;  %v496_v56 = vsub.s32 2, %v487_v55  ;;  %v541_v3 = vunpack.c.l.s4 %v953_v2  ;;  %v488_v15 = vsub.s32 0, %v487_v55  ;;  %s873_s6 = scalar_lea.vmem %s627_s30, 384  ;;  %p878_p11 = scmp.lt.s32.totalorder %s627_s30, %s627_s30 }
  0x4c   :  { %p874_p10 = scmp.ne.s32.totalorder %s627_s30, %s873_s6  ;;  %p879_p12 = scmp.lt.s32.totalorder %s873_s6, %s873_s6 }
  0x4d   :  { %720 = vmatpush3.bf16.msra.mxu1 %v785_v24  ;;  %v497_v59 = vrot.slane %v484_v57, %v496_v56  ;;  %v542_v8 = vunpack.c.0.s8 %v541_v3 }
  0x4e   :  { %402 = vmatpush1.bf16.msra.mxu0 %v760_v17  ;;  %721 = vmatprep.subr.bf16.mxu1 %v789_v25  ;;  %p880_p13 = por %p879_p12, %p878_p11 }
  0x4f   :  { %403 = vmatprep.subr.bf16.mxu0 %v761_v18  ;;  %v1031_v13 = vsub.s32 %v542_v8, %v487_v55  ;;  %v492_v18 = vsub.s32 1, %v487_v55 }
  0x50   :  { %p881_p0 = pnand %p880_p13, %p874_p10 }
  0x51   :  { %722 = vmatpush3.bf16.msra.mxu1 %v790_v28  ;;  %v493_v22 = vrot.slane %v484_v57, %v492_v18 }
  0x52   :  { %404 = vmatpush1.bf16.msra.mxu0 %v763_v21  ;;  %723 = vmatprep.subr.bf16.mxu1 %v794_v29  ;;  %v489_v21 = vrot.slane %v484_v57, %v488_v15 }
  0x53   :  { %405 = vmatprep.subr.bf16.mxu0 %v766_v23 }
  0x55   :  { %724 = vmatpush3.bf16.msra.mxu1 %v795_v32 }
  0x56   :  { %406 = vmatpush1.bf16.msra.mxu0 %v768_v26  ;;  %725 = vmatprep.subr.bf16.mxu1 %v799_v33 }
  0x57   :  { %407 = vmatprep.subr.bf16.mxu0 %v771_v27 }
  0x59   :  { %726 = vmatpush3.bf16.msra.mxu1 %v800_v38 }
  0x5a   :  { %408 = vmatpush1.bf16.msra.mxu0 %v773_v30 }
  0x5b   :  { %409 = vmatprep.subr.bf16.mxu0 %v776_v31 }
  0x5c   :  { %465 = vmatmul.mubr.bf16.vlgmr.msra.gmra.mrb[0].mxu1 %v69_v42 }
  0x5e   :  { %410 = vmatpush1.bf16.msra.mxu0 %v778_v34 }
  0x5f   :  { %411 = vmatprep.subr.bf16.mxu0 %v781_v36 }
  0x62   :  { %412 = vmatpush1.bf16.msra.mxu0 %v783_v40 }
  0x63   :  { %413 = vmatprep.subr.bf16.mxu0 %v786_v41 }
  0x66   :  { %414 = vmatpush1.bf16.msra.mxu0 %v788_v43 }
  0x67   :  { %415 = vmatprep.subr.bf16.mxu0 %v791_v44 }
  0x6a   :  { %416 = vmatpush1.bf16.msra.mxu0 %v793_v45 }
  0x6b   :  { %417 = vmatprep.subr.bf16.mxu0 %v796_v46 }
  0x6e   :  { %418 = vmatpush1.bf16.msra.mxu0 %v798_v47 }
  0x6f   :  { %419 = vmatprep.subr.bf16.mxu0 %v801_v48 }
  0x72   :  { %420 = vmatpush1.bf16.msra.mxu0 %v803_v49 }
  0x73   :  { %421 = vmatprep.subr.bf16.mxu0 %v804_v50 }
  0x76   :  { %422 = vmatpush1.bf16.msra.mxu0 %v806_v51 }
  0x79   :  { %424 = vmatmul.mubr.bf16.vlgmr.msra.gmra.mrb[0].mxu0 %v69_v42 }
 0x12f   :  { %v727_v58 = vpop.f32.mrb[0].mxu1 }
 0x130   :  { %v728_v60 = vpop.f32.mrb[1].mxu1 }
 0x131   :  { %v729_v61 = vadd.f32 %v728_v60, %v727_v58  ;;  %v730_v62 = vpop.f32.mrb[2].mxu1 }
 0x132   :  { %v731_v63 = vpop.f32.mrb[3].mxu1 }
 0x133   :  { %v503_v0 = vadd.f32 %v729_v61, %v497_v59 }
 0x135   :  { %v530_v1 = vrot.slane %v503_v0, 4  ;;  %v572_v4 = vmul.f32 %v503_v0, %v503_v0  ;;  %506 = vst [vmem:[#allocation9 + $0x10] sm:$0xff] %v503_v0 }
 0x137   :  { %v531_v5 = vadd.f32 %v530_v1, %v503_v0  ;;  %v585_v6 = vrot.slane %v572_v4, 4 }
 0x139   :  { %v532_v7 = vrot.slane %v531_v5, 2  ;;  %v586_v9 = vadd.f32 %v585_v6, %v572_v4 }
 0x13b   :  { %v533_v10 = vadd.f32 %v532_v7, %v531_v5  ;;  %v587_v11 = vrot.slane %v586_v9, 2 }
 0x13d   :  { %v534_v12 = vrot.slane %v533_v10, 1  ;;  %v588_v14 = vadd.f32 %v587_v11, %v586_v9 }
 0x13f   :  { %v535_v16 = vadd.f32 %v534_v12, %v533_v10  ;;  %v589_v17 = vrot.slane %v588_v14, 1 }
 0x141   :  { %v1033_v19 = vadd.f32 %v589_v17, %v588_v14  ;;  %v553_v20 = vrot.slane %v535_v16, %v1031_v13 }
 0x143   :  { %v608_v23 = vrot.slane %v1033_v19, %v1031_v13 }
 0x14c   :  { %v425_v24 = vpop.f32.mrb[0].mxu0 }
 0x14d   :  { %v501_v25 = vadd.f32 %v489_v21, %v425_v24  ;;  %v427_v26 = vpop.f32.mrb[1].mxu0 }
 0x14e   :  { %v502_v27 = vadd.f32 %v493_v22, %v427_v26  ;;  %v429_v28 = vpop.f32.mrb[2].mxu0 }
 0x14f   :  { %v518_v29 = vrot.slane %v501_v25, 4  ;;  %v570_v30 = vmul.f32 %v501_v25, %v501_v25  ;;  %504 = vst [vmem:[#allocation9] sm:$0xff] %v501_v25  ;;  %v430_v31 = vpop.f32.mrb[3].mxu0 }
 0x150   :  { %v524_v32 = vrot.slane %v502_v27, 4  ;;  %v571_v33 = vmul.f32 %v502_v27, %v502_v27  ;;  %505 = vst [vmem:[#allocation9 + $0x8] sm:$0xff] %v502_v27 }
 0x151   :  { %v519_v34 = vadd.f32 %v518_v29, %v501_v25  ;;  %v573_v35 = vrot.slane %v570_v30, 4 }
 0x152   :  { %884 = shalt.err (!%p881_p0)
}
 0x153   :  { %s885_s9 = scalar_lea.hbm %s1093_s3, 384 }
 0x154   :  { %p886_p1 = scmp.ne.s32.totalorder %s1093_s3, %s885_s9  ;;  %p889_p2 = scmp.lt.u32.totalorder %s885_s9, %s1093_s3 }
 0x156   :  { %p891_p3 = pnand %p889_p2, %p886_p1 }
 0x158   :  { %894 = shalt.err (!%p891_p3)
}
 0x159   :  { %629 = dma.vmem_to_hbm [thread:$0]  %s627_s30, 384, %s1093_s3, [#allocation5]   ;;  %v525_v36 = vadd.f32 %v524_v32, %v502_v27  ;;  %v579_v37 = vrot.slane %v571_v33, 4  ;;  %v520_v38 = vrot.slane %v519_v34, 2  ;;  %v574_v39 = vadd.f32 %v573_v35, %v570_v30  ;;  %v517_v62 = vld [vmem:[#allocation10] sm:$0x7] }
 0x15a   :  { %s955_s3 = smov [#allocation10]   ;;  %v569_v1 = vld [vmem:[#allocation12] sm:$0x7]  ;;  %s956_s17 = smov [#allocation12]  }
 0x15b   :  { %v526_v40 = vrot.slane %v525_v36, 2  ;;  %v580_v41 = vadd.f32 %v579_v37, %v571_v33  ;;  %v521_v42 = vadd.f32 %v520_v38, %v519_v34  ;;  %v575_v43 = vrot.slane %v574_v39, 2  ;;  %s636_s16 = sshll.u32 %s955_s3, 4  ;;  %s646_s1 = sshll.u32 %s956_s17, 4  ;;  %s637_s16 = int_to_ptr.vmem [resolvable:$true] %s636_s16  ;;  %s1056_s1 = int_to_ptr.vmem [resolvable:$true] %s646_s1 }
 0x15c   :  { %s895_s18 = scalar_lea.vmem %s637_s16, 48  ;;  %s899_s19 = scalar_lea.vmem %s637_s16, 64 }
 0x15d   :  { %v527_v44 = vadd.f32 %v526_v40, %v525_v36  ;;  %v581_v45 = vrot.slane %v580_v41, 2  ;;  %v522_v46 = vrot.slane %v521_v42, 1  ;;  %v576_v47 = vadd.f32 %v575_v43, %v574_v39  ;;  %p896_p4 = scmp.ne.s32.totalorder %s637_s16, %s895_s18  ;;  %p900_p5 = scmp.lt.s32.totalorder %s637_s16, %s637_s16 }
 0x15e   :  { %p901_p6 = scmp.lt.s32.totalorder %s899_s19, %s895_s18 }
 0x15f   :  { %v528_v48 = vrot.slane %v527_v44, 1  ;;  %v582_v49 = vadd.f32 %v581_v45, %v580_v41  ;;  %v523_v50 = vadd.f32 %v522_v46, %v521_v42  ;;  %v577_v51 = vrot.slane %v576_v47, 1 }
 0x160   :  { %p902_p7 = por %p901_p6, %p900_p5 }
 0x161   :  { %v529_v52 = vadd.f32 %v528_v48, %v527_v44  ;;  %v583_v54 = vrot.slane %v582_v49, 1  ;;  %v578_v55 = vadd.f32 %v577_v51, %v576_v47 }
 0x162   :  { %p903_p8 = pnand %p902_p7, %p896_p4 }
 0x163   :  { %v539_v56 = vcombine.low %v523_v50, %v529_v52  ;;  %v584_v57 = vadd.f32 %v583_v54, %v582_v49 }
 0x165   :  { %v594_v58 = vcombine.low %v578_v55, %v584_v57  ;;  %v546_v59 = vrot.slane %v539_v56, %v1031_v13 }
 0x167   :  { %v554_v60 = vcombine.low %v546_v59, %v553_v20  ;;  %v601_v61 = vrot.slane %v594_v58, %v1031_v13 }
 0x169   :  { %v561_v63 = vrot.slane %v554_v60, %v1031_v13  ;;  %v609_v0 = vcombine.low %v601_v61, %v608_v23 }
 0x16b   :  { %v563_v2 = vadd.f32 %v561_v63, %v517_v62  ;;  %v616_v3 = vrot.slane %v609_v0, %v1031_v13 }
 0x16d   :  { %568 = vst.msk [vmem:[#allocation10] sm:$0x7] %vm1023_vm0, %v563_v2  ;;  %v618_v4 = vadd.f32 %v616_v3, %v569_v1 }
 0x16e   :  { %906 = shalt.err (!%p903_p8)
}
 0x16f   :  { %s907_s22 = scalar_lea.hbm %s1094_s4, 48 }
 0x170   :  { %p908_p9 = scmp.ne.s32.totalorder %s1094_s4, %s907_s22  ;;  %p911_p10 = scmp.lt.u32.totalorder %s907_s22, %s1094_s4 }
 0x172   :  { %p913_p11 = pnand %p911_p10, %p908_p9 }
 0x174   :  { %916 = shalt.err (!%p913_p11)
}
 0x175   :  { %639 = dma.vmem_to_hbm [thread:$0]  %s637_s16, 48, %s1094_s4, [#allocation11]   ;;  %619 = vst.msk [vmem:[#allocation12] sm:$0x7] %vm1023_vm0, %v618_v4 }
 0x176   :  { %s917_s0 = scalar_lea.vmem %s1056_s1, 48  ;;  %s921_s29 = scalar_lea.vmem %s1056_s1, 64 }
 0x177   :  { %p918_p12 = scmp.ne.s32.totalorder %s1056_s1, %s917_s0  ;;  %p922_p13 = scmp.lt.s32.totalorder %s1056_s1, %s1056_s1 }
 0x178   :  { %p923_p0 = scmp.lt.s32.totalorder %s921_s29, %s917_s0 }
 0x17a   :  { %p924_p1 = por %p923_p0, %p922_p13 }
 0x17c   :  { %p925_p2 = pnand %p924_p1, %p918_p12 }
 0x17e   :  { %928 = shalt.err (!%p925_p2)
}
 0x17f   :  { %s929_s6 = scalar_lea.hbm %s1095_s5, 48 }
 0x180   :  { %p930_p3 = scmp.ne.s32.totalorder %s1095_s5, %s929_s6  ;;  %p933_p4 = scmp.lt.u32.totalorder %s929_s6, %s1095_s5 }
 0x182   :  { %p935_p5 = pnand %p933_p4, %p930_p3 }
 0x184   :  { %938 = shalt.err (!%p935_p5)
}
 0x185   :  { %649 = dma.vmem_to_hbm [thread:$0]  %s1056_s1, 48, %s1095_s5, [#allocation11]  }
 0x186   :  { %943 = dma.done.wait [#allocation5], 384  }
 0x187   :  { %944 = vsyncadd [#allocation5], 4294966912 }
 0x188   :  { %945 = dma.done.wait [#allocation11], 96  }
 0x189   :  { %946 = vsyncadd [#allocation11], 4294967200 }
 0x18a   :  { %659 = vsyncpa [#allocation4], 1 }
 0x18b   :  { %660 = vsyncpa [#allocation7], 1 }
 0x18c   :  { %661 = vsyncpa [#allocation5], 1 }
 0x18d   :  { %662 = vsyncpa [#allocation11], 1 }

// kernel: autoenc2_forward_train.27
= control target key start
LH: loop header
LB: loop body
LE: loop exit
PB: predicated region body
PF: predicated region fallthrough
CT: control target
= control target key end

     0   :  { %10 = vsyncpa [#allocation3], 0  ;;  %s410_s0 = inlined_call_operand.hbm [shape: f32[8,384], index: 0, kind: input, shape index: {}]   ;;  %s411_s1 = inlined_call_operand.hbm [shape: f32[1,384], index: 1, kind: input, shape index: {}]   ;;  %s412_s2 = inlined_call_operand.hbm [shape: f32[1,384], index: 2, kind: input, shape index: {}]   ;;  %s413_s3 = inlined_call_operand.hbm [shape: f32[1,384], index: 3, kind: input, shape index: {}]   ;;  %s414_s4 = inlined_call_operand.hbm [shape: f32[1,384], index: 4, kind: input, shape index: {}]   ;;  %s415_s5 = inlined_call_operand.hbm [shape: f32[8,384], index: 5, kind: output, shape index: {}]  }
   0x1   :  { %11 = vsyncpa [#allocation6], 0 }
   0x2   :  { %12 = vsyncpa [#allocation9], 0 }
   0x3   :  { %13 = vsyncpa [#allocation4], 0  ;;  %s302_s18 = smov [#allocation5]   ;;  %s303_s20 = smov [#allocation8]  }
   0x4   :  { %s30_s19 = sshll.u32 %s302_s18, 4  ;;  %s50_s21 = sshll.u32 %s303_s20, 4  ;;  %s31_s19 = int_to_ptr.vmem [resolvable:$true] %s30_s19  ;;  %s51_s21 = int_to_ptr.vmem [resolvable:$true] %s50_s21 }
   0x5   :  { %s162_s24 = scalar_lea.hbm %s411_s1, 48 }
   0x6   :  { %p163_p0 = scmp.ne.s32.totalorder %s411_s1, %s162_s24  ;;  %p166_p1 = scmp.lt.u32.totalorder %s162_s24, %s411_s1 }
   0x8   :  { %p168_p2 = pnand %p166_p1, %p163_p0 }
   0xa   :  { %171 = shalt.err (!%p168_p2)
}
   0xb   :  { %s172_s29 = scalar_lea.vmem %s31_s19, 48  ;;  %s176_s30 = scalar_lea.vmem %s31_s19, 64 }
   0xc   :  { %p173_p3 = scmp.ne.s32.totalorder %s31_s19, %s172_s29  ;;  %p177_p4 = scmp.lt.s32.totalorder %s31_s19, %s31_s19 }
   0xd   :  { %p178_p5 = scmp.lt.s32.totalorder %s176_s30, %s172_s29 }
   0xf   :  { %p179_p6 = por %p178_p5, %p177_p4 }
  0x11   :  { %p180_p7 = pnand %p179_p6, %p173_p3 }
  0x13   :  { %183 = shalt.err (!%p180_p7)
}
  0x14   :  { %33 = dma.hbm_to_vmem [thread:$0]  %s411_s1, 48, %s31_s19, [#allocation6]  }
  0x15   :  { %s184_s10 = scalar_lea.hbm %s413_s3, 48 }
  0x16   :  { %p185_p8 = scmp.ne.s32.totalorder %s413_s3, %s184_s10  ;;  %p188_p9 = scmp.lt.u32.totalorder %s184_s10, %s413_s3 }
  0x18   :  { %p190_p10 = pnand %p188_p9, %p185_p8 }
  0x1a   :  { %193 = shalt.err (!%p190_p10)
}
  0x1b   :  { %s194_s15 = scalar_lea.vmem %s51_s21, 48  ;;  %s198_s16 = scalar_lea.vmem %s51_s21, 64 }
  0x1c   :  { %p195_p11 = scmp.ne.s32.totalorder %s51_s21, %s194_s15  ;;  %p199_p12 = scmp.lt.s32.totalorder %s51_s21, %s51_s21 }
  0x1d   :  { %p200_p13 = scmp.lt.s32.totalorder %s198_s16, %s194_s15 }
  0x1f   :  { %p201_p0 = por %p200_p13, %p199_p12 }
  0x21   :  { %p202_p1 = pnand %p201_p0, %p195_p11 }
  0x23   :  { %205 = shalt.err (!%p202_p1)
}
  0x24   :  { %53 = dma.hbm_to_vmem [thread:$0]  %s413_s3, 48, %s51_s21, [#allocation9]  }
  0x25   :  { %s304_s18 = smov [#allocation2]   ;;  %s305_s20 = smov [#allocation7]  }
  0x26   :  { %s20_s19 = sshll.u32 %s304_s18, 4  ;;  %s40_s22 = sshll.u32 %s305_s20, 4  ;;  %s21_s19 = int_to_ptr.vmem [resolvable:$true] %s20_s19  ;;  %s41_s22 = int_to_ptr.vmem [resolvable:$true] %s40_s22 }
  0x27   :  { %s206_s25 = scalar_lea.hbm %s410_s0, 384 }
  0x28   :  { %p207_p2 = scmp.ne.s32.totalorder %s410_s0, %s206_s25  ;;  %p210_p3 = scmp.lt.u32.totalorder %s206_s25, %s410_s0 }
  0x2a   :  { %p212_p4 = pnand %p210_p3, %p207_p2 }
  0x2c   :  { %215 = shalt.err (!%p212_p4)
}
  0x2d   :  { %s216_s3 = scalar_lea.vmem %s21_s19, 384  ;;  %p221_p6 = scmp.lt.s32.totalorder %s21_s19, %s21_s19 }
  0x2e   :  { %p217_p5 = scmp.ne.s32.totalorder %s21_s19, %s216_s3  ;;  %p222_p7 = scmp.lt.s32.totalorder %s216_s3, %s216_s3 }
  0x30   :  { %p223_p8 = por %p222_p7, %p221_p6 }
  0x32   :  { %p224_p9 = pnand %p223_p8, %p217_p5 }
  0x34   :  { %227 = shalt.err (!%p224_p9)
}
  0x35   :  { %23 = dma.hbm_to_vmem [thread:$0]  %s410_s0, 384, %s21_s19, [#allocation3]  }
  0x36   :  { %s228_s8 = scalar_lea.hbm %s412_s2, 48 }
  0x37   :  { %p229_p10 = scmp.ne.s32.totalorder %s412_s2, %s228_s8  ;;  %p232_p11 = scmp.lt.u32.totalorder %s228_s8, %s412_s2 }
  0x39   :  { %p234_p12 = pnand %p232_p11, %p229_p10 }
  0x3b   :  { %237 = shalt.err (!%p234_p12)
}
  0x3c   :  { %s238_s13 = scalar_lea.vmem %s41_s22, 48  ;;  %s242_s14 = scalar_lea.vmem %s41_s22, 64 }
  0x3d   :  { %p239_p13 = scmp.ne.s32.totalorder %s41_s22, %s238_s13  ;;  %p243_p0 = scmp.lt.s32.totalorder %s41_s22, %s41_s22 }
  0x3e   :  { %p244_p1 = scmp.lt.s32.totalorder %s242_s14, %s238_s13 }
  0x40   :  { %p245_p2 = por %p244_p1, %p243_p0 }
  0x42   :  { %p246_p3 = pnand %p245_p2, %p239_p13 }
  0x44   :  { %249 = shalt.err (!%p246_p3)
}
  0x45   :  { %43 = dma.hbm_to_vmem [thread:$0]  %s412_s2, 48, %s41_s22, [#allocation6]  }
  0x46   :  { %s306_s16 = smov [#allocation10]   ;;  %s250_s19 = scalar_lea.hbm %s414_s4, 48 }
  0x47   :  { %s60_s1 = sshll.u32 %s306_s16, 4  ;;  %p251_p4 = scmp.ne.s32.totalorder %s414_s4, %s250_s19  ;;  %s61_s1 = int_to_ptr.vmem [resolvable:$true] %s60_s1 }
  0x48   :  { %p254_p5 = scmp.lt.u32.totalorder %s250_s19, %s414_s4 }
  0x4a   :  { %p256_p6 = pnand %p254_p5, %p251_p4 }
  0x4c   :  { %259 = shalt.err (!%p256_p6)
}
  0x4d   :  { %s260_s26 = scalar_lea.vmem %s61_s1, 48  ;;  %s264_s2 = scalar_lea.vmem %s61_s1, 64 }
  0x4e   :  { %p261_p7 = scmp.ne.s32.totalorder %s61_s1, %s260_s26  ;;  %p265_p8 = scmp.lt.s32.totalorder %s61_s1, %s61_s1 }
  0x4f   :  { %p266_p9 = scmp.lt.s32.totalorder %s264_s2, %s260_s26 }
  0x51   :  { %p267_p10 = por %p266_p9, %p265_p8 }
  0x53   :  { %p268_p11 = pnand %p267_p10, %p261_p7 }
  0x55   :  { %271 = shalt.err (!%p268_p11)
}
  0x56   :  { %63 = dma.hbm_to_vmem [thread:$0]  %s414_s4, 48, %s61_s1, [#allocation9]  }
  0x57   :  { %294 = dma.done.wait [#allocation3], 384  }
  0x58   :  { %295 = vsyncadd [#allocation3], 4294966912 }
  0x59   :  { %296 = dma.done.wait [#allocation6], 96  }
  0x5a   :  { %297 = vsyncadd [#allocation6], 4294967200 }
  0x5b   :  { %298 = dma.done.wait [#allocation9], 96  }
  0x5c   :  { %299 = vsyncadd [#allocation9], 4294967200  ;;  %v79_v0 = vld [vmem:[#allocation5] sm:$0x7]  ;;  %v81_v1 = vld [vmem:[#allocation7] sm:$0x7]  ;;  %v97_v8 = vlaneseq }
  0x5d   :  { %v80_v2 = vmul.f32 0.125, %v79_v0  ;;  %v82_v3 = vmul.f32 0.125, %v81_v1  ;;  %v88_v10 = vld [vmem:[#allocation8] sm:$0x7]  ;;  %v90_v16 = vld [vmem:[#allocation10] sm:$0x7] }
  0x5e   :  { %v98_v9 = vshrl.u32 %v97_v8, 7  ;;  %v93_v17 = vld [vmem:[#allocation2] sm:$0xff]  ;;  %v94_v18 = vld [vmem:[#allocation2 + $0x8] sm:$0xff]  ;;  %v95_v19 = vld [vmem:[#allocation2 + $0x10] sm:$0xff]  ;;  %s307_s4 = smov [#allocation11]  }
  0x5f   :  { %v83_v4 = vmul.f32 %v80_v2, %v80_v2  ;;  %s143_s28 = sshll.u32 %s307_s4, 4  ;;  %s144_s28 = int_to_ptr.vmem [resolvable:$true] %s143_s28 }
  0x60   :  { %v99_v11 = vsub.s32 0, %v98_v9  ;;  %v103_v12 = vsub.s32 1, %v98_v9  ;;  %v107_v13 = vsub.s32 2, %v98_v9  ;;  %s272_s29 = scalar_lea.vmem %s144_s28, 384  ;;  %p277_p13 = scmp.lt.s32.totalorder %s144_s28, %s144_s28 }
  0x61   :  { %v84_v5 = vsub.f32 %v82_v3, %v83_v4  ;;  %p273_p12 = scmp.ne.s32.totalorder %s144_s28, %s272_s29  ;;  %p278_p0 = scmp.lt.s32.totalorder %s272_s29, %s272_s29 }
  0x63   :  { %v85_v6 = vmax.f32 %v84_v5, 0.0  ;;  %p279_p1 = por %p278_p0, %p277_p13 }
  0x65   :  { %v86_v7 = vadd.f32 1e-05, %v85_v6  ;;  %p280_p2 = pnand %p279_p1, %p273_p12 }
  0x67   :  { %160 = vrsqrt.f32 %v86_v7 }
  0x71   :  { %v161_v14 = vpop.eup %160 }
  0x72   :  { %v89_v15 = vmul.f32 %v161_v14, %v88_v10 }
  0x74   :  { %v91_v20 = vmul.f32 %v89_v15, %v80_v2  ;;  %v100_v21 = vrot.slane %v89_v15, %v99_v11  ;;  %v104_v22 = vrot.slane %v89_v15, %v103_v12  ;;  %v108_v23 = vrot.slane %v89_v15, %v107_v13 }
  0x76   :  { %v92_v24 = vsub.f32 %v90_v16, %v91_v20  ;;  %v112_v25 = vmul.f32 %v100_v21, %v93_v17  ;;  %v113_v26 = vmul.f32 %v104_v22, %v94_v18  ;;  %v114_v27 = vmul.f32 %v108_v23, %v95_v19 }
  0x78   :  { %v119_v28 = vrot.slane %v92_v24, %v99_v11  ;;  %v123_v29 = vrot.slane %v92_v24, %v103_v12  ;;  %v127_v30 = vrot.slane %v92_v24, %v107_v13 }
  0x7a   :  { %v131_v31 = vadd.f32 %v119_v28, %v112_v25  ;;  %v132_v32 = vadd.f32 %v123_v29, %v113_v26  ;;  %v133_v33 = vadd.f32 %v127_v30, %v114_v27 }
  0x7c   :  { %134 = vst [vmem:[#allocation11] sm:$0xff] %v131_v31  ;;  %135 = vst [vmem:[#allocation11 + $0x8] sm:$0xff] %v132_v32 }
  0x7d   :  { %136 = vst [vmem:[#allocation11 + $0x10] sm:$0xff] %v133_v33 }
  0x7e   :  { %283 = shalt.err (!%p280_p2)
}
  0x7f   :  { %s284_s30 = scalar_lea.hbm %s415_s5, 384 }
  0x80   :  { %p285_p3 = scmp.ne.s32.totalorder %s415_s5, %s284_s30  ;;  %p288_p4 = scmp.lt.u32.totalorder %s284_s30, %s415_s5 }
  0x82   :  { %p290_p5 = pnand %p288_p4, %p285_p3 }
  0x84   :  { %293 = shalt.err (!%p290_p5)
}
  0x85   :  { %146 = dma.vmem_to_hbm [thread:$0]  %s144_s28, 384, %s415_s5, [#allocation4]  }
  0x86   :  { %300 = dma.done.wait [#allocation4], 384  }
  0x87   :  { %301 = vsyncadd [#allocation4], 4294966912 }
  0x88   :  { %150 = vsyncpa [#allocation3], 1 }
  0x89   :  { %151 = vsyncpa [#allocation6], 1 }
  0x8a   :  { %152 = vsyncpa [#allocation9], 1 }
  0x8b   :  { %153 = vsyncpa [#allocation4], 1 }

// kernel: autoenc2_forward_train.33
= control target key start
LH: loop header
LB: loop body
LE: loop exit
PB: predicated region body
PF: predicated region fallthrough
CT: control target
= control target key end

     0   :  { %10 = vsyncpa [#allocation3], 0  ;;  %s396_s0 = inlined_call_operand.hbm [shape: f32[8,256], index: 0, kind: input, shape index: {}]   ;;  %s397_s1 = inlined_call_operand.hbm [shape: f32[1,256], index: 1, kind: input, shape index: {}]   ;;  %s398_s2 = inlined_call_operand.hbm [shape: f32[1,256], index: 2, kind: input, shape index: {}]   ;;  %s399_s3 = inlined_call_operand.hbm [shape: f32[1,256], index: 3, kind: input, shape index: {}]   ;;  %s400_s4 = inlined_call_operand.hbm [shape: f32[1,256], index: 4, kind: input, shape index: {}]   ;;  %s401_s5 = inlined_call_operand.hbm [shape: f32[8,256], index: 5, kind: output, shape index: {}]  }
   0x1   :  { %11 = vsyncpa [#allocation6], 0 }
   0x2   :  { %12 = vsyncpa [#allocation9], 0 }
   0x3   :  { %13 = vsyncpa [#allocation4], 0  ;;  %s288_s18 = smov [#allocation5]   ;;  %s289_s20 = smov [#allocation8]  }
   0x4   :  { %s30_s19 = sshll.u32 %s288_s18, 4  ;;  %s50_s21 = sshll.u32 %s289_s20, 4  ;;  %s31_s19 = int_to_ptr.vmem [resolvable:$true] %s30_s19  ;;  %s51_s21 = int_to_ptr.vmem [resolvable:$true] %s50_s21 }
   0x5   :  { %s148_s24 = scalar_lea.hbm %s397_s1, 32 }
   0x6   :  { %p149_p0 = scmp.ne.s32.totalorder %s397_s1, %s148_s24  ;;  %p152_p1 = scmp.lt.u32.totalorder %s148_s24, %s397_s1 }
   0x8   :  { %p154_p2 = pnand %p152_p1, %p149_p0 }
   0xa   :  { %157 = shalt.err (!%p154_p2)
}
   0xb   :  { %s158_s29 = scalar_lea.vmem %s31_s19, 32  ;;  %p163_p4 = scmp.lt.s32.totalorder %s31_s19, %s31_s19 }
   0xc   :  { %p159_p3 = scmp.ne.s32.totalorder %s31_s19, %s158_s29  ;;  %p164_p5 = scmp.lt.s32.totalorder %s158_s29, %s158_s29 }
   0xe   :  { %p165_p6 = por %p164_p5, %p163_p4 }
  0x10   :  { %p166_p7 = pnand %p165_p6, %p159_p3 }
  0x12   :  { %169 = shalt.err (!%p166_p7)
}
  0x13   :  { %33 = dma.hbm_to_vmem [thread:$0]  %s397_s1, 32, %s31_s19, [#allocation6]  }
  0x14   :  { %s170_s9 = scalar_lea.hbm %s399_s3, 32 }
  0x15   :  { %p171_p8 = scmp.ne.s32.totalorder %s399_s3, %s170_s9  ;;  %p174_p9 = scmp.lt.u32.totalorder %s170_s9, %s399_s3 }
  0x17   :  { %p176_p10 = pnand %p174_p9, %p171_p8 }
  0x19   :  { %179 = shalt.err (!%p176_p10)
}
  0x1a   :  { %s180_s14 = scalar_lea.vmem %s51_s21, 32  ;;  %p185_p12 = scmp.lt.s32.totalorder %s51_s21, %s51_s21 }
  0x1b   :  { %p181_p11 = scmp.ne.s32.totalorder %s51_s21, %s180_s14  ;;  %p186_p13 = scmp.lt.s32.totalorder %s180_s14, %s180_s14 }
  0x1d   :  { %p187_p0 = por %p186_p13, %p185_p12 }
  0x1f   :  { %p188_p1 = pnand %p187_p0, %p181_p11 }
  0x21   :  { %191 = shalt.err (!%p188_p1)
}
  0x22   :  { %53 = dma.hbm_to_vmem [thread:$0]  %s399_s3, 32, %s51_s21, [#allocation9]  }
  0x23   :  { %s290_s16 = smov [#allocation2]   ;;  %s291_s18 = smov [#allocation7]  }
  0x24   :  { %s20_s17 = sshll.u32 %s290_s16, 4  ;;  %s40_s19 = sshll.u32 %s291_s18, 4  ;;  %s21_s17 = int_to_ptr.vmem [resolvable:$true] %s20_s17  ;;  %s41_s19 = int_to_ptr.vmem [resolvable:$true] %s40_s19 }
  0x25   :  { %s192_s23 = scalar_lea.hbm %s396_s0, 256 }
  0x26   :  { %p193_p2 = scmp.ne.s32.totalorder %s396_s0, %s192_s23  ;;  %p196_p3 = scmp.lt.u32.totalorder %s192_s23, %s396_s0 }
  0x28   :  { %p198_p4 = pnand %p196_p3, %p193_p2 }
  0x2a   :  { %201 = shalt.err (!%p198_p4)
}
  0x2b   :  { %s202_s3 = scalar_lea.vmem %s21_s17, 256  ;;  %p207_p6 = scmp.lt.s32.totalorder %s21_s17, %s21_s17 }
  0x2c   :  { %p203_p5 = scmp.ne.s32.totalorder %s21_s17, %s202_s3  ;;  %p208_p7 = scmp.lt.s32.totalorder %s202_s3, %s202_s3 }
  0x2e   :  { %p209_p8 = por %p208_p7, %p207_p6 }
  0x30   :  { %p210_p9 = pnand %p209_p8, %p203_p5 }
  0x32   :  { %213 = shalt.err (!%p210_p9)
}
  0x33   :  { %23 = dma.hbm_to_vmem [thread:$0]  %s396_s0, 256, %s21_s17, [#allocation3]  }
  0x34   :  { %s214_s6 = scalar_lea.hbm %s398_s2, 32 }
  0x35   :  { %p215_p10 = scmp.ne.s32.totalorder %s398_s2, %s214_s6  ;;  %p218_p11 = scmp.lt.u32.totalorder %s214_s6, %s398_s2 }
  0x37   :  { %p220_p12 = pnand %p218_p11, %p215_p10 }
  0x39   :  { %223 = shalt.err (!%p220_p12)
}
  0x3a   :  { %s224_s11 = scalar_lea.vmem %s41_s19, 32  ;;  %p229_p0 = scmp.lt.s32.totalorder %s41_s19, %s41_s19 }
  0x3b   :  { %p225_p13 = scmp.ne.s32.totalorder %s41_s19, %s224_s11  ;;  %p230_p1 = scmp.lt.s32.totalorder %s224_s11, %s224_s11 }
  0x3d   :  { %p231_p2 = por %p230_p1, %p229_p0 }
  0x3f   :  { %p232_p3 = pnand %p231_p2, %p225_p13 }
  0x41   :  { %235 = shalt.err (!%p232_p3)
}
  0x42   :  { %43 = dma.hbm_to_vmem [thread:$0]  %s398_s2, 32, %s41_s19, [#allocation6]  }
  0x43   :  { %s292_s13 = smov [#allocation10]   ;;  %s236_s16 = scalar_lea.hbm %s400_s4, 32 }
  0x44   :  { %s60_s14 = sshll.u32 %s292_s13, 4  ;;  %p237_p4 = scmp.ne.s32.totalorder %s400_s4, %s236_s16  ;;  %s61_s14 = int_to_ptr.vmem [resolvable:$true] %s60_s14 }
  0x45   :  { %p240_p5 = scmp.lt.u32.totalorder %s236_s16, %s400_s4 }
  0x47   :  { %p242_p6 = pnand %p240_p5, %p237_p4 }
  0x49   :  { %245 = shalt.err (!%p242_p6)
}
  0x4a   :  { %s246_s23 = scalar_lea.vmem %s61_s14, 32  ;;  %p251_p8 = scmp.lt.s32.totalorder %s61_s14, %s61_s14 }
  0x4b   :  { %p247_p7 = scmp.ne.s32.totalorder %s61_s14, %s246_s23  ;;  %p252_p9 = scmp.lt.s32.totalorder %s246_s23, %s246_s23 }
  0x4d   :  { %p253_p10 = por %p252_p9, %p251_p8 }
  0x4f   :  { %p254_p11 = pnand %p253_p10, %p247_p7 }
  0x51   :  { %257 = shalt.err (!%p254_p11)
}
  0x52   :  { %63 = dma.hbm_to_vmem [thread:$0]  %s400_s4, 32, %s61_s14, [#allocation9]  }
  0x53   :  { %280 = dma.done.wait [#allocation3], 256  }
  0x54   :  { %281 = vsyncadd [#allocation3], 4294967040 }
  0x55   :  { %282 = dma.done.wait [#allocation6], 64  }
  0x56   :  { %283 = vsyncadd [#allocation6], 4294967232 }
  0x57   :  { %284 = dma.done.wait [#allocation9], 64  }
  0x58   :  { %285 = vsyncadd [#allocation9], 4294967232  ;;  %v79_v0 = vld [vmem:[#allocation5] sm:$0x3]  ;;  %v81_v1 = vld [vmem:[#allocation7] sm:$0x3]  ;;  %v96_v8 = vlaneseq }
  0x59   :  { %v80_v2 = vmul.f32 0.125, %v79_v0  ;;  %v82_v3 = vmul.f32 0.125, %v81_v1  ;;  %v88_v10 = vld [vmem:[#allocation8] sm:$0x3]  ;;  %v90_v15 = vld [vmem:[#allocation10] sm:$0x3] }
  0x5a   :  { %v97_v9 = vshrl.u32 %v96_v8, 7  ;;  %v93_v16 = vld [vmem:[#allocation2] sm:$0xff]  ;;  %v94_v17 = vld [vmem:[#allocation2 + $0x8] sm:$0xff]  ;;  %s293_s4 = smov [#allocation11]  }
  0x5b   :  { %v83_v4 = vmul.f32 %v80_v2, %v80_v2  ;;  %s129_s24 = sshll.u32 %s293_s4, 4  ;;  %s130_s24 = int_to_ptr.vmem [resolvable:$true] %s129_s24 }
  0x5c   :  { %v98_v11 = vsub.s32 0, %v97_v9  ;;  %v102_v12 = vsub.s32 1, %v97_v9  ;;  %s258_s25 = scalar_lea.vmem %s130_s24, 256  ;;  %p263_p13 = scmp.lt.s32.totalorder %s130_s24, %s130_s24 }
  0x5d   :  { %v84_v5 = vsub.f32 %v82_v3, %v83_v4  ;;  %p259_p12 = scmp.ne.s32.totalorder %s130_s24, %s258_s25  ;;  %p264_p0 = scmp.lt.s32.totalorder %s258_s25, %s258_s25 }
  0x5f   :  { %v85_v6 = vmax.f32 %v84_v5, 0.0  ;;  %p265_p1 = por %p264_p0, %p263_p13 }
  0x61   :  { %v86_v7 = vadd.f32 1e-05, %v85_v6  ;;  %p266_p2 = pnand %p265_p1, %p259_p12 }
  0x63   :  { %146 = vrsqrt.f32 %v86_v7 }
  0x6d   :  { %v147_v13 = vpop.eup %146 }
  0x6e   :  { %v89_v14 = vmul.f32 %v147_v13, %v88_v10 }
  0x70   :  { %v91_v18 = vmul.f32 %v89_v14, %v80_v2  ;;  %v99_v19 = vrot.slane %v89_v14, %v98_v11  ;;  %v103_v20 = vrot.slane %v89_v14, %v102_v12 }
  0x72   :  { %v92_v21 = vsub.f32 %v90_v15, %v91_v18  ;;  %v106_v22 = vmul.f32 %v99_v19, %v93_v16  ;;  %v107_v23 = vmul.f32 %v103_v20, %v94_v17 }
  0x74   :  { %v112_v24 = vrot.slane %v92_v21, %v98_v11  ;;  %v116_v25 = vrot.slane %v92_v21, %v102_v12 }
  0x76   :  { %v119_v26 = vadd.f32 %v112_v24, %v106_v22  ;;  %v120_v27 = vadd.f32 %v116_v25, %v107_v23 }
  0x78   :  { %121 = vst [vmem:[#allocation11] sm:$0xff] %v119_v26  ;;  %122 = vst [vmem:[#allocation11 + $0x8] sm:$0xff] %v120_v27 }
  0x79   :  { %269 = shalt.err (!%p266_p2)
}
  0x7a   :  { %s270_s3 = scalar_lea.hbm %s401_s5, 256 }
  0x7b   :  { %p271_p3 = scmp.ne.s32.totalorder %s401_s5, %s270_s3  ;;  %p274_p4 = scmp.lt.u32.totalorder %s270_s3, %s401_s5 }
  0x7d   :  { %p276_p5 = pnand %p274_p4, %p271_p3 }
  0x7f   :  { %279 = shalt.err (!%p276_p5)
}
  0x80   :  { %132 = dma.vmem_to_hbm [thread:$0]  %s130_s24, 256, %s401_s5, [#allocation4]  }
  0x81   :  { %286 = dma.done.wait [#allocation4], 256  }
  0x82   :  { %287 = vsyncadd [#allocation4], 4294967040 }
  0x83   :  { %136 = vsyncpa [#allocation3], 1 }
  0x84   :  { %137 = vsyncpa [#allocation6], 1 }
  0x85   :  { %138 = vsyncpa [#allocation9], 1 }
  0x86   :  { %139 = vsyncpa [#allocation4], 1 }

// kernel: autoenc2_forward_train.35
= control target key start
LH: loop header
LB: loop body
LE: loop exit
PB: predicated region body
PF: predicated region fallthrough
CT: control target
= control target key end

     0   :  { %10 = vsyncpa [#allocation3], 0  ;;  %s424_s0 = inlined_call_operand.hbm [shape: f32[8,384], index: 0, kind: input, shape index: {}]   ;;  %s425_s1 = inlined_call_operand.hbm [shape: f32[1,384], index: 1, kind: input, shape index: {}]   ;;  %s426_s2 = inlined_call_operand.hbm [shape: f32[1,384], index: 2, kind: input, shape index: {}]   ;;  %s427_s3 = inlined_call_operand.hbm [shape: f32[1,384], index: 3, kind: input, shape index: {}]   ;;  %s428_s4 = inlined_call_operand.hbm [shape: f32[1,384], index: 4, kind: input, shape index: {}]   ;;  %s429_s5 = inlined_call_operand.hbm [shape: f32[8,384], index: 5, kind: output, shape index: {}]  }
   0x1   :  { %11 = vsyncpa [#allocation6], 0 }
   0x2   :  { %12 = vsyncpa [#allocation9], 0 }
   0x3   :  { %13 = vsyncpa [#allocation4], 0  ;;  %s316_s18 = smov [#allocation5]   ;;  %s317_s20 = smov [#allocation8]  }
   0x4   :  { %s30_s19 = sshll.u32 %s316_s18, 4  ;;  %s50_s21 = sshll.u32 %s317_s20, 4  ;;  %s31_s19 = int_to_ptr.vmem [resolvable:$true] %s30_s19  ;;  %s51_s21 = int_to_ptr.vmem [resolvable:$true] %s50_s21 }
   0x5   :  { %s176_s24 = scalar_lea.hbm %s425_s1, 48 }
   0x6   :  { %p177_p0 = scmp.ne.s32.totalorder %s425_s1, %s176_s24  ;;  %p180_p1 = scmp.lt.u32.totalorder %s176_s24, %s425_s1 }
   0x8   :  { %p182_p2 = pnand %p180_p1, %p177_p0 }
   0xa   :  { %185 = shalt.err (!%p182_p2)
}
   0xb   :  { %s186_s29 = scalar_lea.vmem %s31_s19, 48  ;;  %s190_s30 = scalar_lea.vmem %s31_s19, 64 }
   0xc   :  { %p187_p3 = scmp.ne.s32.totalorder %s31_s19, %s186_s29  ;;  %p191_p4 = scmp.lt.s32.totalorder %s31_s19, %s31_s19 }
   0xd   :  { %p192_p5 = scmp.lt.s32.totalorder %s190_s30, %s186_s29 }
   0xf   :  { %p193_p6 = por %p192_p5, %p191_p4 }
  0x11   :  { %p194_p7 = pnand %p193_p6, %p187_p3 }
  0x13   :  { %197 = shalt.err (!%p194_p7)
}
  0x14   :  { %33 = dma.hbm_to_vmem [thread:$0]  %s425_s1, 48, %s31_s19, [#allocation6]  }
  0x15   :  { %s198_s10 = scalar_lea.hbm %s427_s3, 48 }
  0x16   :  { %p199_p8 = scmp.ne.s32.totalorder %s427_s3, %s198_s10  ;;  %p202_p9 = scmp.lt.u32.totalorder %s198_s10, %s427_s3 }
  0x18   :  { %p204_p10 = pnand %p202_p9, %p199_p8 }
  0x1a   :  { %207 = shalt.err (!%p204_p10)
}
  0x1b   :  { %s208_s15 = scalar_lea.vmem %s51_s21, 48  ;;  %s212_s16 = scalar_lea.vmem %s51_s21, 64 }
  0x1c   :  { %p209_p11 = scmp.ne.s32.totalorder %s51_s21, %s208_s15  ;;  %p213_p12 = scmp.lt.s32.totalorder %s51_s21, %s51_s21 }
  0x1d   :  { %p214_p13 = scmp.lt.s32.totalorder %s212_s16, %s208_s15 }
  0x1f   :  { %p215_p0 = por %p214_p13, %p213_p12 }
  0x21   :  { %p216_p1 = pnand %p215_p0, %p209_p11 }
  0x23   :  { %219 = shalt.err (!%p216_p1)
}
  0x24   :  { %53 = dma.hbm_to_vmem [thread:$0]  %s427_s3, 48, %s51_s21, [#allocation9]  }
  0x25   :  { %s318_s18 = smov [#allocation2]   ;;  %s319_s20 = smov [#allocation7]  }
  0x26   :  { %s20_s19 = sshll.u32 %s318_s18, 4  ;;  %s40_s22 = sshll.u32 %s319_s20, 4  ;;  %s21_s19 = int_to_ptr.vmem [resolvable:$true] %s20_s19  ;;  %s41_s22 = int_to_ptr.vmem [resolvable:$true] %s40_s22 }
  0x27   :  { %s220_s25 = scalar_lea.hbm %s424_s0, 384 }
  0x28   :  { %p221_p2 = scmp.ne.s32.totalorder %s424_s0, %s220_s25  ;;  %p224_p3 = scmp.lt.u32.totalorder %s220_s25, %s424_s0 }
  0x2a   :  { %p226_p4 = pnand %p224_p3, %p221_p2 }
  0x2c   :  { %229 = shalt.err (!%p226_p4)
}
  0x2d   :  { %s230_s3 = scalar_lea.vmem %s21_s19, 384  ;;  %p235_p6 = scmp.lt.s32.totalorder %s21_s19, %s21_s19 }
  0x2e   :  { %p231_p5 = scmp.ne.s32.totalorder %s21_s19, %s230_s3  ;;  %p236_p7 = scmp.lt.s32.totalorder %s230_s3, %s230_s3 }
  0x30   :  { %p237_p8 = por %p236_p7, %p235_p6 }
  0x32   :  { %p238_p9 = pnand %p237_p8, %p231_p5 }
  0x34   :  { %241 = shalt.err (!%p238_p9)
}
  0x35   :  { %23 = dma.hbm_to_vmem [thread:$0]  %s424_s0, 384, %s21_s19, [#allocation3]  }
  0x36   :  { %s242_s8 = scalar_lea.hbm %s426_s2, 48 }
  0x37   :  { %p243_p10 = scmp.ne.s32.totalorder %s426_s2, %s242_s8  ;;  %p246_p11 = scmp.lt.u32.totalorder %s242_s8, %s426_s2 }
  0x39   :  { %p248_p12 = pnand %p246_p11, %p243_p10 }
  0x3b   :  { %251 = shalt.err (!%p248_p12)
}
  0x3c   :  { %s252_s13 = scalar_lea.vmem %s41_s22, 48  ;;  %s256_s14 = scalar_lea.vmem %s41_s22, 64 }
  0x3d   :  { %p253_p13 = scmp.ne.s32.totalorder %s41_s22, %s252_s13  ;;  %p257_p0 = scmp.lt.s32.totalorder %s41_s22, %s41_s22 }
  0x3e   :  { %p258_p1 = scmp.lt.s32.totalorder %s256_s14, %s252_s13 }
  0x40   :  { %p259_p2 = por %p258_p1, %p257_p0 }
  0x42   :  { %p260_p3 = pnand %p259_p2, %p253_p13 }
  0x44   :  { %263 = shalt.err (!%p260_p3)
}
  0x45   :  { %43 = dma.hbm_to_vmem [thread:$0]  %s426_s2, 48, %s41_s22, [#allocation6]  }
  0x46   :  { %s320_s16 = smov [#allocation10]   ;;  %s264_s19 = scalar_lea.hbm %s428_s4, 48 }
  0x47   :  { %s60_s1 = sshll.u32 %s320_s16, 4  ;;  %p265_p4 = scmp.ne.s32.totalorder %s428_s4, %s264_s19  ;;  %s61_s1 = int_to_ptr.vmem [resolvable:$true] %s60_s1 }
  0x48   :  { %p268_p5 = scmp.lt.u32.totalorder %s264_s19, %s428_s4 }
  0x4a   :  { %p270_p6 = pnand %p268_p5, %p265_p4 }
  0x4c   :  { %273 = shalt.err (!%p270_p6)
}
  0x4d   :  { %s274_s26 = scalar_lea.vmem %s61_s1, 48  ;;  %s278_s2 = scalar_lea.vmem %s61_s1, 64 }
  0x4e   :  { %p275_p7 = scmp.ne.s32.totalorder %s61_s1, %s274_s26  ;;  %p279_p8 = scmp.lt.s32.totalorder %s61_s1, %s61_s1 }
  0x4f   :  { %p280_p9 = scmp.lt.s32.totalorder %s278_s2, %s274_s26 }
  0x51   :  { %p281_p10 = por %p280_p9, %p279_p8 }
  0x53   :  { %p282_p11 = pnand %p281_p10, %p275_p7 }
  0x55   :  { %285 = shalt.err (!%p282_p11)
}
  0x56   :  { %63 = dma.hbm_to_vmem [thread:$0]  %s428_s4, 48, %s61_s1, [#allocation9]  }
  0x57   :  { %308 = dma.done.wait [#allocation3], 384  }
  0x58   :  { %309 = vsyncadd [#allocation3], 4294966912 }
  0x59   :  { %310 = dma.done.wait [#allocation6], 96  }
  0x5a   :  { %311 = vsyncadd [#allocation6], 4294967200 }
  0x5b   :  { %312 = dma.done.wait [#allocation9], 96  }
  0x5c   :  { %313 = vsyncadd [#allocation9], 4294967200  ;;  %v79_v0 = vld [vmem:[#allocation5] sm:$0x7]  ;;  %v81_v1 = vld [vmem:[#allocation7] sm:$0x7]  ;;  %v97_v8 = vlaneseq }
  0x5d   :  { %v80_v2 = vmul.f32 0.125, %v79_v0  ;;  %v82_v3 = vmul.f32 0.125, %v81_v1  ;;  %v88_v10 = vld [vmem:[#allocation8] sm:$0x7]  ;;  %v90_v16 = vld [vmem:[#allocation10] sm:$0x7] }
  0x5e   :  { %v98_v9 = vshrl.u32 %v97_v8, 7  ;;  %v93_v17 = vld [vmem:[#allocation2] sm:$0xff]  ;;  %v94_v18 = vld [vmem:[#allocation2 + $0x8] sm:$0xff]  ;;  %v95_v19 = vld [vmem:[#allocation2 + $0x10] sm:$0xff]  ;;  %s321_s4 = smov [#allocation11]  }
  0x5f   :  { %v83_v4 = vmul.f32 %v80_v2, %v80_v2  ;;  %s155_s28 = sshll.u32 %s321_s4, 4  ;;  %s156_s28 = int_to_ptr.vmem [resolvable:$true] %s155_s28 }
  0x60   :  { %v99_v11 = vsub.s32 0, %v98_v9  ;;  %v103_v12 = vsub.s32 1, %v98_v9  ;;  %v107_v13 = vsub.s32 2, %v98_v9  ;;  %s286_s29 = scalar_lea.vmem %s156_s28, 384  ;;  %p291_p13 = scmp.lt.s32.totalorder %s156_s28, %s156_s28 }
  0x61   :  { %v84_v5 = vsub.f32 %v82_v3, %v83_v4  ;;  %p287_p12 = scmp.ne.s32.totalorder %s156_s28, %s286_s29  ;;  %p292_p0 = scmp.lt.s32.totalorder %s286_s29, %s286_s29 }
  0x63   :  { %v85_v6 = vmax.f32 %v84_v5, 0.0  ;;  %p293_p1 = por %p292_p0, %p291_p13 }
  0x65   :  { %v86_v7 = vadd.f32 1e-05, %v85_v6  ;;  %p294_p2 = pnand %p293_p1, %p287_p12 }
  0x67   :  { %172 = vrsqrt.f32 %v86_v7 }
  0x71   :  { %v173_v14 = vpop.eup %172 }
  0x72   :  { %v89_v15 = vmul.f32 %v173_v14, %v88_v10 }
  0x74   :  { %v91_v20 = vmul.f32 %v89_v15, %v80_v2  ;;  %v100_v21 = vrot.slane %v89_v15, %v99_v11  ;;  %v104_v22 = vrot.slane %v89_v15, %v103_v12  ;;  %v108_v23 = vrot.slane %v89_v15, %v107_v13 }
  0x76   :  { %v92_v24 = vsub.f32 %v90_v16, %v91_v20  ;;  %v112_v25 = vmul.f32 %v100_v21, %v93_v17  ;;  %v113_v26 = vmul.f32 %v104_v22, %v94_v18  ;;  %v114_v27 = vmul.f32 %v108_v23, %v95_v19 }
  0x78   :  { %v119_v28 = vrot.slane %v92_v24, %v99_v11  ;;  %v123_v29 = vrot.slane %v92_v24, %v103_v12  ;;  %v127_v30 = vrot.slane %v92_v24, %v107_v13 }
  0x7a   :  { %v131_v31 = vadd.f32 %v119_v28, %v112_v25  ;;  %v132_v32 = vadd.f32 %v123_v29, %v113_v26  ;;  %v133_v33 = vadd.f32 %v127_v30, %v114_v27 }
  0x7c   :  { %v134_v34 = vmul.f32 %v131_v31, %v131_v31  ;;  %v135_v35 = vmul.f32 %v132_v32, %v132_v32  ;;  %v136_v36 = vmul.f32 %v133_v33, %v133_v33 }
  0x7e   :  { %v137_v37 = vadd.f32 %v135_v35, %v134_v34 }
  0x80   :  { %v138_v38 = vadd.f32 %v137_v37, %v136_v36 }
  0x82   :  { %139 = vadd.xlane.f32.xlu0 %v138_v38 }
 0x10f   :  { %v140_v39 = vpop.xlane.xlu0 %139 }
 0x110   :  { %v141_v40 = vmax.f32 %v140_v39, 1e-24 }
 0x112   :  { %174 = vrsqrt.f32 %v141_v40 }
 0x11c   :  { %v175_v41 = vpop.eup %174 }
 0x11d   :  { %v143_v42 = vmul.f32 %v175_v41, %v131_v31  ;;  %v144_v43 = vmul.f32 %v175_v41, %v132_v32  ;;  %v145_v44 = vmul.f32 %v175_v41, %v133_v33 }
 0x11f   :  { %146 = vst [vmem:[#allocation11] sm:$0xff] %v143_v42  ;;  %147 = vst [vmem:[#allocation11 + $0x8] sm:$0xff] %v144_v43 }
 0x120   :  { %148 = vst [vmem:[#allocation11 + $0x10] sm:$0xff] %v145_v44 }
 0x121   :  { %297 = shalt.err (!%p294_p2)
}
 0x122   :  { %s298_s30 = scalar_lea.hbm %s429_s5, 384 }
 0x123   :  { %p299_p3 = scmp.ne.s32.totalorder %s429_s5, %s298_s30  ;;  %p302_p4 = scmp.lt.u32.totalorder %s298_s30, %s429_s5 }
 0x125   :  { %p304_p5 = pnand %p302_p4, %p299_p3 }
 0x127   :  { %307 = shalt.err (!%p304_p5)
}
 0x128   :  { %158 = dma.vmem_to_hbm [thread:$0]  %s156_s28, 384, %s429_s5, [#allocation4]  }
 0x129   :  { %314 = dma.done.wait [#allocation4], 384  }
 0x12a   :  { %315 = vsyncadd [#allocation4], 4294966912 }
 0x12b   :  { %162 = vsyncpa [#allocation3], 1 }
 0x12c   :  { %163 = vsyncpa [#allocation6], 1 }
 0x12d   :  { %164 = vsyncpa [#allocation9], 1 }
 0x12e   :  { %165 = vsyncpa [#allocation4], 1 }

</bundles_post_ra>
